<compile_context>
chip_gen: v7x
topology: tpu7x:2x2x1
jax: 0.10.0
libtpu: 0.0.40
codegen_flags: <defaults>
</compile_context>

<pallas_src>
import numpy as np
import jax
import jax.numpy as jnp
from jax.experimental import pallas as pl
from jax.experimental.pallas import tpu as pltpu  # noqa: F401  (TPU-specific tuning hooks)

# ----------------------------- config ---------------------------------------
VOCAB = 64
SEQ = 8
HIDDEN = 32
N_HEADS = 2
HEAD_DIM = HIDDEN // N_HEADS
FFN = 64
PROJ = 16
BATCH = 8              # triplets per call (>=6 per perf review: fills MXU rows)
LN_EPS = 1e-12
MARGIN = 0.5

# bias/LN slab: one parameter per sublane row, lane offset 0, zero-padded to 128
(_R_BQKV, _R_BO, _R_LN1G, _R_LN1B, _R_LN2G, _R_LN2B,
 _R_B1, _R_B2, _R_BP) = range(9)
_BIAS_ROWS = 16


# --------------------------- in-kernel helpers --------------------------------
def _layernorm(x, gamma, beta):
    mu = jnp.mean(x, axis=-1, keepdims=True)
    d = x - mu
    var = jnp.mean(d * d, axis=-1, keepdims=True)
    return d * jax.lax.rsqrt(var + LN_EPS) * gamma + beta


def _gelu(x):
    # TODO(synk): PyTorch nn.GELU defaults to the exact erf form; the tanh
    # approximation is used to keep the single EUP port lightly loaded (v5e).
    c = 0.7978845608028654  # sqrt(2/pi)
    return 0.5 * x * (1.0 + jnp.tanh(c * (x + 0.044715 * x * x * x)))


# ------------------------------ fused kernel ----------------------------------
def fused_forward_kernel(ids_ref, mask_ref, pos_ref, tok_ref,
                         w_qkv_ref, w_o_ref, w1_ref, w2_ref, w_p_ref,
                         bias_ref, stats_ref):
    rows = ids_ref.shape[0]            # 3*B*S  (static)
    n_seq = rows // SEQ                # 3*B
    b = n_seq // 3

    # ---- bias / LN rows: each starts at lane 0 --------------------------------
    b_qkv = bias_ref[_R_BQKV:_R_BQKV + 1, 0:3 * HIDDEN]
    b_o = bias_ref[_R_BO:_R_BO + 1, 0:HIDDEN]
    ln1_g = bias_ref[_R_LN1G:_R_LN1G + 1, 0:HIDDEN]
    ln1_b = bias_ref[_R_LN1B:_R_LN1B + 1, 0:HIDDEN]
    ln2_g = bias_ref[_R_LN2G:_R_LN2G + 1, 0:HIDDEN]
    ln2_b = bias_ref[_R_LN2B:_R_LN2B + 1, 0:HIDDEN]
    b_1 = bias_ref[_R_B1:_R_B1 + 1, 0:FFN]
    b_2 = bias_ref[_R_B2:_R_B2 + 1, 0:HIDDEN]
    b_p = bias_ref[_R_BP:_R_BP + 1, 0:PROJ]

    # ---- in-kernel embedding lookup: one-hot @ token table (MXU) --------------
    ids = ids_ref[...]                                              # (rows, 1) i32
    vocab_iota = jax.lax.broadcasted_iota(jnp.int32, (rows, VOCAB), 1)
    onehot = jnp.where(ids == vocab_iota, 1.0, 0.0).astype(jnp.bfloat16)
    xf = jnp.dot(onehot, tok_ref[...], preferred_element_type=jnp.float32)
    xf = xf + pos_ref[...]                                          # (rows, H) f32

    # ---- fused QKV projection over the whole fused batch (one MXU matmul) -----
    qkv = jnp.dot(xf.astype(jnp.bfloat16), w_qkv_ref[...],
                  preferred_element_type=jnp.float32) + b_qkv       # (rows, 3H)
    qkv3 = qkv.reshape(n_seq, SEQ, 3 * HIDDEN)

    mask = mask_ref[...]                                            # (3B, 1, S)
    attn_bias = (1.0 - mask) * (-1e9)

    scale = 1.0 / (HEAD_DIM ** 0.5)
    ctx_heads = []
    for h in range(N_HEADS):                    # static 2-iteration loop
        q_h = qkv3[:, :, h * HEAD_DIM:(h + 1) * HEAD_DIM]
        k_h = qkv3[:, :, HIDDEN + h * HEAD_DIM:HIDDEN + (h + 1) * HEAD_DIM]
        v_h = qkv3[:, :, 2 * HIDDEN + h * HEAD_DIM:2 * HIDDEN + (h + 1) * HEAD_DIM]
        s = jnp.einsum('nqd,nkd->nqk', q_h, k_h,
                       preferred_element_type=jnp.float32) * scale  # (3B, S, S)
        s = s + attn_bias
        p = jnp.exp(s - jnp.max(s, axis=-1, keepdims=True))
        p = p * pl.reciprocal(jnp.sum(p, axis=-1, keepdims=True), approx=True)
        ctx_heads.append(jnp.einsum('nqk,nkd->nqd', p, v_h,
                                    preferred_element_type=jnp.float32))
    ctx = jnp.concatenate(ctx_heads, axis=-1).reshape(rows, HIDDEN)
    attn_out = jnp.dot(ctx.astype(jnp.bfloat16), w_o_ref[...],
                       preferred_element_type=jnp.float32) + b_o
    h1 = _layernorm(xf + attn_out, ln1_g, ln1_b)

    ff = jnp.dot(h1.astype(jnp.bfloat16), w1_ref[...],
                 preferred_element_type=jnp.float32) + b_1
    ff = jnp.dot(_gelu(ff).astype(jnp.bfloat16), w2_ref[...],
                 preferred_element_type=jnp.float32) + b_2
    enc = _layernorm(h1 + ff, ln2_g, ln2_b)                         # (rows, H)

    # ---- CLS pooling + projector + L2-normalize + cosine hinge loss ----------
    cls = enc.reshape(n_seq, SEQ, HIDDEN)[:, 0, :]                  # (3B, H)
    proj = jnp.dot(cls.astype(jnp.bfloat16), w_p_ref[...],
                   preferred_element_type=jnp.float32) + b_p
    inv_nrm = jax.lax.rsqrt(jnp.sum(proj * proj, axis=-1, keepdims=True) + 1e-24)
    proj = proj * inv_nrm                                           # (3B, PROJ)

    q_e = proj[0:b]
    p_e = proj[b:2 * b]
    n_e = proj[2 * b:3 * b]
    pos_sc = jnp.sum(q_e * p_e, axis=-1, keepdims=True)             # (B, 1)
    neg_sc = jnp.sum(q_e * n_e, axis=-1, keepdims=True)             # (B, 1)
    hinge = jnp.maximum(MARGIN - pos_sc + neg_sc, 0.0)
    loss = jnp.sum(hinge, axis=0, keepdims=True) * (1.0 / b)        # (1, 1)
    min_pos = jnp.min(pos_sc, axis=0, keepdims=True)                # (1, 1)

    # lane-dense output slab: row 0 = loss, row 1 = min positive score
    stats_ref[...] = jnp.concatenate(
        [jnp.broadcast_to(loss, (1, 128)),
         jnp.broadcast_to(min_pos, (1, 128))], axis=0)


# -------------------------- jitted forward wrapper -----------------------------
@jax.jit
def _fused_forward(tok_emb, pos_emb, w_qkv, w_o, w1, w2, w_p, bias_slab,
                   ids, mask, pred_threshold):
    n_seq, seq = ids.shape
    rows = n_seq * seq
    ids_flat = ids.reshape(rows, 1).astype(jnp.int32)          # (3B*S, 1)
    pos_tiled = jnp.tile(pos_emb, (n_seq, 1))                   # (3B*S, H) f32
    mask3 = mask[:, None, :]                                    # (3B, 1, S)

    stats = pl.pallas_call(
        fused_forward_kernel,
        out_shape=jax.ShapeDtypeStruct((2, 128), jnp.float32),
    )(ids_flat, mask3, pos_tiled, tok_emb, w_qkv, w_o, w1, w2, w_p, bias_slab)

    loss = stats[0, 0]
    min_pos = stats[1, 0]
    # device-side pred_threshold bookkeeping (matches the torch module, no host sync)
    delta = min_pos - pred_threshold
    delta = delta * 0.01 + jnp.sign(delta) * 0.01
    return loss, pred_threshold + delta


# ------------------------------- parameters ----------------------------------
def create_params(key):
    ks = jax.random.split(key, 16)
    n = lambda k, shape, s=0.02: (jax.random.normal(k, shape, jnp.float32) * s)
    return {
        "tok_emb": n(ks[0], (VOCAB, HIDDEN)),
        "pos_emb": n(ks[1], (SEQ, HIDDEN)),
        "encoder": {
            "wq": n(ks[2], (HIDDEN, HIDDEN)), "bq": jnp.zeros((1, HIDDEN), jnp.float32),
            "wk": n(ks[3], (HIDDEN, HIDDEN)), "bk": jnp.zeros((1, HIDDEN), jnp.float32),
            "wv": n(ks[4], (HIDDEN, HIDDEN)), "bv": jnp.zeros((1, HIDDEN), jnp.float32),
            "wo": n(ks[5], (HIDDEN, HIDDEN)), "bo": jnp.zeros((1, HIDDEN), jnp.float32),
            "ln1_g": jnp.ones((1, HIDDEN), jnp.float32),
            "ln1_b": jnp.zeros((1, HIDDEN), jnp.float32),
            "w1": n(ks[6], (HIDDEN, FFN)), "b1": jnp.zeros((1, FFN), jnp.float32),
            "w2": n(ks[7], (FFN, HIDDEN)), "b2": jnp.zeros((1, HIDDEN), jnp.float32),
            "ln2_g": jnp.ones((1, HIDDEN), jnp.float32),
            "ln2_b": jnp.zeros((1, HIDDEN), jnp.float32),
        },
        "proj_w": n(ks[8], (HIDDEN, PROJ)),
        "proj_b": jnp.zeros((1, PROJ), jnp.float32),
    }


def pack_params(params):
    """Pack parameters into lane-aligned arrays (done once at init).

    Weights (MXU operands) are stored in bf16; biases / LN params stay f32 and
    go into a (16, 128) slab with one parameter per sublane row at lane 0.
    """
    e = params["encoder"]
    bf = lambda a: a.astype(jnp.bfloat16)
    w_qkv = bf(jnp.concatenate([e["wq"], e["wk"], e["wv"]], axis=1))   # (H, 3H)
    w_o = bf(e["wo"])                                                   # (H, H)
    w1 = bf(e["w1"])                                                    # (H, FFN)
    w2 = bf(e["w2"])                                                    # (FFN, H)
    w_p = bf(params["proj_w"])                                          # (H, PROJ)
    tok = bf(params["tok_emb"])                                         # (VOCAB, H)

    def row(v):
        v = v.reshape(1, -1).astype(jnp.float32)
        return jnp.pad(v, ((0, 0), (0, 128 - v.shape[1])))

    rows = [
        row(jnp.concatenate([e["bq"], e["bk"], e["bv"]], axis=1)),  # _R_BQKV
        row(e["bo"]),                                               # _R_BO
        row(e["ln1_g"]), row(e["ln1_b"]),                           # _R_LN1G/B
        row(e["ln2_g"]), row(e["ln2_b"]),                           # _R_LN2G/B
        row(e["b1"]), row(e["b2"]),                                 # _R_B1/_R_B2
        row(params["proj_b"]),                                      # _R_BP
    ]
    rows.append(jnp.zeros((_BIAS_ROWS - len(rows), 128), jnp.float32))
    bias_slab = jnp.concatenate(rows, axis=0)                       # (16, 128)
    return tok, w_qkv, w_o, w1, w2, w_p, bias_slab


# ------------------------------- model wrapper --------------------------------
class BiencoderTransformerAlignerModel:
    """JAX/Pallas re-implementation of the PyTorch module's forward pass."""

    def __init__(self, params, projection_size=PROJ):
        self.params = params
        self.projection_size = projection_size
        self.pred_threshold = jnp.float32(0.0)     # kept on device; no host syncs
        (self._tok, self._w_qkv, self._w_o, self._w1, self._w2,
         self._w_p, self._bias_slab) = pack_params(params)
        self._pos = params["pos_emb"].astype(jnp.float32)

    def forward(self, query_input_ids, positive_input_ids, negative_input_ids,
                query_attention_mask=None, positive_attention_mask=None,
                negative_attention_mask=None):
        if query_input_ids.ndim != 2:
            raise ValueError("Expected query_input_ids to be 2D")
        if (query_input_ids.shape[0] != positive_input_ids.shape[0]
                or query_input_ids.shape[0] != negative_input_ids.shape[0]):
            raise ValueError("Batch size mismatch")

        bsz, seq = query_input_ids.shape

        def mk_mask(m):
            if m is None:
                return jnp.ones((bsz, seq), jnp.float32)
            return m.astype(jnp.float32)

        # Fuse query/positive/negative along batch -> one encoder pass.
        ids = jnp.concatenate(
            [query_input_ids, positive_input_ids, negative_input_ids], axis=0)
        mask = jnp.concatenate(
            [mk_mask(query_attention_mask),
             mk_mask(positive_attention_mask),
             mk_mask(negative_attention_mask)], axis=0)               # (3B, S)

        loss, new_thr = _fused_forward(
            self._tok, self._pos, self._w_qkv, self._w_o, self._w1, self._w2,
            self._w_p, self._bias_slab, ids, mask, self.pred_threshold)

        # Stateful pred_threshold update matches the PyTorch module but stays on
        # device (asynchronous; does not affect the returned loss).
        self.pred_threshold = new_thr

        # torch.mean(loss) on a scalar is the identity.
        return {"loss": loss}


# ----------------------------------- main -------------------------------------
if __name__ == "__main__":
    key = jax.random.PRNGKey(0)
    pkey, k1, k2, k3 = jax.random.split(key, 4)

    params = create_params(pkey)
    model = BiencoderTransformerAlignerModel(params, projection_size=PROJ)

    # TODO(synk): the HF `embedding_model` is represented by a synthetic
    # deterministic 1-layer transformer encoder (no pretrained weights available
    # in-script); structure (CLS pooling -> Linear projector -> cosine hinge
    # triplet loss) matches the reference module.
    query_input_ids = jax.random.randint(k1, (BATCH, SEQ), 0, VOCAB)
    positive_input_ids = jax.random.randint(k2, (BATCH, SEQ), 0, VOCAB)
    negative_input_ids = jax.random.randint(k3, (BATCH, SEQ), 0, VOCAB)

    out = model.forward(query_input_ids, positive_input_ids, negative_input_ids)
    loss = jax.block_until_ready(out["loss"])
    assert np.isfinite(float(loss))
    print("KERNEL_OK")
</pallas_src>

<mosaic_0001>
module attributes {stable_mosaic.version = 11 : i64} {
  func.func @fused_forward_kernel(%arg0: memref<192x1xi32, #tpu.memory_space<vmem>>, %arg1: memref<24x1x8xf32, #tpu.memory_space<vmem>>, %arg2: memref<192x32xf32, #tpu.memory_space<vmem>>, %arg3: memref<64x32xbf16, #tpu.memory_space<vmem>>, %arg4: memref<32x96xbf16, #tpu.memory_space<vmem>>, %arg5: memref<32x32xbf16, #tpu.memory_space<vmem>>, %arg6: memref<32x64xbf16, #tpu.memory_space<vmem>>, %arg7: memref<64x32xbf16, #tpu.memory_space<vmem>>, %arg8: memref<32x16xbf16, #tpu.memory_space<vmem>>, %arg9: memref<16x128xf32, #tpu.memory_space<vmem>>, %arg10: memref<2x128xf32, #tpu.memory_space<vmem>>) attributes {dimension_semantics = [], scalar_prefetch = 0 : i64, scratch_operands = 0 : i64, tpu.core_type = #tpu.core_type<tc>} {
    %c0 = arith.constant 0 : index
    %c0_0 = arith.constant 0 : index
    %0 = vector.load %arg9[%c0, %c0_0] : memref<16x128xf32, #tpu.memory_space<vmem>>, vector<1x96xf32>
    %c1 = arith.constant 1 : index
    %c0_1 = arith.constant 0 : index
    %1 = vector.load %arg9[%c1, %c0_1] : memref<16x128xf32, #tpu.memory_space<vmem>>, vector<1x32xf32>
    %c2 = arith.constant 2 : index
    %c0_2 = arith.constant 0 : index
    %2 = vector.load %arg9[%c2, %c0_2] : memref<16x128xf32, #tpu.memory_space<vmem>>, vector<1x32xf32>
    %c3 = arith.constant 3 : index
    %c0_3 = arith.constant 0 : index
    %3 = vector.load %arg9[%c3, %c0_3] : memref<16x128xf32, #tpu.memory_space<vmem>>, vector<1x32xf32>
    %c4 = arith.constant 4 : index
    %c0_4 = arith.constant 0 : index
    %4 = vector.load %arg9[%c4, %c0_4] : memref<16x128xf32, #tpu.memory_space<vmem>>, vector<1x32xf32>
    %c5 = arith.constant 5 : index
    %c0_5 = arith.constant 0 : index
    %5 = vector.load %arg9[%c5, %c0_5] : memref<16x128xf32, #tpu.memory_space<vmem>>, vector<1x32xf32>
    %c6 = arith.constant 6 : index
    %c0_6 = arith.constant 0 : index
    %6 = vector.load %arg9[%c6, %c0_6] : memref<16x128xf32, #tpu.memory_space<vmem>>, vector<1x64xf32>
    %c7 = arith.constant 7 : index
    %c0_7 = arith.constant 0 : index
    %7 = vector.load %arg9[%c7, %c0_7] : memref<16x128xf32, #tpu.memory_space<vmem>>, vector<1x32xf32>
    %c8 = arith.constant 8 : index
    %c0_8 = arith.constant 0 : index
    %8 = vector.load %arg9[%c8, %c0_8] : memref<16x128xf32, #tpu.memory_space<vmem>>, vector<1x16xf32>
    %c0_9 = arith.constant 0 : index
    %c0_10 = arith.constant 0 : index
    %9 = vector.load %arg0[%c0_9, %c0_10] : memref<192x1xi32, #tpu.memory_space<vmem>>, vector<192x1xi32>
    %10 = tpu.iota {dimensions = array<i32: 1>} : vector<192x64xi32>
    %11 = vector.broadcast %9 : vector<192x1xi32> to vector<192x64xi32>
    %12 = arith.cmpi eq, %11, %10 : vector<192x64xi32>
    %cst = arith.constant 1.000000e+00 : f32
    %cst_11 = arith.constant 0.000000e+00 : f32
    %13 = vector.broadcast %cst : f32 to vector<192x64xf32>
    %14 = vector.broadcast %cst_11 : f32 to vector<192x64xf32>
    %15 = arith.select %12, %13, %14 : vector<192x64xi1>, vector<192x64xf32>
    %16 = arith.truncf %15 : vector<192x64xf32> to vector<192x64xbf16>
    %c0_12 = arith.constant 0 : index
    %c0_13 = arith.constant 0 : index
    %17 = vector.load %arg3[%c0_12, %c0_13] : memref<64x32xbf16, #tpu.memory_space<vmem>>, vector<64x32xbf16>
    %cst_14 = arith.constant dense<0.000000e+00> : vector<192x32xf32>
    %18 = tpu.matmul %16, %17, %cst_14 {dimension_numbers = #tpu.dot_dimension_numbers<[1], [0], [0], [1], [0, 0, 1, 1], [], []>} : vector<192x64xbf16>, vector<64x32xbf16>, vector<192x32xf32> -> vector<192x32xf32>
    %c0_15 = arith.constant 0 : index
    %c0_16 = arith.constant 0 : index
    %19 = vector.load %arg2[%c0_15, %c0_16] : memref<192x32xf32, #tpu.memory_space<vmem>>, vector<192x32xf32>
    %20 = arith.addf %18, %19 : vector<192x32xf32>
    %21 = arith.truncf %20 : vector<192x32xf32> to vector<192x32xbf16>
    %c0_17 = arith.constant 0 : index
    %c0_18 = arith.constant 0 : index
    %22 = vector.load %arg4[%c0_17, %c0_18] : memref<32x96xbf16, #tpu.memory_space<vmem>>, vector<32x96xbf16>
    %cst_19 = arith.constant dense<0.000000e+00> : vector<192x96xf32>
    %23 = tpu.matmul %21, %22, %cst_19 {dimension_numbers = #tpu.dot_dimension_numbers<[1], [0], [0], [1], [0, 0, 1, 1], [], []>} : vector<192x32xbf16>, vector<32x96xbf16>, vector<192x96xf32> -> vector<192x96xf32>
    %24 = vector.broadcast %0 : vector<1x96xf32> to vector<192x96xf32>
    %25 = arith.addf %23, %24 : vector<192x96xf32>
    %26 = vector.shape_cast %25 : vector<192x96xf32> to vector<24x8x96xf32>
    %c0_20 = arith.constant 0 : index
    %c0_21 = arith.constant 0 : index
    %c0_22 = arith.constant 0 : index
    %27 = vector.load %arg1[%c0_20, %c0_21, %c0_22] : memref<24x1x8xf32, #tpu.memory_space<vmem>>, vector<24x1x8xf32>
    %cst_23 = arith.constant 1.000000e+00 : f32
    %28 = vector.broadcast %cst_23 : f32 to vector<24x1x8xf32>
    %29 = arith.subf %28, %27 : vector<24x1x8xf32>
    %cst_24 = arith.constant -1.000000e+09 : f32
    %30 = vector.broadcast %cst_24 : f32 to vector<24x1x8xf32>
    %31 = arith.mulf %29, %30 : vector<24x1x8xf32>
    %32 = vector.extract_strided_slice %26 {offsets = [0, 0, 0], sizes = [24, 8, 16], strides = [1, 1, 1]} : vector<24x8x96xf32> to vector<24x8x16xf32>
    %33 = vector.extract_strided_slice %26 {offsets = [0, 0, 32], sizes = [24, 8, 16], strides = [1, 1, 1]} : vector<24x8x96xf32> to vector<24x8x16xf32>
    %34 = vector.extract_strided_slice %26 {offsets = [0, 0, 64], sizes = [24, 8, 16], strides = [1, 1, 1]} : vector<24x8x96xf32> to vector<24x8x16xf32>
    "tpu.trace_start"() <{level = 10 : i32, message = "nqd,nkd->nqk"}> : () -> ()
    %cst_25 = arith.constant dense<0.000000e+00> : vector<24x8x8xf32>
    %35 = tpu.matmul %32, %33, %cst_25 {dimension_numbers = #tpu.dot_dimension_numbers<[2], [2], [1], [1], [0, 0, 0, 1, 1, 1], [0], [0]>} : vector<24x8x16xf32>, vector<24x8x16xf32>, vector<24x8x8xf32> -> vector<24x8x8xf32>
    "tpu.trace_stop"() : () -> ()
    %cst_26 = arith.constant 2.500000e-01 : f32
    %36 = vector.broadcast %cst_26 : f32 to vector<24x8x8xf32>
    %37 = arith.mulf %35, %36 : vector<24x8x8xf32>
    %38 = vector.broadcast %31 : vector<24x1x8xf32> to vector<24x8x8xf32>
    %39 = arith.addf %37, %38 : vector<24x8x8xf32>
    %cst_27 = arith.constant dense<0xFF800000> : vector<24x8xf32>
    %40 = vector.multi_reduction <maximumf>, %39, %cst_27 [2] : vector<24x8x8xf32> to vector<24x8xf32>
    %41 = vector.shape_cast %40 : vector<24x8xf32> to vector<24x8x1xf32>
    %42 = vector.broadcast %41 : vector<24x8x1xf32> to vector<24x8x8xf32>
    %43 = arith.subf %39, %42 : vector<24x8x8xf32>
    %44 = math.exp %43 : vector<24x8x8xf32>
    %cst_28 = arith.constant dense<0.000000e+00> : vector<24x8xf32>
    %45 = vector.multi_reduction <add>, %44, %cst_28 [2] : vector<24x8x8xf32> to vector<24x8xf32>
    %46 = vector.shape_cast %45 : vector<24x8xf32> to vector<24x8x1xf32>
    %47 = tpu.reciprocal %46 {approx = true} : vector<24x8x1xf32> -> vector<24x8x1xf32>
    %48 = vector.broadcast %47 : vector<24x8x1xf32> to vector<24x8x8xf32>
    %49 = arith.mulf %44, %48 : vector<24x8x8xf32>
    "tpu.trace_start"() <{level = 10 : i32, message = "nqk,nkd->nqd"}> : () -> ()
    %cst_29 = arith.constant dense<0.000000e+00> : vector<24x8x16xf32>
    %50 = tpu.matmul %49, %34, %cst_29 {dimension_numbers = #tpu.dot_dimension_numbers<[2], [1], [1], [2], [0, 0, 0, 1, 1, 2], [0], [0]>} : vector<24x8x8xf32>, vector<24x8x16xf32>, vector<24x8x16xf32> -> vector<24x8x16xf32>
    "tpu.trace_stop"() : () -> ()
    %51 = vector.extract_strided_slice %26 {offsets = [0, 0, 16], sizes = [24, 8, 16], strides = [1, 1, 1]} : vector<24x8x96xf32> to vector<24x8x16xf32>
    %52 = vector.extract_strided_slice %26 {offsets = [0, 0, 48], sizes = [24, 8, 16], strides = [1, 1, 1]} : vector<24x8x96xf32> to vector<24x8x16xf32>
    %53 = vector.extract_strided_slice %26 {offsets = [0, 0, 80], sizes = [24, 8, 16], strides = [1, 1, 1]} : vector<24x8x96xf32> to vector<24x8x16xf32>
    "tpu.trace_start"() <{level = 10 : i32, message = "nqd,nkd->nqk"}> : () -> ()
    %cst_30 = arith.constant dense<0.000000e+00> : vector<24x8x8xf32>
    %54 = tpu.matmul %51, %52, %cst_30 {dimension_numbers = #tpu.dot_dimension_numbers<[2], [2], [1], [1], [0, 0, 0, 1, 1, 1], [0], [0]>} : vector<24x8x16xf32>, vector<24x8x16xf32>, vector<24x8x8xf32> -> vector<24x8x8xf32>
    "tpu.trace_stop"() : () -> ()
    %cst_31 = arith.constant 2.500000e-01 : f32
    %55 = vector.broadcast %cst_31 : f32 to vector<24x8x8xf32>
    %56 = arith.mulf %54, %55 : vector<24x8x8xf32>
    %57 = vector.broadcast %31 : vector<24x1x8xf32> to vector<24x8x8xf32>
    %58 = arith.addf %56, %57 : vector<24x8x8xf32>
    %cst_32 = arith.constant dense<0xFF800000> : vector<24x8xf32>
    %59 = vector.multi_reduction <maximumf>, %58, %cst_32 [2] : vector<24x8x8xf32> to vector<24x8xf32>
    %60 = vector.shape_cast %59 : vector<24x8xf32> to vector<24x8x1xf32>
    %61 = vector.broadcast %60 : vector<24x8x1xf32> to vector<24x8x8xf32>
    %62 = arith.subf %58, %61 : vector<24x8x8xf32>
    %63 = math.exp %62 : vector<24x8x8xf32>
    %cst_33 = arith.constant dense<0.000000e+00> : vector<24x8xf32>
    %64 = vector.multi_reduction <add>, %63, %cst_33 [2] : vector<24x8x8xf32> to vector<24x8xf32>
    %65 = vector.shape_cast %64 : vector<24x8xf32> to vector<24x8x1xf32>
    %66 = tpu.reciprocal %65 {approx = true} : vector<24x8x1xf32> -> vector<24x8x1xf32>
    %67 = vector.broadcast %66 : vector<24x8x1xf32> to vector<24x8x8xf32>
    %68 = arith.mulf %63, %67 : vector<24x8x8xf32>
    "tpu.trace_start"() <{level = 10 : i32, message = "nqk,nkd->nqd"}> : () -> ()
    %cst_34 = arith.constant dense<0.000000e+00> : vector<24x8x16xf32>
    %69 = tpu.matmul %68, %53, %cst_34 {dimension_numbers = #tpu.dot_dimension_numbers<[2], [1], [1], [2], [0, 0, 0, 1, 1, 2], [0], [0]>} : vector<24x8x8xf32>, vector<24x8x16xf32>, vector<24x8x16xf32> -> vector<24x8x16xf32>
    "tpu.trace_stop"() : () -> ()
    %70 = tpu.concatenate %50, %69 in 2 : vector<24x8x16xf32>, vector<24x8x16xf32> -> vector<24x8x32xf32>
    %71 = vector.shape_cast %70 : vector<24x8x32xf32> to vector<192x32xf32>
    %72 = arith.truncf %71 : vector<192x32xf32> to vector<192x32xbf16>
    %c0_35 = arith.constant 0 : index
    %c0_36 = arith.constant 0 : index
    %73 = vector.load %arg5[%c0_35, %c0_36] : memref<32x32xbf16, #tpu.memory_space<vmem>>, vector<32x32xbf16>
    %cst_37 = arith.constant dense<0.000000e+00> : vector<192x32xf32>
    %74 = tpu.matmul %72, %73, %cst_37 {dimension_numbers = #tpu.dot_dimension_numbers<[1], [0], [0], [1], [0, 0, 1, 1], [], []>} : vector<192x32xbf16>, vector<32x32xbf16>, vector<192x32xf32> -> vector<192x32xf32>
    %75 = vector.broadcast %1 : vector<1x32xf32> to vector<192x32xf32>
    %76 = arith.addf %74, %75 : vector<192x32xf32>
    %77 = arith.addf %20, %76 : vector<192x32xf32>
    %cst_38 = arith.constant dense<0.000000e+00> : vector<192xf32>
    %78 = vector.multi_reduction <add>, %77, %cst_38 [1] : vector<192x32xf32> to vector<192xf32>
    %79 = vector.shape_cast %78 : vector<192xf32> to vector<192x1xf32>
    %cst_39 = arith.constant 3.200000e+01 : f32
    %80 = vector.broadcast %cst_39 : f32 to vector<192x1xf32>
    %81 = arith.divf %79, %80 : vector<192x1xf32>
    %82 = vector.broadcast %81 : vector<192x1xf32> to vector<192x32xf32>
    %83 = arith.subf %77, %82 : vector<192x32xf32>
    %84 = arith.mulf %83, %83 : vector<192x32xf32>
    %cst_40 = arith.constant dense<0.000000e+00> : vector<192xf32>
    %85 = vector.multi_reduction <add>, %84, %cst_40 [1] : vector<192x32xf32> to vector<192xf32>
    %86 = vector.shape_cast %85 : vector<192xf32> to vector<192x1xf32>
    %cst_41 = arith.constant 3.200000e+01 : f32
    %87 = vector.broadcast %cst_41 : f32 to vector<192x1xf32>
    %88 = arith.divf %86, %87 : vector<192x1xf32>
    %cst_42 = arith.constant 9.99999996E-13 : f32
    %89 = vector.broadcast %cst_42 : f32 to vector<192x1xf32>
    %90 = arith.addf %88, %89 : vector<192x1xf32>
    %91 = math.rsqrt %90 : vector<192x1xf32>
    %92 = vector.broadcast %91 : vector<192x1xf32> to vector<192x32xf32>
    %93 = arith.mulf %83, %92 : vector<192x32xf32>
    %94 = vector.broadcast %2 : vector<1x32xf32> to vector<192x32xf32>
    %95 = arith.mulf %93, %94 : vector<192x32xf32>
    %96 = vector.broadcast %3 : vector<1x32xf32> to vector<192x32xf32>
    %97 = arith.addf %95, %96 : vector<192x32xf32>
    %98 = arith.truncf %97 : vector<192x32xf32> to vector<192x32xbf16>
    %c0_43 = arith.constant 0 : index
    %c0_44 = arith.constant 0 : index
    %99 = vector.load %arg6[%c0_43, %c0_44] : memref<32x64xbf16, #tpu.memory_space<vmem>>, vector<32x64xbf16>
    %cst_45 = arith.constant dense<0.000000e+00> : vector<192x64xf32>
    %100 = tpu.matmul %98, %99, %cst_45 {dimension_numbers = #tpu.dot_dimension_numbers<[1], [0], [0], [1], [0, 0, 1, 1], [], []>} : vector<192x32xbf16>, vector<32x64xbf16>, vector<192x64xf32> -> vector<192x64xf32>
    %101 = vector.broadcast %6 : vector<1x64xf32> to vector<192x64xf32>
    %102 = arith.addf %100, %101 : vector<192x64xf32>
    %cst_46 = arith.constant 5.000000e-01 : f32
    %103 = vector.broadcast %cst_46 : f32 to vector<192x64xf32>
    %104 = arith.mulf %103, %102 : vector<192x64xf32>
    %cst_47 = arith.constant 4.471500e-02 : f32
    %105 = vector.broadcast %cst_47 : f32 to vector<192x64xf32>
    %106 = arith.mulf %105, %102 : vector<192x64xf32>
    %107 = arith.mulf %106, %102 : vector<192x64xf32>
    %108 = arith.mulf %107, %102 : vector<192x64xf32>
    %109 = arith.addf %102, %108 : vector<192x64xf32>
    %cst_48 = arith.constant 0.797884583 : f32
    %110 = vector.broadcast %cst_48 : f32 to vector<192x64xf32>
    %111 = arith.mulf %110, %109 : vector<192x64xf32>
    %112 = math.tanh %111 : vector<192x64xf32>
    %cst_49 = arith.constant 1.000000e+00 : f32
    %113 = vector.broadcast %cst_49 : f32 to vector<192x64xf32>
    %114 = arith.addf %113, %112 : vector<192x64xf32>
    %115 = arith.mulf %104, %114 : vector<192x64xf32>
    %116 = arith.truncf %115 : vector<192x64xf32> to vector<192x64xbf16>
    %c0_50 = arith.constant 0 : index
    %c0_51 = arith.constant 0 : index
    %117 = vector.load %arg7[%c0_50, %c0_51] : memref<64x32xbf16, #tpu.memory_space<vmem>>, vector<64x32xbf16>
    %cst_52 = arith.constant dense<0.000000e+00> : vector<192x32xf32>
    %118 = tpu.matmul %116, %117, %cst_52 {dimension_numbers = #tpu.dot_dimension_numbers<[1], [0], [0], [1], [0, 0, 1, 1], [], []>} : vector<192x64xbf16>, vector<64x32xbf16>, vector<192x32xf32> -> vector<192x32xf32>
    %119 = vector.broadcast %7 : vector<1x32xf32> to vector<192x32xf32>
    %120 = arith.addf %118, %119 : vector<192x32xf32>
    %121 = arith.addf %97, %120 : vector<192x32xf32>
    %cst_53 = arith.constant dense<0.000000e+00> : vector<192xf32>
    %122 = vector.multi_reduction <add>, %121, %cst_53 [1] : vector<192x32xf32> to vector<192xf32>
    %123 = vector.shape_cast %122 : vector<192xf32> to vector<192x1xf32>
    %cst_54 = arith.constant 3.200000e+01 : f32
    %124 = vector.broadcast %cst_54 : f32 to vector<192x1xf32>
    %125 = arith.divf %123, %124 : vector<192x1xf32>
    %126 = vector.broadcast %125 : vector<192x1xf32> to vector<192x32xf32>
    %127 = arith.subf %121, %126 : vector<192x32xf32>
    %128 = arith.mulf %127, %127 : vector<192x32xf32>
    %cst_55 = arith.constant dense<0.000000e+00> : vector<192xf32>
    %129 = vector.multi_reduction <add>, %128, %cst_55 [1] : vector<192x32xf32> to vector<192xf32>
    %130 = vector.shape_cast %129 : vector<192xf32> to vector<192x1xf32>
    %cst_56 = arith.constant 3.200000e+01 : f32
    %131 = vector.broadcast %cst_56 : f32 to vector<192x1xf32>
    %132 = arith.divf %130, %131 : vector<192x1xf32>
    %cst_57 = arith.constant 9.99999996E-13 : f32
    %133 = vector.broadcast %cst_57 : f32 to vector<192x1xf32>
    %134 = arith.addf %132, %133 : vector<192x1xf32>
    %135 = math.rsqrt %134 : vector<192x1xf32>
    %136 = vector.broadcast %135 : vector<192x1xf32> to vector<192x32xf32>
    %137 = arith.mulf %127, %136 : vector<192x32xf32>
    %138 = vector.broadcast %4 : vector<1x32xf32> to vector<192x32xf32>
    %139 = arith.mulf %137, %138 : vector<192x32xf32>
    %140 = vector.broadcast %5 : vector<1x32xf32> to vector<192x32xf32>
    %141 = arith.addf %139, %140 : vector<192x32xf32>
    %142 = vector.shape_cast %141 : vector<192x32xf32> to vector<24x8x32xf32>
    %143 = vector.extract_strided_slice %142 {offsets = [0, 0, 0], sizes = [24, 1, 32], strides = [1, 1, 1]} : vector<24x8x32xf32> to vector<24x1x32xf32>
    %144 = vector.shape_cast %143 : vector<24x1x32xf32> to vector<24x32xf32>
    %145 = arith.truncf %144 : vector<24x32xf32> to vector<24x32xbf16>
    %c0_58 = arith.constant 0 : index
    %c0_59 = arith.constant 0 : index
    %146 = vector.load %arg8[%c0_58, %c0_59] : memref<32x16xbf16, #tpu.memory_space<vmem>>, vector<32x16xbf16>
    %cst_60 = arith.constant dense<0.000000e+00> : vector<24x16xf32>
    %147 = tpu.matmul %145, %146, %cst_60 {dimension_numbers = #tpu.dot_dimension_numbers<[1], [0], [0], [1], [0, 0, 1, 1], [], []>} : vector<24x32xbf16>, vector<32x16xbf16>, vector<24x16xf32> -> vector<24x16xf32>
    %148 = vector.broadcast %8 : vector<1x16xf32> to vector<24x16xf32>
    %149 = arith.addf %147, %148 : vector<24x16xf32>
    %150 = arith.mulf %149, %149 : vector<24x16xf32>
    %cst_61 = arith.constant dense<0.000000e+00> : vector<24xf32>
    %151 = vector.multi_reduction <add>, %150, %cst_61 [1] : vector<24x16xf32> to vector<24xf32>
    %152 = vector.shape_cast %151 : vector<24xf32> to vector<24x1xf32>
    %cst_62 = arith.constant 1.000000e-24 : f32
    %153 = vector.broadcast %cst_62 : f32 to vector<24x1xf32>
    %154 = arith.addf %152, %153 : vector<24x1xf32>
    %155 = math.rsqrt %154 : vector<24x1xf32>
    %156 = vector.broadcast %155 : vector<24x1xf32> to vector<24x16xf32>
    %157 = arith.mulf %149, %156 : vector<24x16xf32>
    %158 = vector.extract_strided_slice %157 {offsets = [0, 0], sizes = [8, 16], strides = [1, 1]} : vector<24x16xf32> to vector<8x16xf32>
    %159 = vector.extract_strided_slice %157 {offsets = [8, 0], sizes = [8, 16], strides = [1, 1]} : vector<24x16xf32> to vector<8x16xf32>
    %160 = vector.extract_strided_slice %157 {offsets = [16, 0], sizes = [8, 16], strides = [1, 1]} : vector<24x16xf32> to vector<8x16xf32>
    %161 = arith.mulf %158, %159 : vector<8x16xf32>
    %cst_63 = arith.constant dense<0.000000e+00> : vector<8xf32>
    %162 = vector.multi_reduction <add>, %161, %cst_63 [1] : vector<8x16xf32> to vector<8xf32>
    %163 = vector.shape_cast %162 : vector<8xf32> to vector<8x1xf32>
    %164 = arith.mulf %158, %160 : vector<8x16xf32>
    %cst_64 = arith.constant dense<0.000000e+00> : vector<8xf32>
    %165 = vector.multi_reduction <add>, %164, %cst_64 [1] : vector<8x16xf32> to vector<8xf32>
    %166 = vector.shape_cast %165 : vector<8xf32> to vector<8x1xf32>
    %cst_65 = arith.constant 5.000000e-01 : f32
    %167 = vector.broadcast %cst_65 : f32 to vector<8x1xf32>
    %168 = arith.subf %167, %163 : vector<8x1xf32>
    %169 = arith.addf %168, %166 : vector<8x1xf32>
    %cst_66 = arith.constant 0.000000e+00 : f32
    %170 = vector.broadcast %cst_66 : f32 to vector<8x1xf32>
    %171 = arith.maximumf %169, %170 : vector<8x1xf32>
    %cst_67 = arith.constant dense<0.000000e+00> : vector<1xf32>
    %172 = vector.multi_reduction <add>, %171, %cst_67 [0] : vector<8x1xf32> to vector<1xf32>
    %173 = vector.shape_cast %172 : vector<1xf32> to vector<1x1xf32>
    %cst_68 = arith.constant 1.250000e-01 : f32
    %174 = vector.broadcast %cst_68 : f32 to vector<1x1xf32>
    %175 = arith.mulf %173, %174 : vector<1x1xf32>
    %cst_69 = arith.constant dense<0x7F800000> : vector<1xf32>
    %176 = vector.multi_reduction <minimumf>, %163, %cst_69 [0] : vector<8x1xf32> to vector<1xf32>
    %177 = vector.shape_cast %176 : vector<1xf32> to vector<1x1xf32>
    %178 = vector.shape_cast %175 : vector<1x1xf32> to vector<1x1xf32>
    %179 = vector.broadcast %178 : vector<1x1xf32> to vector<1x128xf32>
    %180 = vector.shape_cast %177 : vector<1x1xf32> to vector<1x1xf32>
    %181 = vector.broadcast %180 : vector<1x1xf32> to vector<1x128xf32>
    %182 = tpu.concatenate %179, %181 in 0 : vector<1x128xf32>, vector<1x128xf32> -> vector<2x128xf32>
    %c0_70 = arith.constant 0 : index
    %c0_71 = arith.constant 0 : index
    %183 = vector.load %arg10[%c0_70, %c0_71] : memref<2x128xf32, #tpu.memory_space<vmem>>, vector<2x128xf32>
    tpu.vector_store %arg10[%c0_70, %c0_71], %182 {strides = array<i32>} : memref<2x128xf32, #tpu.memory_space<vmem>>, vector<2x128xf32>,
    return
  }
}

</mosaic_0001>

<bundles_post_ra>
// kernel: _fused_forward.1
= control target key start
LH: loop header
LB: loop body
LE: loop exit
PB: predicated region body
PF: predicated region fallthrough
CT: control target
= control target key end

     0   :  { %v12384_v0 = vmov 0   ;;  %v15671_v19 = vmov 0.0   ;;  %v69_v30 = vlaneseq  ;;  %vm259_vm4 = vcmask 523264   ;;  %s12387_s13 = smov 96   ;;  %s12388_s14 = smov 64   ;;  %s15660_s0 = inlined_call_operand.vmem [shape: s32[192,1], index: 0, kind: input, shape index: {}]   ;;  %s15661_s3 = inlined_call_operand.vmem [shape: bf16[64,32], index: 3, kind: input, shape index: {}]   ;;  %s15662_s4 = inlined_call_operand.vmem [shape: bf16[32,96], index: 4, kind: input, shape index: {}]   ;;  %s15663_s2 = inlined_call_operand.vmem [shape: f32[192,32], index: 2, kind: input, shape index: {}]   ;;  %s15664_s9 = inlined_call_operand.vmem [shape: f32[16,128], index: 9, kind: input, shape index: {}]   ;;  %s15665_s1 = inlined_call_operand.vmem [shape: f32[24,1,8], index: 1, kind: input, shape index: {}]   ;;  %s15666_s5 = inlined_call_operand.vmem [shape: bf16[32,32], index: 5, kind: input, shape index: {}]   ;;  %s15667_s6 = inlined_call_operand.vmem [shape: bf16[32,64], index: 6, kind: input, shape index: {}]   ;;  %s15668_s7 = inlined_call_operand.vmem [shape: bf16[64,32], index: 7, kind: input, shape index: {}]   ;;  %s15669_s8 = inlined_call_operand.vmem [shape: bf16[32,16], index: 8, kind: input, shape index: {}]   ;;  %s15670_s10 = inlined_call_operand.vmem [shape: f32[2,128], index: 10, kind: output, shape index: {}]  }
   0x1   :  { %11965 = vset.pattern.permute.xlu1 %v12384_v0  ;;  %11964 = vset.pattern.permute.xlu0 %v12384_v0  ;;  %v47_v1 = vld [vmem:[%s15660_s0 + $0x10] sm:$0xff]  ;;  %v45_v2 = vld [vmem:[%s15660_s0] sm:$0xff]  ;;  %v48_v3 = vld [vmem:[%s15660_s0 + $0x18] sm:$0xff]  ;;  %s12389_s15 = smov 80   ;;  %s12390_s16 = smov 112  }
   0x2   :  { %78 = vperm.xlu1 %11965, %v47_v1   ;;  %72 = vperm.xlu0 %11964, %v45_v2   ;;  %v46_v4 = vld [vmem:[%s15660_s0 + $0x8] sm:$0xff]  ;;  %v49_v6 = vld [vmem:[%s15660_s0 + $0x20] sm:$0xff]  ;;  %v52_v7 = vld [vmem:[%s15660_s0 + $0x38] sm:$0xff]  ;;  %v12534_v31 = vand.u32 127, %v69_v30  ;;  %s12392_s22 = smov 16  }
   0x3   :  { %v50_v5 = vld [vmem:[%s15660_s0 + $0x28] sm:$0xff]  ;;  %v12026_v8 = vld [vmem:[%s15661_s3] sm:$0xff]   ;;  %v51_v10 = vld [vmem:[%s15660_s0 + $0x30] sm:$0xff] }
   0x4   :  { %v12027_v9 = vld [vmem:[%s15661_s3 + $0x8] sm:$0xff]   ;;  %11311 = vmatprep.subr.bf16.mxu0 %v12026_v8  ;;  %11947 = vmatprep.subr.bf16.mxu1 %v12026_v8  ;;  %v12028_v11 = vld [vmem:[%s15661_s3 + $0x10] sm:$0xff]   ;;  %v53_v13 = vld [vmem:[%s15660_s0 + $0x40] sm:$0xff] }
   0x5   :  { %11312 = vmatpush3.bf16.msra.mxu0 %v12026_v8  ;;  %11951 = vmatpush3.bf16.msra.mxu1 %v12026_v8  ;;  %v54_v12 = vld [vmem:[%s15660_s0 + $0x48] sm:$0xff]  ;;  %v12029_v14 = vld [vmem:[%s15661_s3 + $0x18] sm:$0xff]   ;;  %v55_v16 = vld [vmem:[%s15660_s0 + $0x50] sm:$0xff] }
   0x6   :  { %81 = vperm.xlu1 %11965, %v48_v3   ;;  %75 = vperm.xlu0 %11964, %v46_v4   ;;  %v56_v15 = vld [vmem:[%s15660_s0 + $0x58] sm:$0xff]  ;;  %v58_v17 = vld [vmem:[%s15660_s0 + $0x68] sm:$0xff]  ;;  %v57_v18 = vld [vmem:[%s15660_s0 + $0x60] sm:$0xff] }
   0x7   :  { %11313 = vmatprep.subr.bf16.mxu0 %v12027_v9  ;;  %11948 = vmatprep.subr.bf16.mxu1 %v12027_v9  ;;  %v60_v20 = vld [vmem:[%s15660_s0 + $0x78] sm:$0xff]  ;;  %v59_v21 = vld [vmem:[%s15660_s0 + $0x70] sm:$0xff]  ;;  %v62_v22 = vld [vmem:[%s15660_s0 + $0x88] sm:$0xff] }
   0x8   :  { %v61_v23 = vld [vmem:[%s15660_s0 + $0x80] sm:$0xff]  ;;  %v64_v24 = vld [vmem:[%s15660_s0 + $0x98] sm:$0xff]  ;;  %v63_v25 = vld [vmem:[%s15660_s0 + $0x90] sm:$0xff] }
   0x9   :  { %11314 = vmatpush3.bf16.msra.mxu0 %v12027_v9  ;;  %11952 = vmatpush3.bf16.msra.mxu1 %v12027_v9  ;;  %v66_v26 = vld [vmem:[%s15660_s0 + $0xa8] sm:$0xff]  ;;  %v65_v27 = vld [vmem:[%s15660_s0 + $0xa0] sm:$0xff]  ;;  %v68_v28 = vld [vmem:[%s15660_s0 + $0xb8] sm:$0xff] }
   0xa   :  { %87 = vperm.xlu1 %11965, %v50_v5   ;;  %84 = vperm.xlu0 %11964, %v49_v6   ;;  %v67_v29 = vld [vmem:[%s15660_s0 + $0xb0] sm:$0xff] }
   0xb   :  { %11315 = vmatprep.subr.bf16.mxu0 %v12028_v11  ;;  %11949 = vmatprep.subr.bf16.mxu1 %v12028_v11 }
   0xd   :  { %11316 = vmatpush3.bf16.msra.mxu0 %v12028_v11  ;;  %11953 = vmatpush3.bf16.msra.mxu1 %v12028_v11 }
   0xe   :  { %93 = vperm.xlu1 %11965, %v52_v7   ;;  %90 = vperm.xlu0 %11964, %v51_v10  }
   0xf   :  { %11317 = vmatprep.subr.bf16.mxu0 %v12029_v14  ;;  %11950 = vmatprep.subr.bf16.mxu1 %v12029_v14 }
  0x11   :  { %11318 = vmatpush3.bf16.msra.mxu0 %v12029_v14  ;;  %11954 = vmatpush3.bf16.msra.mxu1 %v12029_v14 }
  0x12   :  { %99 = vperm.xlu1 %11965, %v54_v12   ;;  %96 = vperm.xlu0 %11964, %v53_v13  }
  0x13   :  { %11381 = vmatprep.subr.mxu0 %v15671_v19 }
  0x16   :  { %105 = vperm.xlu1 %11965, %v56_v15   ;;  %102 = vperm.xlu0 %11964, %v55_v16  }
  0x1a   :  { %111 = vperm.xlu1 %11965, %v58_v17   ;;  %108 = vperm.xlu0 %11964, %v57_v18  }
  0x1e   :  { %117 = vperm.xlu1 %11965, %v60_v20   ;;  %114 = vperm.xlu0 %11964, %v59_v21  }
  0x22   :  { %123 = vperm.xlu1 %11965, %v62_v22   ;;  %120 = vperm.xlu0 %11964, %v61_v23  }
  0x26   :  { %129 = vperm.xlu1 %11965, %v64_v24   ;;  %126 = vperm.xlu0 %11964, %v63_v25  }
  0x2a   :  { %135 = vperm.xlu1 %11965, %v66_v26   ;;  %132 = vperm.xlu0 %11964, %v65_v27  }
  0x2e   :  { %141 = vperm.xlu1 %11965, %v68_v28   ;;  %138 = vperm.xlu0 %11964, %v67_v29   ;;  %v12030_v29 = vld [vmem:[%s15662_s4] sm:$0xff]  }
  0x2f   :  { %11343 = vmatprep.subr.bf16.mxu1 %v12030_v29 }
  0x81   :  { %v79_v32 = vpop.permute.xlu1 %78  ;;  %v73_v33 = vpop.permute.xlu0 %72 }
  0x82   :  { %vm145_vm0 = vcmp.eq.s32.totalorder %v79_v32, %v12534_v31  ;;  %vm143_vm1 = vcmp.eq.s32.totalorder %v73_v33, %v12534_v31  ;;  %v12031_v32 = vld [vmem:[%s15662_s4 + $0x8] sm:$0xff]   ;;  %v214_v33 = vld [vmem:[%s15663_s2 + $0x18] sm:$0xff] }
  0x83   :  { %v169_v36 = vsel %vm145_vm0, 1.0, %v15671_v19  ;;  %v167_v38 = vsel %vm143_vm1, 1.0, %v15671_v19 }
  0x85   :  { %v82_v34 = vpop.permute.xlu1 %81  ;;  %v76_v35 = vpop.permute.xlu0 %75 }
  0x86   :  { %vm146_vm2 = vcmp.eq.s32.totalorder %v82_v34, %v12534_v31  ;;  %vm144_vm3 = vcmp.eq.s32.totalorder %v76_v35, %v12534_v31  ;;  %v211_v35 = vld [vmem:[%s15663_s2] sm:$0xff] }
  0x87   :  { %v170_v37 = vsel %vm146_vm2, 1.0, %v15671_v19  ;;  %v168_v39 = vsel %vm144_vm3, 1.0, %v15671_v19 }
  0x88   :  { %v192_v40 = vpack.c.bf16 %v170_v37, %v169_v36  ;;  %v191_v41 = vpack.c.bf16 %v168_v39, %v167_v38  ;;  %v212_v36 = vld [vmem:[%s15663_s2 + $0x8] sm:$0xff]  ;;  %v213_v37 = vld [vmem:[%s15663_s2 + $0x10] sm:$0xff] }
  0x89   :  { %v88_v42 = vpop.permute.xlu1 %87  ;;  %v85_v43 = vpop.permute.xlu0 %84 }
  0x8a   :  { %vm148_vm5 = vcmp.eq.s32.totalorder %v88_v42, %v12534_v31  ;;  %vm147_vm6 = vcmp.eq.s32.totalorder %v85_v43, %v12534_v31  ;;  %11319 = vmatprep.mubr.msk.bf16.mxu0 %vm259_vm4, %v191_v41 }
  0x8b   :  { %v172_v44 = vsel %vm148_vm5, 1.0, %v15671_v19  ;;  %v171_v45 = vsel %vm147_vm6, 1.0, %v15671_v19  ;;  %11320 = vmatmul.mubr.msk.bf16.vlgmr.msra.gmra.mrb[0].mxu0 %vm259_vm4, %v192_v40 }
  0x8c   :  { %v193_v46 = vpack.c.bf16 %v172_v44, %v171_v45 }
  0x8d   :  { %v94_v47 = vpop.permute.xlu1 %93  ;;  %v91_v48 = vpop.permute.xlu0 %90 }
  0x8e   :  { %vm150_vm7 = vcmp.eq.s32.totalorder %v94_v47, %v12534_v31  ;;  %vm149_vm8 = vcmp.eq.s32.totalorder %v91_v48, %v12534_v31  ;;  %11323 = vmatprep.mubr.msk.bf16.mxu0 %vm259_vm4, %v193_v46  ;;  %v218_v47 = vld [vmem:[%s15663_s2 + $0x38] sm:$0xff] }
  0x8f   :  { %v174_v49 = vsel %vm150_vm7, 1.0, %v15671_v19  ;;  %v173_v50 = vsel %vm149_vm8, 1.0, %v15671_v19 }
  0x90   :  { %v194_v51 = vpack.c.bf16 %v174_v49, %v173_v50  ;;  %v215_v49 = vld [vmem:[%s15663_s2 + $0x20] sm:$0xff]  ;;  %v216_v50 = vld [vmem:[%s15663_s2 + $0x28] sm:$0xff] }
  0x91   :  { %v100_v52 = vpop.permute.xlu1 %99  ;;  %v97_v53 = vpop.permute.xlu0 %96 }
  0x92   :  { %vm152_vm9 = vcmp.eq.s32.totalorder %v100_v52, %v12534_v31  ;;  %vm151_vm10 = vcmp.eq.s32.totalorder %v97_v53, %v12534_v31 }
  0x93   :  { %v176_v54 = vsel %vm152_vm9, 1.0, %v15671_v19  ;;  %v175_v55 = vsel %vm151_vm10, 1.0, %v15671_v19  ;;  %11324 = vmatmul.mubr.msk.bf16.gmra.mrb[4].mxu0 %vm259_vm4, %v194_v51  ;;  %vm457_vm10 = vcmask 261120   ;;  %v217_v51 = vld [vmem:[%s15663_s2 + $0x30] sm:$0xff] }
  0x94   :  { %v195_v56 = vpack.c.bf16 %v176_v54, %v175_v55 }
  0x95   :  { %v106_v57 = vpop.permute.xlu1 %105  ;;  %v103_v58 = vpop.permute.xlu0 %102 }
  0x96   :  { %vm154_vm11 = vcmp.eq.s32.totalorder %v106_v57, %v12534_v31  ;;  %vm153_vm12 = vcmp.eq.s32.totalorder %v103_v58, %v12534_v31  ;;  %11327 = vmatprep.mubr.msk.bf16.mxu0 %vm259_vm4, %v195_v56 }
  0x97   :  { %v178_v59 = vsel %vm154_vm11, 1.0, %v15671_v19  ;;  %v177_v60 = vsel %vm153_vm12, 1.0, %v15671_v19  ;;  %vm12386_vm11 = vmmov 0   ;;  %vm698_vm12 = vcmask 130048  }
  0x98   :  { %v196_v61 = vpack.c.bf16 %v178_v59, %v177_v60 }
  0x99   :  { %v112_v62 = vpop.permute.xlu1 %111  ;;  %v109_v63 = vpop.permute.xlu0 %108 }
  0x9a   :  { %vm156_vm13 = vcmp.eq.s32.totalorder %v112_v62, %v12534_v31  ;;  %vm155_vm14 = vcmp.eq.s32.totalorder %v109_v63, %v12534_v31  ;;  %v219_v63 = vld [vmem:[%s15663_s2 + $0x40] sm:$0xff] }
  0x9b   :  { %v180_v0 = vsel %vm156_vm13, 1.0, %v15671_v19  ;;  %v179_v1 = vsel %vm155_vm14, 1.0, %v15671_v19  ;;  %11328 = vmatmul.mubr.msk.bf16.gmra.mrb[8].mxu0 %vm259_vm4, %v196_v61  ;;  %v222_v61 = vld [vmem:[%s15663_s2 + $0x58] sm:$0xff]  ;;  %vm2736_vm13 = vcmask 64512   ;;  %vm10645_vm14 = vcmask 1042434  }
  0x9c   :  { %v197_v2 = vpack.c.bf16 %v180_v0, %v179_v1  ;;  %v220_v0 = vld [vmem:[%s15663_s2 + $0x48] sm:$0xff]  ;;  %v221_v1 = vld [vmem:[%s15663_s2 + $0x50] sm:$0xff] }
  0x9d   :  { %v118_v3 = vpop.permute.xlu1 %117  ;;  %v115_v4 = vpop.permute.xlu0 %114 }
  0x9e   :  { %vm158_vm15 = vcmp.eq.s32.totalorder %v118_v3, %v12534_v31  ;;  %vm157_vm0 = vcmp.eq.s32.totalorder %v115_v4, %v12534_v31  ;;  %11331 = vmatprep.mubr.msk.bf16.mxu0 %vm259_vm4, %v197_v2 }
  0x9f   :  { %v182_v5 = vsel %vm158_vm15, 1.0, %v15671_v19  ;;  %v181_v6 = vsel %vm157_vm0, 1.0, %v15671_v19  ;;  %vm10648_vm15 = vcmask 1043459   ;;  %vm10651_vm0 = vcmask 1044484  }
  0xa0   :  { %v198_v7 = vpack.c.bf16 %v182_v5, %v181_v6 }
  0xa1   :  { %v124_v8 = vpop.permute.xlu1 %123  ;;  %v121_v9 = vpop.permute.xlu0 %120 }
  0xa2   :  { %vm160_vm1 = vcmp.eq.s32.totalorder %v124_v8, %v12534_v31  ;;  %vm159_vm2 = vcmp.eq.s32.totalorder %v121_v9, %v12534_v31 }
  0xa3   :  { %11332 = vmatmul.mubr.msk.bf16.gmra.mrb[12].mxu0 %vm259_vm4, %v198_v7  ;;  %v183_v10 = vsel %vm159_vm2, 1.0, %v15671_v19  ;;  %v184_v11 = vsel %vm160_vm1, 1.0, %v15671_v19  ;;  %vm10654_vm1 = vcmask 1045509   ;;  %vm10657_vm2 = vcmask 1046534  }
  0xa4   :  { %v199_v12 = vpack.c.bf16 %v184_v11, %v183_v10  ;;  %v226_v11 = vld [vmem:[%s15663_s2 + $0x78] sm:$0xff]  ;;  %11383 = vmatprep.mubr.msk.f32.mxu0 %vm12386_vm11, %v15671_v19 }
  0xa5   :  { %v130_v13 = vpop.permute.xlu1 %129  ;;  %v127_v14 = vpop.permute.xlu0 %126 }
  0xa6   :  { %vm162_vm3 = vcmp.eq.s32.totalorder %v130_v13, %v12534_v31  ;;  %vm161_vm5 = vcmp.eq.s32.totalorder %v127_v14, %v12534_v31  ;;  %11335 = vmatprep.mubr.msk.bf16.mxu1 %vm259_vm4, %v199_v12  ;;  %v223_v13 = vld [vmem:[%s15663_s2 + $0x60] sm:$0xff]  ;;  %v224_v14 = vld [vmem:[%s15663_s2 + $0x68] sm:$0xff] }
  0xa7   :  { %v186_v15 = vsel %vm162_vm3, 1.0, %v15671_v19  ;;  %v185_v16 = vsel %vm161_vm5, 1.0, %v15671_v19  ;;  %vm10660_vm3 = vcmask 1047559   ;;  %vm10803_vm5 = vcmask 1040384  }
  0xa8   :  { %v200_v17 = vpack.c.bf16 %v186_v15, %v185_v16  ;;  %v225_v15 = vld [vmem:[%s15663_s2 + $0x70] sm:$0xff] }
  0xa9   :  { %v136_v18 = vpop.permute.xlu1 %135  ;;  %v133_v20 = vpop.permute.xlu0 %132 }
  0xaa   :  { %vm164_vm6 = vcmp.eq.s32.totalorder %v136_v18, %v12534_v31  ;;  %vm163_vm7 = vcmp.eq.s32.totalorder %v133_v20, %v12534_v31  ;;  %11336 = vmatmul.mubr.msk.bf16.vlgmr.msra.gmra.mrb[0].mxu1 %vm259_vm4, %v200_v17 }
  0xab   :  { %v188_v21 = vsel %vm164_vm6, 1.0, %v15671_v19  ;;  %v187_v22 = vsel %vm163_vm7, 1.0, %v15671_v19  ;;  %11344 = vmatpush3.bf16.msra.mxu1 %v12030_v29  ;;  %v228_v29 = vld [vmem:[%s15663_s2 + $0x88] sm:$0xff] }
  0xac   :  { %v201_v23 = vpack.c.bf16 %v188_v21, %v187_v22  ;;  %11345 = vmatprep.subr.bf16.mxu1 %v12031_v32 }
  0xad   :  { %v142_v24 = vpop.permute.xlu1 %141  ;;  %v139_v25 = vpop.permute.xlu0 %138 }
  0xae   :  { %vm166_vm8 = vcmp.eq.s32.totalorder %v142_v24, %v12534_v31  ;;  %vm165_vm9 = vcmp.eq.s32.totalorder %v139_v25, %v12534_v31  ;;  %11339 = vmatprep.mubr.msk.bf16.mxu1 %vm259_vm4, %v201_v23 }
  0xaf   :  { %v190_v26 = vsel %vm166_vm8, 1.0, %v15671_v19  ;;  %v189_v27 = vsel %vm165_vm9, 1.0, %v15671_v19  ;;  %11346 = vmatpush3.bf16.msra.mxu1 %v12031_v32 }
  0xb0   :  { %v202_v28 = vpack.c.bf16 %v190_v26, %v189_v27  ;;  %11371 = vmatprep.subr.mxu1 %v15671_v19  ;;  %v227_v27 = vld [vmem:[%s15663_s2 + $0x80] sm:$0xff] }
  0xb2   :  { %11340 = vmatmul.mubr.msk.bf16.gmra.mrb[4].mxu1 %vm259_vm4, %v202_v28  ;;  %v230_v28 = vld [vmem:[%s15663_s2 + $0x98] sm:$0xff] }
 0x15e   :  { %v11321_v31 = vpop.f32.mrb[0].mxu0 }
 0x15f   :  { %v330_v34 = vpop.f32.mrb[1].mxu0  ;;  %v12621_v43 = vadd.f32 %v11321_v31, %v213_v37  ;;  %v229_v31 = vld [vmem:[%s15663_s2 + $0x90] sm:$0xff] }
 0x160   :  { %v11322_v38 = vpop.f32.mrb[2].mxu0  ;;  %v12617_v41 = vadd.f32 %v330_v34, %v211_v35 }
 0x161   :  { %v12615_v39 = vadd.f32 %v11322_v38, %v214_v33  ;;  %v333_v40 = vpop.f32.mrb[3].mxu0  ;;  %15732 = vst [vmem:[#allocation5_spill] sm:$0xff] %v12621_v43 }
 0x162   :  { %15730 = vst [vmem:[#allocation3_spill] sm:$0xff] %v12617_v41  ;;  %v12619_v42 = vadd.f32 %v333_v40, %v212_v36 }
 0x163   :  { %15729 = vst [vmem:[#allocation2_spill] sm:$0xff] %v12615_v39  ;;  %v426_v45 = vpack.c.bf16 %v12615_v39, %v12621_v43 }
 0x164   :  { %15731 = vst [vmem:[#allocation4_spill] sm:$0xff] %v12619_v42  ;;  %v425_v44 = vpack.c.bf16 %v12619_v42, %v12617_v41  ;;  %v638_v42 = vld [vmem:[%s15665_s1 + $0xf] sm:$0x1] }
 0x166   :  { %v11325_v46 = vpop.f32.mrb[4].mxu0  ;;  %11347 = vmatprep.mubr.msk.bf16.mxu1 %vm457_vm10, %v425_v44 }
 0x167   :  { %v346_v48 = vpop.f32.mrb[5].mxu0  ;;  %11348 = vmatmul.mubr.msk.bf16.vlgmr.msra.gmra.mrb[8].mxu1 %vm457_vm10, %v426_v45  ;;  %v12647_v57 = vadd.f32 %v11325_v46, %v217_v51  ;;  %v231_v46 = vld [vmem:[%s15663_s2 + $0xa0] sm:$0xff] }
 0x168   :  { %v11326_v52 = vpop.f32.mrb[6].mxu0  ;;  %v12643_v55 = vadd.f32 %v346_v48, %v215_v49  ;;  %v232_v48 = vld [vmem:[%s15663_s2 + $0xa8] sm:$0xff] }
 0x169   :  { %v12641_v53 = vadd.f32 %v11326_v52, %v218_v47  ;;  %v349_v54 = vpop.f32.mrb[7].mxu0  ;;  %15736 = vst [vmem:[#allocation9_spill] sm:$0xff] %v12647_v57  ;;  %v234_v47 = vld [vmem:[%s15663_s2 + $0xb8] sm:$0xff] }
 0x16a   :  { %15734 = vst [vmem:[#allocation7_spill] sm:$0xff] %v12643_v55  ;;  %v12645_v56 = vadd.f32 %v349_v54, %v216_v50  ;;  %v233_v50 = vld [vmem:[%s15663_s2 + $0xb0] sm:$0xff] }
 0x16b   :  { %15733 = vst [vmem:[#allocation6_spill] sm:$0xff] %v12641_v53  ;;  %v428_v59 = vpack.c.bf16 %v12641_v53, %v12647_v57 }
 0x16c   :  { %15735 = vst [vmem:[#allocation8_spill] sm:$0xff] %v12645_v56  ;;  %v427_v58 = vpack.c.bf16 %v12645_v56, %v12643_v55 }
 0x16e   :  { %v11329_v60 = vpop.f32.mrb[8].mxu0  ;;  %11351 = vmatprep.mubr.msk.bf16.mxu1 %vm457_vm10, %v427_v58 }
 0x16f   :  { %v362_v62 = vpop.f32.mrb[9].mxu0  ;;  %11352 = vmatmul.mubr.msk.bf16.gmra.mrb[12].mxu1 %vm457_vm10, %v428_v59  ;;  %v12673_v7 = vadd.f32 %v11329_v60, %v221_v1 }
 0x170   :  { %v11330_v2 = vpop.f32.mrb[10].mxu0  ;;  %v12669_v5 = vadd.f32 %v362_v62, %v219_v63  ;;  %v12766_v62 = vld [vmem:[%s15664_s9] ss:$0 sm:$0xff] }
 0x171   :  { %v12667_v3 = vadd.f32 %v11330_v2, %v222_v61  ;;  %v365_v4 = vpop.f32.mrb[11].mxu0  ;;  %15740 = vst [vmem:[#allocation13_spill] sm:$0xff] %v12673_v7 }
 0x172   :  { %15738 = vst [vmem:[#allocation11_spill] sm:$0xff] %v12669_v5  ;;  %v12671_v6 = vadd.f32 %v365_v4, %v220_v0 }
 0x173   :  { %15737 = vst [vmem:[#allocation10_spill] sm:$0xff] %v12667_v3  ;;  %v430_v9 = vpack.c.bf16 %v12667_v3, %v12673_v7  ;;  %v634_v7 = vld [vmem:[%s15665_s1 + $0xb] sm:$0x1] }
 0x174   :  { %15739 = vst [vmem:[#allocation12_spill] sm:$0xff] %v12671_v6  ;;  %v429_v8 = vpack.c.bf16 %v12671_v6, %v12669_v5 }
 0x176   :  { %v11333_v10 = vpop.f32.mrb[12].mxu0  ;;  %11355 = vmatprep.mubr.msk.bf16.mxu1 %vm457_vm10, %v429_v8 }
 0x177   :  { %v378_v12 = vpop.f32.mrb[13].mxu0  ;;  %11356 = vmatmul.mubr.msk.bf16.gmra.mrb[16].mxu1 %vm457_vm10, %v430_v9  ;;  %v12699_v22 = vadd.f32 %v11333_v10, %v225_v15 }
 0x178   :  { %v11334_v16 = vpop.f32.mrb[14].mxu0  ;;  %v12695_v20 = vadd.f32 %v378_v12, %v223_v13 }
 0x179   :  { %v12693_v17 = vadd.f32 %v11334_v16, %v226_v11  ;;  %v381_v18 = vpop.f32.mrb[15].mxu0  ;;  %15744 = vst [vmem:[#allocation17_spill] sm:$0xff] %v12699_v22 }
 0x17a   :  { %15742 = vst [vmem:[#allocation15_spill] sm:$0xff] %v12695_v20  ;;  %v12697_v21 = vadd.f32 %v381_v18, %v224_v14 }
 0x17b   :  { %15741 = vst [vmem:[#allocation14_spill] sm:$0xff] %v12693_v17  ;;  %v432_v24 = vpack.c.bf16 %v12693_v17, %v12699_v22 }
 0x17c   :  { %15743 = vst [vmem:[#allocation16_spill] sm:$0xff] %v12697_v21  ;;  %v431_v23 = vpack.c.bf16 %v12697_v21, %v12695_v20 }
 0x17d   :  { %v11337_v25 = vpop.f32.mrb[0].mxu1 }
 0x17e   :  { %v394_v26 = vpop.f32.mrb[1].mxu1  ;;  %11359 = vmatprep.mubr.msk.bf16.mxu1 %vm457_vm10, %v431_v23  ;;  %v12725_v37 = vadd.f32 %v11337_v25, %v229_v31 }
 0x17f   :  { %v11338_v32 = vpop.f32.mrb[2].mxu1  ;;  %11360 = vmatmul.mubr.msk.bf16.gmra.mrb[20].mxu1 %vm457_vm10, %v432_v24  ;;  %v12719_v34 = vadd.f32 %v394_v26, %v227_v27 }
 0x180   :  { %v397_v33 = vpop.f32.mrb[3].mxu1  ;;  %v12721_v35 = vadd.f32 %v11338_v32, %v230_v28  ;;  %15748 = vst [vmem:[#allocation21_spill] sm:$0xff] %v12725_v37 }
 0x181   :  { %15745 = vst [vmem:[#allocation18_spill] sm:$0xff] %v12719_v34  ;;  %v12723_v36 = vadd.f32 %v397_v33, %v228_v29 }
 0x182   :  { %15746 = vst [vmem:[#allocation19_spill] sm:$0xff] %v12721_v35  ;;  %v434_v40 = vpack.c.bf16 %v12721_v35, %v12725_v37 }
 0x183   :  { %15747 = vst [vmem:[#allocation20_spill] sm:$0xff] %v12723_v36  ;;  %v433_v38 = vpack.c.bf16 %v12723_v36, %v12719_v34 }
 0x185   :  { %v11341_v44 = vpop.f32.mrb[4].mxu1  ;;  %11363 = vmatprep.mubr.msk.bf16.mxu1 %vm457_vm10, %v433_v38 }
 0x186   :  { %v410_v45 = vpop.f32.mrb[5].mxu1  ;;  %v12751_v59 = vadd.f32 %v11341_v44, %v233_v50 }
 0x187   :  { %v11342_v49 = vpop.f32.mrb[6].mxu1  ;;  %11364 = vmatmul.mubr.msk.bf16.gmra.mrb[24].mxu1 %vm457_vm10, %v434_v40  ;;  %v12745_v52 = vadd.f32 %v410_v45, %v231_v46 }
 0x188   :  { %v413_v51 = vpop.f32.mrb[7].mxu1  ;;  %v12747_v54 = vadd.f32 %v11342_v49, %v234_v47  ;;  %15752 = vst [vmem:[#allocation25_spill] sm:$0xff] %v12751_v59 }
 0x189   :  { %15749 = vst [vmem:[#allocation22_spill] sm:$0xff] %v12745_v52  ;;  %v12749_v58 = vadd.f32 %v413_v51, %v232_v48 }
 0x18a   :  { %15750 = vst [vmem:[#allocation23_spill] sm:$0xff] %v12747_v54  ;;  %v436_v61 = vpack.c.bf16 %v12747_v54, %v12751_v59 }
 0x18b   :  { %15751 = vst [vmem:[#allocation24_spill] sm:$0xff] %v12749_v58  ;;  %v435_v60 = vpack.c.bf16 %v12749_v58, %v12745_v52  ;;  %v630_v52 = vld [vmem:[%s15665_s1 + $0x7] sm:$0x1] }
 0x18d   :  { %11367 = vmatprep.mubr.msk.bf16.mxu1 %vm457_vm10, %v435_v60 }
 0x18f   :  { %11368 = vmatmul.mubr.msk.bf16.gmra.mrb[28].mxu1 %vm457_vm10, %v436_v61 }
 0x190   :  { %11373 = vmatprep.mubr.msk.f32.mxu1 %vm12386_vm11, %v15671_v19 }
 0x23a   :  { %v11349_v63 = vpop.f32.mrb[8].mxu1 }
 0x23b   :  { %v528_v0 = vpop.f32.mrb[9].mxu1  ;;  %v12777_v9 = vadd.f32 %v11349_v63, %v12766_v62 }
 0x23c   :  { %v12769_v1 = vadd.f32 %v12766_v62, %v528_v0  ;;  %v11350_v2 = vpop.f32.mrb[10].mxu1 }
 0x23d   :  { %v531_v4 = vpop.f32.mrb[11].mxu1  ;;  %v12782_v10 = vadd.f32 %v11350_v2, %v12766_v62 }
 0x23e   :  { %v12772_v8 = vadd.f32 %v12766_v62, %v531_v4  ;;  %696 = vrot.lane.b32.xlu0 %v12769_v1, %s12387_s13 }
 0x23f   :  { %15753 = vst [vmem:[#allocation26_spill] sm:$0xff] %v12782_v10 }
 0x240   :  { %774 = vrot.lane.b32.xlu1 %v12772_v8, %s12387_s13 }
 0x242   :  { %v11353_v11 = vpop.f32.mrb[12].mxu1  ;;  %851 = vrot.lane.b32.xlu0 %v12777_v9, %s12387_s13 }
 0x243   :  { %v544_v12 = vpop.f32.mrb[13].mxu1  ;;  %v12797_v18 = vadd.f32 %v11353_v11, %v12766_v62 }
 0x244   :  { %v12787_v13 = vadd.f32 %v12766_v62, %v544_v12  ;;  %v11354_v14 = vpop.f32.mrb[14].mxu1  ;;  %928 = vrot.lane.b32.xlu1 %v12782_v10, %s12387_s13 }
 0x245   :  { %v547_v15 = vpop.f32.mrb[15].mxu1  ;;  %v12802_v23 = vadd.f32 %v11354_v14, %v12766_v62 }
 0x246   :  { %v12792_v16 = vadd.f32 %v12766_v62, %v547_v15  ;;  %1005 = vrot.lane.b32.xlu0 %v12787_v13, %s12387_s13 }
 0x247   :  { %15755 = vst [vmem:[#allocation28_spill] sm:$0xff] %v12802_v23 }
 0x248   :  { %15754 = vst [vmem:[#allocation27_spill] sm:$0xff] %v12792_v16  ;;  %1082 = vrot.lane.b32.xlu1 %v12792_v16, %s12387_s13 }
 0x24a   :  { %v11357_v24 = vpop.f32.mrb[16].mxu1  ;;  %1159 = vrot.lane.b32.xlu0 %v12797_v18, %s12387_s13 }
 0x24b   :  { %v560_v25 = vpop.f32.mrb[17].mxu1  ;;  %v12817_v32 = vadd.f32 %v11357_v24, %v12766_v62 }
 0x24c   :  { %v12807_v26 = vadd.f32 %v12766_v62, %v560_v25  ;;  %v11358_v27 = vpop.f32.mrb[18].mxu1  ;;  %1236 = vrot.lane.b32.xlu1 %v12802_v23, %s12387_s13 }
 0x24d   :  { %v563_v28 = vpop.f32.mrb[19].mxu1  ;;  %v12822_v31 = vadd.f32 %v11358_v27, %v12766_v62 }
 0x24e   :  { %15756 = vst [vmem:[#allocation29_spill] sm:$0xff] %v12807_v26  ;;  %v12812_v29 = vadd.f32 %v12766_v62, %v563_v28  ;;  %1313 = vrot.lane.b32.xlu0 %v12807_v26, %s12387_s13 }
 0x250   :  { %15757 = vst [vmem:[#allocation30_spill] sm:$0xff] %v12812_v29  ;;  %1390 = vrot.lane.b32.xlu1 %v12812_v29, %s12387_s13 }
 0x252   :  { %v11361_v33 = vpop.f32.mrb[20].mxu1  ;;  %1467 = vrot.lane.b32.xlu0 %v12817_v32, %s12387_s13 }
 0x253   :  { %v576_v38 = vpop.f32.mrb[21].mxu1  ;;  %v12837_v47 = vadd.f32 %v11361_v33, %v12766_v62 }
 0x254   :  { %v12827_v40 = vadd.f32 %v12766_v62, %v576_v38  ;;  %v11362_v44 = vpop.f32.mrb[22].mxu1  ;;  %1544 = vrot.lane.b32.xlu1 %v12822_v31, %s12387_s13 }
 0x255   :  { %v579_v45 = vpop.f32.mrb[23].mxu1  ;;  %v12842_v48 = vadd.f32 %v11362_v44, %v12766_v62 }
 0x256   :  { %v12832_v46 = vadd.f32 %v12766_v62, %v579_v45  ;;  %1621 = vrot.lane.b32.xlu0 %v12827_v40, %s12387_s13 }
 0x258   :  { %1698 = vrot.lane.b32.xlu1 %v12832_v46, %s12387_s13 }
 0x25a   :  { %v11365_v49 = vpop.f32.mrb[24].mxu1  ;;  %1775 = vrot.lane.b32.xlu0 %v12837_v47, %s12387_s13 }
 0x25b   :  { %v592_v50 = vpop.f32.mrb[25].mxu1  ;;  %v12857_v0 = vadd.f32 %v11365_v49, %v12766_v62 }
 0x25c   :  { %v12847_v51 = vadd.f32 %v12766_v62, %v592_v50  ;;  %v11366_v60 = vpop.f32.mrb[26].mxu1  ;;  %1852 = vrot.lane.b32.xlu1 %v12842_v48, %s12387_s13 }
 0x25d   :  { %v595_v61 = vpop.f32.mrb[27].mxu1  ;;  %v12862_v2 = vadd.f32 %v11366_v60, %v12766_v62 }
 0x25e   :  { %v12852_v63 = vadd.f32 %v12766_v62, %v595_v61  ;;  %1929 = vrot.lane.b32.xlu0 %v12847_v51, %s12387_s13 }
 0x260   :  { %2006 = vrot.lane.b32.xlu1 %v12852_v63, %s12387_s13 }
 0x262   :  { %2083 = vrot.lane.b32.xlu0 %v12857_v0, %s12387_s13  ;;  %v11369_v4 = vpop.f32.mrb[28].mxu1 }
 0x263   :  { %v608_v11 = vpop.f32.mrb[29].mxu1  ;;  %v12877_v25 = vadd.f32 %v11369_v4, %v12766_v62 }
 0x264   :  { %v12867_v12 = vadd.f32 %v12766_v62, %v608_v11  ;;  %2160 = vrot.lane.b32.xlu1 %v12862_v2, %s12387_s13  ;;  %v11370_v14 = vpop.f32.mrb[30].mxu1 }
 0x265   :  { %v611_v15 = vpop.f32.mrb[31].mxu1  ;;  %v12882_v27 = vadd.f32 %v11370_v14, %v12766_v62 }
 0x266   :  { %v12872_v24 = vadd.f32 %v12766_v62, %v611_v15  ;;  %2237 = vrot.lane.b32.xlu0 %v12867_v12, %s12387_s13 }
 0x268   :  { %2314 = vrot.lane.b32.xlu1 %v12872_v24, %s12387_s13 }
 0x26a   :  { %2391 = vrot.lane.b32.xlu0 %v12877_v25, %s12387_s13 }
 0x26c   :  { %2468 = vrot.lane.b32.xlu1 %v12882_v27, %s12387_s13 }
 0x26e   :  { %3077 = vrot.lane.b32.xlu0 %v12772_v8, %s12388_s14 }
 0x270   :  { %3001 = vrot.lane.b32.xlu1 %v12769_v1, %s12388_s14 }
 0x272   :  { %3229 = vrot.lane.b32.xlu0 %v12782_v10, %s12388_s14 }
 0x274   :  { %3153 = vrot.lane.b32.xlu1 %v12777_v9, %s12388_s14 }
 0x276   :  { %3381 = vrot.lane.b32.xlu0 %v12792_v16, %s12388_s14 }
 0x278   :  { %3305 = vrot.lane.b32.xlu1 %v12787_v13, %s12388_s14 }
 0x27a   :  { %3533 = vrot.lane.b32.xlu0 %v12802_v23, %s12388_s14 }
 0x27c   :  { %3457 = vrot.lane.b32.xlu1 %v12797_v18, %s12388_s14 }
 0x27e   :  { %3685 = vrot.lane.b32.xlu0 %v12812_v29, %s12388_s14 }
 0x280   :  { %3609 = vrot.lane.b32.xlu1 %v12807_v26, %s12388_s14 }
 0x282   :  { %3837 = vrot.lane.b32.xlu0 %v12822_v31, %s12388_s14 }
 0x284   :  { %3761 = vrot.lane.b32.xlu1 %v12817_v32, %s12388_s14 }
 0x286   :  { %4065 = vrot.lane.b32.xlu0 %v12837_v47, %s12388_s14 }
 0x288   :  { %3913 = vrot.lane.b32.xlu1 %v12827_v40, %s12388_s14 }
 0x28a   :  { %4217 = vrot.lane.b32.xlu0 %v12847_v51, %s12388_s14 }
 0x28c   :  { %3989 = vrot.lane.b32.xlu1 %v12832_v46, %s12388_s14 }
 0x28e   :  { %4369 = vrot.lane.b32.xlu0 %v12857_v0, %s12388_s14 }
 0x290   :  { %4141 = vrot.lane.b32.xlu1 %v12842_v48, %s12388_s14 }
 0x292   :  { %4521 = vrot.lane.b32.xlu0 %v12867_v12, %s12388_s14 }
 0x294   :  { %4293 = vrot.lane.b32.xlu1 %v12852_v63, %s12388_s14 }
 0x296   :  { %4673 = vrot.lane.b32.xlu0 %v12877_v25, %s12388_s14 }
 0x298   :  { %4445 = vrot.lane.b32.xlu1 %v12862_v2, %s12388_s14 }
 0x29a   :  { %4827 = vrot.lane.b32.xlu0 %v12769_v1, %s12389_s15 }
 0x29c   :  { %4749 = vrot.lane.b32.xlu1 %v12882_v27, %s12388_s14 }
 0x29e   :  { %4825 = vrot.lane.b32.xlu0 %v12769_v1, %s12390_s16 }
 0x2a0   :  { %4905 = vrot.lane.b32.xlu1 %v12772_v8, %s12389_s15 }
 0x2a2   :  { %4983 = vrot.lane.b32.xlu0 %v12777_v9, %s12389_s15 }
 0x2a4   :  { %4903 = vrot.lane.b32.xlu1 %v12772_v8, %s12390_s16 }
 0x2a6   :  { %4981 = vrot.lane.b32.xlu0 %v12777_v9, %s12390_s16 }
 0x2a8   :  { %5061 = vrot.lane.b32.xlu1 %v12782_v10, %s12389_s15 }
 0x2aa   :  { %5139 = vrot.lane.b32.xlu0 %v12787_v13, %s12389_s15 }
 0x2ac   :  { %5059 = vrot.lane.b32.xlu1 %v12782_v10, %s12390_s16 }
 0x2ae   :  { %5137 = vrot.lane.b32.xlu0 %v12787_v13, %s12390_s16 }
 0x2b0   :  { %v697_v62 = vpop.permute.xlu0 %696  ;;  %5217 = vrot.lane.b32.xlu1 %v12792_v16, %s12389_s15 }
 0x2b1   :  { %11372 = vmatpush3.xpose.msk.msra.mxu1 %vm698_vm12, %v697_v62 }
 0x2b2   :  { %v775_v28 = vpop.permute.xlu1 %774  ;;  %5295 = vrot.lane.b32.xlu0 %v12797_v18, %s12389_s15  ;;  %11376 = vmatprep.subr.mxu1 %v15671_v19 }
 0x2b4   :  { %v852_v33 = vpop.permute.xlu0 %851  ;;  %11374 = vmatmul.mubr.msk.f32.vlgmr.msra.gmra.mrb[32].mxu1 %vm698_vm12, %v12769_v1  ;;  %5215 = vrot.lane.b32.xlu1 %v12792_v16, %s12390_s16 }
 0x2b5   :  { %11377 = vmatpush3.xpose.msk.msra.mxu1 %vm698_vm12, %v775_v28  ;;  %11382 = vmatpush3.xpose.msk.msra.mxu0 %vm698_vm12, %v852_v33 }
 0x2b6   :  { %v929_v38 = vpop.permute.xlu1 %928  ;;  %5293 = vrot.lane.b32.xlu0 %v12797_v18, %s12390_s16  ;;  %11378 = vmatprep.mubr.msk.f32.mxu1 %vm12386_vm11, %v15671_v19 }
 0x2b7   :  { %11391 = vmatprep.subr.mxu0 %v15671_v19  ;;  %11386 = vmatprep.subr.mxu1 %v15671_v19 }
 0x2b8   :  { %11384 = vmatmul.mubr.msk.f32.vlgmr.msra.gmra.mrb[16].mxu0 %vm698_vm12, %v12777_v9  ;;  %v1006_v44 = vpop.permute.xlu0 %1005  ;;  %11379 = vmatmul.mubr.msk.f32.vlgmr.msra.gmra.mrb[34].mxu1 %vm698_vm12, %v12772_v8 }
 0x2b9   :  { %5373 = vrot.lane.b32.xlu1 %v12802_v23, %s12389_s15  ;;  %11387 = vmatpush3.xpose.msk.msra.mxu1 %vm698_vm12, %v929_v38 }
 0x2ba   :  { %11392 = vmatpush3.xpose.msk.msra.mxu0 %vm698_vm12, %v1006_v44  ;;  %v1083_v45 = vpop.permute.xlu1 %1082  ;;  %5451 = vrot.lane.b32.xlu0 %v12807_v26, %s12389_s15 }
 0x2bb   :  { %11388 = vmatprep.mubr.msk.f32.mxu1 %vm12386_vm11, %v15671_v19  ;;  %11393 = vmatprep.mubr.msk.f32.mxu0 %vm12386_vm11, %v15671_v19 }
 0x2bc   :  { %11401 = vmatprep.subr.mxu0 %v15671_v19  ;;  %v1160_v49 = vpop.permute.xlu0 %1159  ;;  %11389 = vmatmul.mubr.msk.f32.vlgmr.msra.gmra.mrb[36].mxu1 %vm698_vm12, %v12782_v10 }
 0x2bd   :  { %11394 = vmatmul.mubr.msk.f32.vlgmr.msra.gmra.mrb[18].mxu0 %vm698_vm12, %v12787_v13  ;;  %11396 = vmatprep.subr.mxu1 %v15671_v19 }
 0x2be   :  { %5371 = vrot.lane.b32.xlu1 %v12802_v23, %s12390_s16  ;;  %11397 = vmatpush3.xpose.msk.msra.mxu1 %vm698_vm12, %v1083_v45  ;;  %v1237_v50 = vpop.permute.xlu1 %1236 }
 0x2bf   :  { %11402 = vmatpush3.xpose.msk.msra.mxu0 %vm698_vm12, %v1160_v49  ;;  %5449 = vrot.lane.b32.xlu0 %v12807_v26, %s12390_s16 }
 0x2c0   :  { %11398 = vmatprep.mubr.msk.f32.mxu1 %vm12386_vm11, %v15671_v19  ;;  %11403 = vmatprep.mubr.msk.f32.mxu0 %vm12386_vm11, %v15671_v19  ;;  %v1314_v60 = vpop.permute.xlu0 %1313 }
 0x2c1   :  { %11411 = vmatprep.subr.mxu0 %v15671_v19  ;;  %11399 = vmatmul.mubr.msk.f32.vlgmr.msra.gmra.mrb[38].mxu1 %vm698_vm12, %v12792_v16 }
 0x2c2   :  { %11404 = vmatmul.mubr.msk.f32.vlgmr.msra.gmra.mrb[20].mxu0 %vm698_vm12, %v12797_v18  ;;  %11406 = vmatprep.subr.mxu1 %v15671_v19  ;;  %v1391_v61 = vpop.permute.xlu1 %1390 }
 0x2c3   :  { %5529 = vrot.lane.b32.xlu1 %v12812_v29, %s12389_s15  ;;  %11407 = vmatpush3.xpose.msk.msra.mxu1 %vm698_vm12, %v1237_v50 }
 0x2c4   :  { %11412 = vmatpush3.xpose.msk.msra.mxu0 %vm698_vm12, %v1314_v60  ;;  %5607 = vrot.lane.b32.xlu0 %v12817_v32, %s12389_s15  ;;  %v1468_v4 = vpop.permute.xlu0 %1467 }
 0x2c5   :  { %11408 = vmatprep.mubr.msk.f32.mxu1 %vm12386_vm11, %v15671_v19  ;;  %11413 = vmatprep.mubr.msk.f32.mxu0 %vm12386_vm11, %v15671_v19 }
 0x2c6   :  { %11421 = vmatprep.subr.mxu0 %v15671_v19  ;;  %11409 = vmatmul.mubr.msk.f32.vlgmr.msra.gmra.mrb[40].mxu1 %vm698_vm12, %v12802_v23  ;;  %v1545_v11 = vpop.permute.xlu1 %1544 }
 0x2c7   :  { %11414 = vmatmul.mubr.msk.f32.vlgmr.msra.gmra.mrb[22].mxu0 %vm698_vm12, %v12807_v26  ;;  %11416 = vmatprep.subr.mxu1 %v15671_v19 }
 0x2c8   :  { %5527 = vrot.lane.b32.xlu1 %v12812_v29, %s12390_s16  ;;  %11417 = vmatpush3.xpose.msk.msra.mxu1 %vm698_vm12, %v1391_v61  ;;  %v1622_v14 = vpop.permute.xlu0 %1621 }
 0x2c9   :  { %11422 = vmatpush3.xpose.msk.msra.mxu0 %vm698_vm12, %v1468_v4  ;;  %11418 = vmatprep.mubr.msk.f32.mxu1 %vm12386_vm11, %v15671_v19 }
 0x2ca   :  { %11423 = vmatprep.mubr.msk.f32.mxu0 %vm12386_vm11, %v15671_v19  ;;  %11431 = vmatprep.subr.mxu0 %v15671_v19  ;;  %v1699_v15 = vpop.permute.xlu1 %1698 }
 0x2cb   :  { %11419 = vmatmul.mubr.msk.f32.vlgmr.msra.gmra.mrb[42].mxu1 %vm698_vm12, %v12812_v29  ;;  %11426 = vmatprep.subr.mxu1 %v15671_v19 }
 0x2cc   :  { %11424 = vmatmul.mubr.msk.f32.vlgmr.msra.gmra.mrb[24].mxu0 %vm698_vm12, %v12817_v32  ;;  %5685 = vrot.lane.b32.xlu1 %v12822_v31, %s12389_s15  ;;  %v1776_v62 = vpop.permute.xlu0 %1775 }
 0x2cd   :  { %11427 = vmatpush3.xpose.msk.msra.mxu1 %vm698_vm12, %v1545_v11  ;;  %11432 = vmatpush3.xpose.msk.msra.mxu0 %vm698_vm12, %v1622_v14  ;;  %v624_v14 = vld [vmem:[%s15665_s1 + $0x1] sm:$0x1] }
 0x2ce   :  { %11428 = vmatprep.mubr.msk.f32.mxu1 %vm12386_vm11, %v15671_v19  ;;  %11433 = vmatprep.mubr.msk.f32.mxu0 %vm12386_vm11, %v15671_v19  ;;  %v1853_v28 = vpop.permute.xlu1 %1852 }
 0x2cf   :  { %11441 = vmatprep.subr.mxu0 %v15671_v19  ;;  %11436 = vmatprep.subr.mxu1 %v15671_v19 }
 0x2d0   :  { %11434 = vmatmul.mubr.msk.f32.vlgmr.msra.gmra.mrb[26].mxu0 %vm698_vm12, %v12827_v40  ;;  %11429 = vmatmul.mubr.msk.f32.vlgmr.msra.gmra.mrb[44].mxu1 %vm698_vm12, %v12822_v31  ;;  %v1930_v33 = vpop.permute.xlu0 %1929 }
 0x2d1   :  { %4597 = vrot.lane.b32.xlu1 %v12872_v24, %s12388_s14  ;;  %11437 = vmatpush3.xpose.msk.msra.mxu1 %vm698_vm12, %v1699_v15  ;;  %v625_v15 = vld [vmem:[%s15665_s1 + $0x2] sm:$0x1] }
 0x2d2   :  { %11442 = vmatpush3.xpose.msk.msra.mxu0 %vm698_vm12, %v1776_v62  ;;  %11438 = vmatprep.mubr.msk.f32.mxu1 %vm12386_vm11, %v15671_v19  ;;  %v2007_v38 = vpop.permute.xlu1 %2006  ;;  %v648_v62 = vsub.f32 1.0, %v624_v14 }
 0x2d3   :  { %11443 = vmatprep.mubr.msk.f32.mxu0 %vm12386_vm11, %v15671_v19  ;;  %11451 = vmatprep.subr.mxu0 %v15671_v19 }
 0x2d4   :  { %11439 = vmatmul.mubr.msk.f32.vlgmr.msra.gmra.mrb[46].mxu1 %vm698_vm12, %v12832_v46  ;;  %11446 = vmatprep.subr.mxu1 %v15671_v19  ;;  %v2084_v44 = vpop.permute.xlu0 %2083 }
 0x2d5   :  { %11444 = vmatmul.mubr.msk.f32.vlgmr.msra.gmra.mrb[28].mxu0 %vm698_vm12, %v12837_v47  ;;  %11447 = vmatpush3.xpose.msk.msra.mxu1 %vm698_vm12, %v1853_v28  ;;  %v649_v28 = vsub.f32 1.0, %v625_v15  ;;  %v628_v15 = vld [vmem:[%s15665_s1 + $0x5] sm:$0x1] }
 0x2d6   :  { %11452 = vmatpush3.xpose.msk.msra.mxu0 %vm698_vm12, %v1930_v33  ;;  %11448 = vmatprep.mubr.msk.f32.mxu1 %vm12386_vm11, %v15671_v19  ;;  %v2161_v45 = vpop.permute.xlu1 %2160  ;;  %v623_v33 = vld [vmem:[%s15665_s1] sm:$0x1] }
 0x2d7   :  { %11453 = vmatprep.mubr.msk.f32.mxu0 %vm12386_vm11, %v15671_v19  ;;  %11461 = vmatprep.subr.mxu0 %v15671_v19 }
 0x2d8   :  { %11449 = vmatmul.mubr.msk.f32.vlgmr.msra.gmra.mrb[48].mxu1 %vm698_vm12, %v12842_v48  ;;  %11456 = vmatprep.subr.mxu1 %v15671_v19  ;;  %v2238_v49 = vpop.permute.xlu0 %2237 }
 0x2d9   :  { %11454 = vmatmul.mubr.msk.f32.vlgmr.msra.gmra.mrb[30].mxu0 %vm698_vm12, %v12847_v51  ;;  %11457 = vmatpush3.xpose.msk.msra.mxu1 %vm698_vm12, %v2007_v38  ;;  %v627_v38 = vld [vmem:[%s15665_s1 + $0x4] sm:$0x1] }
 0x2da   :  { %11462 = vmatpush3.xpose.msk.msra.mxu0 %vm698_vm12, %v2084_v44  ;;  %11458 = vmatprep.mubr.msk.f32.mxu1 %vm12386_vm11, %v15671_v19  ;;  %v2315_v50 = vpop.permute.xlu1 %2314  ;;  %v2593_v44 = vshrl.u32 %v69_v30, 7  ;;  %v629_v30 = vld [vmem:[%s15665_s1 + $0x6] sm:$0x1] }
 0x2db   :  { %11463 = vmatprep.mubr.msk.f32.mxu0 %vm12386_vm11, %v15671_v19  ;;  %11466 = vmatprep.subr.mxu1 %v15671_v19 }
 0x2dc   :  { %11459 = vmatmul.mubr.msk.f32.vlgmr.msra.gmra.mrb[50].mxu1 %vm698_vm12, %v12852_v63  ;;  %11471 = vmatprep.subr.mxu0 %v15671_v19  ;;  %v2392_v61 = vpop.permute.xlu0 %2391  ;;  %v13142_v14 = vsub.s32 0, %v2593_v44 }
 0x2dd   :  { %11464 = vmatmul.mubr.msk.f32.vlgmr.msra.gmra.mrb[32].mxu0 %vm698_vm12, %v12857_v0  ;;  %11467 = vmatpush3.xpose.msk.msra.mxu1 %vm698_vm12, %v2161_v45  ;;  %v626_v45 = vld [vmem:[%s15665_s1 + $0x3] sm:$0x1] }
 0x2de   :  { %11472 = vmatpush3.xpose.msk.msra.mxu0 %vm698_vm12, %v2238_v49  ;;  %11468 = vmatprep.mubr.msk.f32.mxu1 %vm12386_vm11, %v15671_v19  ;;  %v2469_v60 = vpop.permute.xlu1 %2468  ;;  %v647_v49 = vsub.f32 1.0, %v623_v33  ;;  %v652_v33 = vsub.f32 1.0, %v628_v15 }
 0x2df   :  { %11473 = vmatprep.mubr.msk.f32.mxu0 %vm12386_vm11, %v15671_v19  ;;  %11476 = vmatprep.subr.mxu1 %v15671_v19 }
 0x2e0   :  { %11469 = vmatmul.mubr.msk.f32.vlgmr.msra.gmra.mrb[52].mxu1 %vm698_vm12, %v12862_v2  ;;  %11481 = vmatprep.subr.mxu0 %v15671_v19  ;;  %v3078_v11 = vpop.permute.xlu0 %3077  ;;  %v671_v54 = vmul.f32 -1e+09, %v647_v49  ;;  %v676_v37 = vmul.f32 -1e+09, %v652_v33 }
 0x2e1   :  { %11474 = vmatmul.mubr.msk.f32.vlgmr.msra.gmra.mrb[34].mxu0 %vm698_vm12, %v12867_v12  ;;  %11477 = vmatpush3.xpose.msk.msra.mxu1 %vm698_vm12, %v2315_v50  ;;  %v672_v50 = vmul.f32 -1e+09, %v648_v62 }
 0x2e2   :  { %11482 = vmatpush3.xpose.msk.msra.mxu0 %vm698_vm12, %v2392_v61  ;;  %11478 = vmatprep.mubr.msk.f32.mxu1 %vm12386_vm11, %v15671_v19  ;;  %v3002_v4 = vpop.permute.xlu1 %3001  ;;  %v651_v61 = vsub.f32 1.0, %v627_v38  ;;  %v653_v38 = vsub.f32 1.0, %v629_v30 }
 0x2e3   :  { %11483 = vmatprep.mubr.msk.f32.mxu0 %vm12386_vm11, %v15671_v19  ;;  %11486 = vmatprep.subr.mxu1 %v15671_v19  ;;  %v13151_v58 = vrot.slane %v672_v50, %v13142_v14 }
 0x2e4   :  { %11479 = vmatmul.mubr.msk.f32.vlgmr.msra.gmra.mrb[54].mxu1 %vm698_vm12, %v12872_v24  ;;  %11491 = vmatprep.subr.mxu0 %v15671_v19 }
 0x2e5   :  { %11484 = vmatmul.mubr.msk.f32.vlgmr.msra.gmra.mrb[36].mxu0 %vm698_vm12, %v12877_v25  ;;  %11487 = vmatpush3.xpose.msk.msra.mxu1 %vm698_vm12, %v2469_v60  ;;  %v673_v60 = vmul.f32 -1e+09, %v649_v28  ;;  %15758 = vst [vmem:[#allocation31_spill] sm:$0xff] %v13151_v58  ;;  %v675_v28 = vmul.f32 -1e+09, %v651_v61  ;;  %v13163_v61 = vrot.slane %v671_v54, %v13142_v14 }
 0x2e6   :  { %11488 = vmatprep.mubr.msk.f32.mxu1 %vm12386_vm11, %v15671_v19  ;;  %11492 = vmatpush3.msra.mxu0 %v3002_v4  ;;  %v650_v4 = vsub.f32 1.0, %v626_v45 }
 0x2e7   :  { %11496 = vmatprep.subr.mxu1 %v15671_v19  ;;  %11493 = vmatprep.mubr.msk.f32.mxu0 %vm12386_vm11, %v15671_v19  ;;  %v13154_v62 = vrot.slane %v673_v60, %v13142_v14  ;;  %15760 = vst [vmem:[#allocation33_spill] sm:$0xff] %v13163_v61 }
 0x2e8   :  { %11489 = vmatmul.mubr.msk.f32.vlgmr.msra.gmra.mrb[56].mxu1 %vm698_vm12, %v12882_v27  ;;  %11501 = vmatprep.subr.mxu0 %v15671_v19  ;;  %v674_v44 = vmul.f32 -1e+09, %v650_v4  ;;  %v13166_v4 = vrot.slane %v675_v28, %v13142_v14 }
 0x2e9   :  { %11497 = vmatpush3.msra.mxu1 %v3078_v11  ;;  %11498 = vmatprep.mubr.msk.f32.mxu1 %vm12386_vm11, %v15671_v19  ;;  %15759 = vst [vmem:[#allocation32_spill] sm:$0xff] %v13154_v62 }
 0x2ea   :  { %11506 = vmatprep.subr.mxu1 %v15671_v19  ;;  %15761 = vst [vmem:[#allocation34_spill] sm:$0xff] %v13166_v4 }
 0x387   :  { %v769_v11 = vpop.f32.mrb[32].mxu1 }
 0x388   :  { %v11375_v19 = vpop.f32.mrb[33].mxu1  ;;  %v2544_v49 = vmul.f32 0.25, %v769_v11  ;;  %v677_v11 = vmul.f32 -1e+09, %v653_v38  ;;  %v13194_v38 = vrot.slane %v676_v37, %v13142_v14 }
 0x389   :  { %v631_v19 = vld [vmem:[%s15665_s1 + $0x8] sm:$0x1] }
 0x38a   :  { %15763 = vst [vmem:[#allocation36_spill] sm:$0xff] %v13194_v38 }
 0x38b   :  { %v846_v45 = vpop.f32.mrb[34].mxu1  ;;  %v923_v59 = vpop.f32.mrb[16].mxu0 }
 0x38c   :  { %v2545_v50 = vmul.f32 0.25, %v846_v45  ;;  %v2546_v35 = vmul.f32 0.25, %v923_v59  ;;  %v11380_v36 = vpop.f32.mrb[35].mxu1  ;;  %v11385_v60 = vpop.f32.mrb[17].mxu0  ;;  %v654_v45 = vsub.f32 1.0, %v630_v52  ;;  %v655_v59 = vsub.f32 1.0, %v631_v19 }
 0x38d   :  { %v13175_v36 = vrot.slane %v674_v44, %v13142_v14  ;;  %v632_v52 = vld [vmem:[%s15665_s1 + $0x9] sm:$0x1]  ;;  %v13197_v44 = vrot.slane %v677_v11, %v13142_v14  ;;  %v13199_v19 = vpop.permute.xlu1 %3153 }
 0x38e   :  { %v13169_v15 = vadd.f32 %v13151_v58, %v2545_v50  ;;  %v13172_v30 = vadd.f32 %v13154_v62, %v2546_v35  ;;  %v13182_v35 = vadd.f32 %v13163_v61, %v2544_v49  ;;  %v656_v22 = vsub.f32 1.0, %v632_v52 }
 0x38f   :  { %v1000_v34 = vpop.f32.mrb[36].mxu1  ;;  %15762 = vst [vmem:[#allocation35_spill] sm:$0xff] %v13175_v36  ;;  %15764 = vst [vmem:[#allocation37_spill] sm:$0xff] %v13197_v44 }
 0x390   :  { %v2547_v54 = vmul.f32 0.25, %v1000_v34  ;;  %v1077_v60 = vpop.f32.mrb[18].mxu0  ;;  %v11390_v17 = vpop.f32.mrb[37].mxu1  ;;  %v2740_v28 = vsel %vm2736_vm13, %v13169_v15, -inf  ;;  %v2743_v50 = vsel %vm2736_vm13, %v13172_v30, -inf }
 0x391   :  { %v2548_v33 = vmul.f32 0.25, %v1077_v60  ;;  %v11395_v21 = vpop.f32.mrb[19].mxu0  ;;  %2741 = vmax.xlane.f32.xlu1 %v2740_v28  ;;  %2744 = vmax.xlane.f32.xlu0 %v2743_v50  ;;  %v633_v17 = vld [vmem:[%s15665_s1 + $0xa] sm:$0x1]  ;;  %v2737_v60 = vsel %vm2736_vm13, %v13182_v35, -inf  ;;  %v13233_v57 = vpop.permute.xlu1 %3305 }
 0x392   :  { %v678_v21 = vmul.f32 -1e+09, %v654_v45  ;;  %v679_v28 = vmul.f32 -1e+09, %v655_v59  ;;  %v13204_v50 = vadd.f32 %v13175_v36, %v2547_v54  ;;  %v657_v11 = vsub.f32 1.0, %v633_v17 }
 0x393   :  { %v13191_v34 = vadd.f32 %v13166_v4, %v2548_v33  ;;  %v635_v59 = vld [vmem:[%s15665_s1 + $0xc] sm:$0x1] }
 0x394   :  { %v1154_v49 = vpop.f32.mrb[38].mxu1  ;;  %v13215_v54 = vrot.slane %v678_v21, %v13142_v14  ;;  %v659_v5 = vsub.f32 1.0, %v635_v59 }
 0x395   :  { %v2549_v33 = vmul.f32 0.25, %v1154_v49  ;;  %v1231_v20 = vpop.f32.mrb[20].mxu0  ;;  %v11400_v3 = vpop.f32.mrb[39].mxu1  ;;  %v2749_v37 = vsel %vm2736_vm13, %v13191_v34, -inf  ;;  %2738 = vmax.xlane.f32.xlu0 %v2737_v60  ;;  %v13226_v49 = vrot.slane %v679_v28, %v13142_v14  ;;  %v681_v60 = vmul.f32 -1e+09, %v657_v11 }
 0x396   :  { %v2550_v45 = vmul.f32 0.25, %v1231_v20  ;;  %v11405_v6 = vpop.f32.mrb[21].mxu0  ;;  %2750 = vmax.xlane.f32.xlu1 %v2749_v37  ;;  %15765 = vst [vmem:[#allocation38_spill] sm:$0xff] %v13215_v54  ;;  %v680_v20 = vmul.f32 -1e+09, %v656_v22  ;;  %v658_v37 = vsub.f32 1.0, %v634_v7 }
 0x397   :  { %v13218_v3 = vadd.f32 %v13194_v38, %v2549_v33  ;;  %v2746_v6 = vsel %vm2736_vm13, %v13204_v50, -inf  ;;  %15766 = vst [vmem:[#allocation39_spill] sm:$0xff] %v13226_v49  ;;  %v637_v7 = vld [vmem:[%s15665_s1 + $0xe] sm:$0x1] }
 0x398   :  { %v13221_v52 = vadd.f32 %v13197_v44, %v2550_v45  ;;  %v636_v45 = vld [vmem:[%s15665_s1 + $0xd] sm:$0x1]  ;;  %v13247_v59 = vrot.slane %v680_v20, %v13142_v14  ;;  %v661_v39 = vsub.f32 1.0, %v637_v7 }
 0x399   :  { %v1308_v17 = vpop.f32.mrb[40].mxu1  ;;  %2747 = vmax.xlane.f32.xlu0 %v2746_v6  ;;  %v13249_v6 = vpop.permute.xlu0 %3229 }
 0x39a   :  { %v2551_v21 = vmul.f32 0.25, %v1308_v17  ;;  %v1385_v53 = vpop.f32.mrb[22].mxu0  ;;  %v11410_v56 = vpop.f32.mrb[41].mxu1  ;;  %v2755_v33 = vsel %vm2736_vm13, %v13221_v52, -inf  ;;  %15767 = vst [vmem:[#allocation40_spill] sm:$0xff] %v13247_v59 }
 0x39b   :  { %v2552_v22 = vmul.f32 0.25, %v1385_v53  ;;  %v11415_v55 = vpop.f32.mrb[23].mxu0  ;;  %2756 = vmax.xlane.f32.xlu1 %v2755_v33  ;;  %v2752_v56 = vsel %vm2736_vm13, %v13218_v3, -inf  ;;  %v682_v53 = vmul.f32 -1e+09, %v658_v37  ;;  %v13252_v33 = vrot.slane %v681_v60, %v13142_v14  ;;  %v13264_v60 = vpop.permute.xlu1 %3457 }
 0x39c   :  { %v13239_v28 = vadd.f32 %v13215_v54, %v2551_v21  ;;  %v660_v55 = vsub.f32 1.0, %v636_v45  ;;  %v683_v21 = vmul.f32 -1e+09, %v659_v5  ;;  %v639_v37 = vld [vmem:[%s15665_s1 + $0x10] sm:$0x1] }
 0x39d   :  { %v13244_v11 = vadd.f32 %v13226_v49, %v2552_v22  ;;  %2753 = vmax.xlane.f32.xlu0 %v2752_v56  ;;  %15768 = vst [vmem:[#allocation41_spill] sm:$0xff] %v13252_v33  ;;  %v662_v49 = vsub.f32 1.0, %v638_v42 }
 0x39e   :  { %v1462_v17 = vpop.f32.mrb[42].mxu1  ;;  %v2758_v5 = vsel %vm2736_vm13, %v13239_v28, -inf }
 0x39f   :  { %v2553_v22 = vmul.f32 0.25, %v1462_v17  ;;  %v1539_v43 = vpop.f32.mrb[24].mxu0  ;;  %v11420_v41 = vpop.f32.mrb[43].mxu1  ;;  %v2761_v20 = vsel %vm2736_vm13, %v13244_v11, -inf  ;;  %v684_v17 = vmul.f32 -1e+09, %v660_v55 }
 0x3a0   :  { %v2554_v45 = vmul.f32 0.25, %v1539_v43  ;;  %v11425_v56 = vpop.f32.mrb[25].mxu0  ;;  %2762 = vmax.xlane.f32.xlu1 %v2761_v20  ;;  %v13270_v41 = vrot.slane %v682_v53, %v13142_v14  ;;  %v13276_v43 = vrot.slane %v683_v21, %v13142_v14  ;;  %v685_v20 = vmul.f32 -1e+09, %v661_v39  ;;  %v641_v53 = vld [vmem:[%s15665_s1 + $0x12] sm:$0x1] }
 0x3a1   :  { %v13267_v7 = vadd.f32 %v13247_v59, %v2553_v22  ;;  %2759 = vmax.xlane.f32.xlu0 %v2758_v5  ;;  %v663_v56 = vsub.f32 1.0, %v639_v37  ;;  %v640_v22 = vld [vmem:[%s15665_s1 + $0x11] sm:$0x1]  ;;  %v13288_v37 = vpop.permute.xlu0 %3381  ;;  %v686_v59 = vmul.f32 -1e+09, %v662_v49 }
 0x3a2   :  { %15769 = vst [vmem:[#allocation42_spill] sm:$0xff] %v13270_v41  ;;  %v13273_v54 = vadd.f32 %v13252_v33, %v2554_v45  ;;  %15770 = vst [vmem:[#allocation43_spill] sm:$0xff] %v13276_v43  ;;  %v13291_v33 = vrot.slane %v684_v17, %v13142_v14  ;;  %v13302_v62 = vrot.slane %v685_v20, %v13142_v14  ;;  %v642_v17 = vld [vmem:[%s15665_s1 + $0x13] sm:$0x1]  ;;  %v643_v49 = vld [vmem:[%s15665_s1 + $0x14] sm:$0x1] }
 0x3a3   :  { %v1616_v44 = vpop.f32.mrb[44].mxu1  ;;  %v1693_v38 = vpop.f32.mrb[26].mxu0  ;;  %v2764_v39 = vsel %vm2736_vm13, %v13267_v7, -inf }
 0x3a4   :  { %v2555_v55 = vmul.f32 0.25, %v1616_v44  ;;  %v2556_v42 = vmul.f32 0.25, %v1693_v38  ;;  %v11430_v5 = vpop.f32.mrb[45].mxu1  ;;  %v11435_v45 = vpop.f32.mrb[27].mxu0  ;;  %v2767_v21 = vsel %vm2736_vm13, %v13273_v54, -inf  ;;  %15771 = vst [vmem:[#allocation44_spill] sm:$0xff] %v13291_v33 }
 0x3a5   :  { %2768 = vmax.xlane.f32.xlu1 %v2767_v21  ;;  %2765 = vmax.xlane.f32.xlu0 %v2764_v39  ;;  %v687_v44 = vmul.f32 -1e+09, %v663_v56  ;;  %v664_v5 = vsub.f32 1.0, %v640_v22  ;;  %v13299_v45 = vpop.permute.xlu1 %3609  ;;  %15773 = vst [vmem:[#allocation46_spill] sm:$0xff] %v13302_v62  ;;  %v665_v21 = vsub.f32 1.0, %v641_v53  ;;  %v13320_v61 = vpop.permute.xlu0 %3533 }
 0x3a6   :  { %v13294_v4 = vadd.f32 %v13270_v41, %v2555_v55  ;;  %v13297_v38 = vadd.f32 %v13276_v43, %v2556_v42  ;;  %15772 = vst [vmem:[#allocation45_spill] sm:$0xff] %v13299_v45  ;;  %v13318_v41 = vrot.slane %v686_v59, %v13142_v14 }
 0x3a7   :  { %v1770_v36 = vpop.f32.mrb[46].mxu1  ;;  %v688_v58 = vmul.f32 -1e+09, %v664_v5  ;;  %v13326_v23 = vrot.slane %v687_v44, %v13142_v14 }
 0x3a8   :  { %v2557_v55 = vmul.f32 0.25, %v1770_v36  ;;  %v1847_v42 = vpop.f32.mrb[28].mxu0  ;;  %v11440_v39 = vpop.f32.mrb[47].mxu1  ;;  %v2773_v56 = vsel %vm2736_vm13, %v13297_v38, -inf  ;;  %v2770_v22 = vsel %vm2736_vm13, %v13294_v4, -inf  ;;  %15774 = vst [vmem:[#allocation47_spill] sm:$0xff] %v13318_v41 }
 0x3a9   :  { %v2558_v20 = vmul.f32 0.25, %v1847_v42  ;;  %v11445_v43 = vpop.f32.mrb[29].mxu0  ;;  %2774 = vmax.xlane.f32.xlu1 %v2773_v56  ;;  %2771 = vmax.xlane.f32.xlu0 %v2770_v22  ;;  %v666_v36 = vsub.f32 1.0, %v642_v17  ;;  %15775 = vst [vmem:[#allocation48_spill] sm:$0xff] %v13326_v23  ;;  %v667_v42 = vsub.f32 1.0, %v643_v49 }
 0x3aa   :  { %v13315_v53 = vadd.f32 %v13291_v33, %v2557_v55  ;;  %v689_v43 = vmul.f32 -1e+09, %v665_v21  ;;  %v644_v55 = vld [vmem:[%s15665_s1 + $0x15] sm:$0x1]  ;;  %v645_v17 = vld [vmem:[%s15665_s1 + $0x16] sm:$0x1] }
 0x3ab   :  { %v13323_v39 = vadd.f32 %v13302_v62, %v2558_v20  ;;  %v1924_v29 = vpop.f32.mrb[48].mxu1  ;;  %v13336_v20 = vpop.permute.xlu1 %3761  ;;  %v668_v33 = vsub.f32 1.0, %v644_v55 }
 0x3ac   :  { %v2559_v56 = vmul.f32 0.25, %v1924_v29  ;;  %v2001_v59 = vpop.f32.mrb[30].mxu0  ;;  %v11450_v22 = vpop.f32.mrb[49].mxu1  ;;  %v2776_v5 = vsel %vm2736_vm13, %v13315_v53, -inf  ;;  %15776 = vst [vmem:[#allocation49_spill] sm:$0xff] %v13336_v20  ;;  %v13344_v29 = vrot.slane %v688_v58, %v13142_v14  ;;  %v669_v20 = vsub.f32 1.0, %v645_v17 }
 0x3ad   :  { %v2560_v44 = vmul.f32 0.25, %v2001_v59  ;;  %v11455_v62 = vpop.f32.mrb[31].mxu0  ;;  %v2779_v21 = vsel %vm2736_vm13, %v13323_v39, -inf  ;;  %2777 = vmax.xlane.f32.xlu0 %v2776_v5  ;;  %v690_v22 = vmul.f32 -1e+09, %v666_v36  ;;  %v13350_v59 = vrot.slane %v689_v43, %v13142_v14  ;;  %v13359_v43 = vpop.permute.xlu0 %3685 }
 0x3ae   :  { %v13341_v49 = vadd.f32 %v13318_v41, %v2559_v56  ;;  %2780 = vmax.xlane.f32.xlu1 %v2779_v21  ;;  %15777 = vst [vmem:[#allocation50_spill] sm:$0xff] %v13344_v29  ;;  %v691_v62 = vmul.f32 -1e+09, %v667_v42  ;;  %v646_v56 = vld [vmem:[%s15665_s1 + $0x17] sm:$0x1]  ;;  %15779 = vst [vmem:[#allocation52_spill] sm:$0xff] %v13359_v43 }
 0x3af   :  { %v13347_v16 = vadd.f32 %v13326_v23, %v2560_v44  ;;  %v2078_v26 = vpop.f32.mrb[50].mxu1  ;;  %15778 = vst [vmem:[#allocation51_spill] sm:$0xff] %v13350_v59  ;;  %v13365_v17 = vrot.slane %v690_v22, %v13142_v14  ;;  %v13367_v23 = vpop.permute.xlu1 %3913  ;;  %s12391_s1 = smov 48  }
 0x3b0   :  { %v2561_v5 = vmul.f32 0.25, %v2078_v26  ;;  %v2155_v21 = vpop.f32.mrb[32].mxu0  ;;  %v11460_v41 = vpop.f32.mrb[51].mxu1  ;;  %v2782_v58 = vsel %vm2736_vm13, %v13341_v49, -inf  ;;  %v692_v26 = vmul.f32 -1e+09, %v668_v33  ;;  %v13373_v10 = vrot.slane %v691_v62, %v13142_v14 }
 0x3b1   :  { %v2562_v36 = vmul.f32 0.25, %v2155_v21  ;;  %v11465_v55 = vpop.f32.mrb[33].mxu0  ;;  %v2785_v44 = vsel %vm2736_vm13, %v13347_v16, -inf  ;;  %2783 = vmax.xlane.f32.xlu0 %v2782_v58  ;;  %15780 = vst [vmem:[#allocation53_spill] sm:$0xff] %v13365_v17  ;;  %v670_v41 = vsub.f32 1.0, %v646_v56  ;;  %15781 = vst [vmem:[#allocation54_spill] sm:$0xff] %v13367_v23 }
 0x3b2   :  { %v13362_v42 = vadd.f32 %v13344_v29, %v2561_v5  ;;  %2786 = vmax.xlane.f32.xlu1 %v2785_v44  ;;  %15782 = vst [vmem:[#allocation55_spill] sm:$0xff] %v13373_v10  ;;  %v693_v58 = vmul.f32 -1e+09, %v669_v20  ;;  %v13383_v62 = vrot.slane %v692_v26, %v13142_v14 }
 0x3b3   :  { %v13370_v21 = vadd.f32 %v13350_v59, %v2562_v36  ;;  %v2232_v55 = vpop.f32.mrb[52].mxu1  ;;  %v694_v20 = vmul.f32 -1e+09, %v670_v41  ;;  %v13395_v41 = vpop.permute.xlu0 %3837 }
 0x3b4   :  { %v2563_v43 = vmul.f32 0.25, %v2232_v55  ;;  %v2309_v45 = vpop.f32.mrb[34].mxu0  ;;  %v11470_v5 = vpop.f32.mrb[53].mxu1  ;;  %v2788_v44 = vsel %vm2736_vm13, %v13362_v42, -inf  ;;  %15783 = vst [vmem:[#allocation56_spill] sm:$0xff] %v13383_v62  ;;  %15785 = vst [vmem:[#allocation58_spill] sm:$0xff] %v13395_v41 }
 0x3b5   :  { %v2564_v22 = vmul.f32 0.25, %v2309_v45  ;;  %v11475_v29 = vpop.f32.mrb[35].mxu0  ;;  %v2791_v33 = vsel %vm2736_vm13, %v13370_v21, -inf  ;;  %2789 = vmax.xlane.f32.xlu0 %v2788_v44  ;;  %v13389_v5 = vrot.slane %v693_v58, %v13142_v14  ;;  %v13403_v58 = vrot.slane %v694_v20, %v13142_v14 }
 0x3b6   :  { %v13380_v56 = vadd.f32 %v13365_v17, %v2563_v43  ;;  %2792 = vmax.xlane.f32.xlu1 %v2791_v33 }
 0x3b7   :  { %v13386_v36 = vadd.f32 %v13373_v10, %v2564_v22  ;;  %v2386_v55 = vpop.f32.mrb[54].mxu1  ;;  %15784 = vst [vmem:[#allocation57_spill] sm:$0xff] %v13389_v5  ;;  %v13397_v22 = vpop.permute.xlu1 %3989  ;;  %15787 = vst [vmem:[#allocation60_spill] sm:$0xff] %v13403_v58 }
 0x3b8   :  { %v2565_v45 = vmul.f32 0.25, %v2386_v55  ;;  %v2463_v29 = vpop.f32.mrb[36].mxu0  ;;  %v11480_v59 = vpop.f32.mrb[55].mxu1  ;;  %v2794_v44 = vsel %vm2736_vm13, %v13380_v56, -inf  ;;  %15786 = vst [vmem:[#allocation59_spill] sm:$0xff] %v13397_v22 }
 0x3b9   :  { %v2566_v43 = vmul.f32 0.25, %v2463_v29  ;;  %v11485_v17 = vpop.f32.mrb[37].mxu0  ;;  %v2797_v26 = vsel %vm2736_vm13, %v13386_v36, -inf  ;;  %2795 = vmax.xlane.f32.xlu0 %v2794_v44 }
 0x3ba   :  { %v13400_v33 = vadd.f32 %v13383_v62, %v2565_v45  ;;  %2798 = vmax.xlane.f32.xlu1 %v2797_v26  ;;  %v13415_v26 = vpop.permute.xlu0 %4065 }
 0x3bb   :  { %v13406_v59 = vadd.f32 %v13389_v5, %v2566_v43  ;;  %v2540_v55 = vpop.f32.mrb[56].mxu1  ;;  %15788 = vst [vmem:[#allocation61_spill] sm:$0xff] %v13415_v26  ;;  %v13417_v14 = vpop.permute.xlu1 %4141 }
 0x3bc   :  { %v2567_v17 = vmul.f32 0.25, %v2540_v55  ;;  %v11490_v29 = vpop.f32.mrb[57].mxu1  ;;  %v2800_v44 = vsel %vm2736_vm13, %v13400_v33, -inf  ;;  %15789 = vst [vmem:[#allocation62_spill] sm:$0xff] %v13417_v14 }
 0x3bd   :  { %v2803_v10 = vsel %vm2736_vm13, %v13406_v59, -inf  ;;  %2801 = vmax.xlane.f32.xlu0 %v2800_v44 }
 0x3be   :  { %v13413_v45 = vadd.f32 %v13403_v58, %v2567_v17  ;;  %2804 = vmax.xlane.f32.xlu1 %v2803_v10  ;;  %v13421_v43 = vpop.permute.xlu0 %4217 }
 0x3bf   :  { %15790 = vst [vmem:[#allocation63_spill] sm:$0xff] %v13421_v43  ;;  %v13423_v55 = vpop.permute.xlu1 %4293 }
 0x3c0   :  { %v2806_v20 = vsel %vm2736_vm13, %v13413_v45, -inf  ;;  %15791 = vst [vmem:[#allocation64_spill] sm:$0xff] %v13423_v55 }
 0x3c1   :  { %2807 = vmax.xlane.f32.xlu0 %v2806_v20 }
 0x3c2   :  { %v13425_v29 = vpop.permute.xlu0 %4369 }
 0x3c3   :  { %15792 = vst [vmem:[#allocation65_spill] sm:$0xff] %v13425_v29  ;;  %v13427_v5 = vpop.permute.xlu1 %4445 }
 0x3c4   :  { %15793 = vst [vmem:[#allocation66_spill] sm:$0xff] %v13427_v5 }
 0x3c6   :  { %v13429_v44 = vpop.permute.xlu0 %4521 }
 0x3c7   :  { %15794 = vst [vmem:[#allocation67_spill] sm:$0xff] %v13429_v44  ;;  %v13431_v17 = vpop.permute.xlu1 %4749 }
 0x3c8   :  { %15795 = vst [vmem:[#allocation68_spill] sm:$0xff] %v13431_v17 }
 0x3ca   :  { %v13433_v10 = vpop.permute.xlu0 %4673 }
 0x3cb   :  { %15796 = vst [vmem:[#allocation69_spill] sm:$0xff] %v13433_v10  ;;  %v13435_v58 = vpop.permute.xlu1 %4905 }
 0x3cc   :  { %15797 = vst [vmem:[#allocation70_spill] sm:$0xff] %v13435_v58 }
 0x3ce   :  { %v13437_v62 = vpop.permute.xlu0 %4827 }
 0x3cf   :  { %15798 = vst [vmem:[#allocation71_spill] sm:$0xff] %v13437_v62  ;;  %v13439_v14 = vpop.permute.xlu1 %4903 }
 0x3d0   :  { %15799 = vst [vmem:[#allocation72_spill] sm:$0xff] %v13439_v14 }
 0x3d2   :  { %v13441_v20 = vpop.permute.xlu0 %4825 }
 0x3d3   :  { %15800 = vst [vmem:[#allocation73_spill] sm:$0xff] %v13441_v20  ;;  %v13443_v43 = vpop.permute.xlu1 %5061 }
 0x3d4   :  { %15801 = vst [vmem:[#allocation74_spill] sm:$0xff] %v13443_v43 }
 0x3d6   :  { %v13445_v55 = vpop.permute.xlu0 %4983 }
 0x3d7   :  { %15802 = vst [vmem:[#allocation75_spill] sm:$0xff] %v13445_v55  ;;  %v13447_v29 = vpop.permute.xlu1 %5059 }
 0x3d8   :  { %15803 = vst [vmem:[#allocation76_spill] sm:$0xff] %v13447_v29 }
 0x3da   :  { %v13449_v5 = vpop.permute.xlu0 %4981 }
 0x3db   :  { %15804 = vst [vmem:[#allocation77_spill] sm:$0xff] %v13449_v5  ;;  %v13451_v44 = vpop.permute.xlu1 %5217 }
 0x3dc   :  { %15805 = vst [vmem:[#allocation78_spill] sm:$0xff] %v13451_v44 }
 0x3de   :  { %v13453_v17 = vpop.permute.xlu0 %5139 }
 0x3df   :  { %15806 = vst [vmem:[#allocation79_spill] sm:$0xff] %v13453_v17  ;;  %v13455_v10 = vpop.permute.xlu1 %5215 }
 0x3e0   :  { %15807 = vst [vmem:[#allocation80_spill] sm:$0xff] %v13455_v10 }
 0x3e2   :  { %v13457_v58 = vpop.permute.xlu0 %5137 }
 0x3e3   :  { %15808 = vst [vmem:[#allocation81_spill] sm:$0xff] %v13457_v58  ;;  %v13459_v62 = vpop.permute.xlu1 %5373 }
 0x3e4   :  { %15809 = vst [vmem:[#allocation82_spill] sm:$0xff] %v13459_v62 }
 0x3e6   :  { %v13461_v14 = vpop.permute.xlu0 %5295 }
 0x3e7   :  { %15810 = vst [vmem:[#allocation83_spill] sm:$0xff] %v13461_v14  ;;  %v13463_v20 = vpop.permute.xlu1 %5371 }
 0x3e8   :  { %15811 = vst [vmem:[#allocation84_spill] sm:$0xff] %v13463_v20 }
 0x3ea   :  { %v13465_v43 = vpop.permute.xlu0 %5293 }
 0x3eb   :  { %15812 = vst [vmem:[#allocation85_spill] sm:$0xff] %v13465_v43  ;;  %v13467_v55 = vpop.permute.xlu1 %5529 }
 0x3ec   :  { %15813 = vst [vmem:[#allocation86_spill] sm:$0xff] %v13467_v55 }
 0x3ee   :  { %v13469_v29 = vpop.permute.xlu0 %5451 }
 0x3ef   :  { %15814 = vst [vmem:[#allocation87_spill] sm:$0xff] %v13469_v29  ;;  %v13471_v5 = vpop.permute.xlu1 %5527 }
 0x3f0   :  { %15815 = vst [vmem:[#allocation88_spill] sm:$0xff] %v13471_v5 }
 0x3f2   :  { %v13473_v44 = vpop.permute.xlu0 %5449 }
 0x3f3   :  { %15816 = vst [vmem:[#allocation89_spill] sm:$0xff] %v13473_v44  ;;  %v13475_v17 = vpop.permute.xlu1 %5685 }
 0x3f4   :  { %15817 = vst [vmem:[#allocation90_spill] sm:$0xff] %v13475_v17 }
 0x3f6   :  { %v13477_v10 = vpop.permute.xlu0 %5607 }
 0x3f7   :  { %15818 = vst [vmem:[#allocation91_spill] sm:$0xff] %v13477_v10  ;;  %v13479_v58 = vpop.permute.xlu1 %4597 }
 0x3f8   :  { %15819 = vst [vmem:[#allocation92_spill] sm:$0xff] %v13479_v58 }
 0x41e   :  { %v2742_v62 = vpop.xlane.xlu1 %2741  ;;  %v2745_v14 = vpop.xlane.xlu0 %2744 }
 0x41f   :  { %v2810_v20 = vsub.f32 %v13169_v15, %v2742_v62  ;;  %v2811_v43 = vsub.f32 %v13172_v30, %v2745_v14 }
 0x421   :  { %v2835_v26 = vmul.f32 1.442695, %v2810_v20  ;;  %v2837_v55 = vmul.f32 1.442695, %v2811_v43 }
 0x422   :  { %v2739_v22 = vpop.xlane.xlu0 %2738 }
 0x423   :  { %12042 = vpow2.f32 %v2835_v26  ;;  %v2751_v29 = vpop.xlane.xlu1 %2750  ;;  %v2809_v5 = vsub.f32 %v13182_v35, %v2739_v22 }
 0x424   :  { %12044 = vpow2.f32 %v2837_v55  ;;  %v2813_v17 = vsub.f32 %v13191_v34, %v2751_v29 }
 0x425   :  { %v2833_v44 = vmul.f32 1.442695, %v2809_v5 }
 0x426   :  { %v2841_v10 = vmul.f32 1.442695, %v2813_v17  ;;  %v2748_v23 = vpop.xlane.xlu0 %2747 }
 0x427   :  { %12046 = vpow2.f32 %v2833_v44  ;;  %v2812_v58 = vsub.f32 %v13204_v50, %v2748_v23 }
 0x428   :  { %v2757_v41 = vpop.xlane.xlu1 %2756  ;;  %12048 = vpow2.f32 %v2841_v10 }
 0x429   :  { %v2815_v15 = vsub.f32 %v13221_v52, %v2757_v41  ;;  %v2839_v30 = vmul.f32 1.442695, %v2812_v58 }
 0x42a   :  { %v2754_v62 = vpop.xlane.xlu0 %2753 }
 0x42b   :  { %v2845_v14 = vmul.f32 1.442695, %v2815_v15  ;;  %12050 = vpow2.f32 %v2839_v30  ;;  %v2814_v26 = vsub.f32 %v13218_v3, %v2754_v62 }
 0x42d   :  { %v13488_v35 = vpop.eup %12042  ;;  %v2763_v22 = vpop.xlane.xlu1 %2762  ;;  %v2843_v34 = vmul.f32 1.442695, %v2814_v26  ;;  %12052 = vpow2.f32 %v2845_v14 }
 0x42e   :  { %v13490_v5 = vpop.eup %12044  ;;  %v2817_v43 = vsub.f32 %v13244_v11, %v2763_v22  ;;  %v2760_v23 = vpop.xlane.xlu0 %2759  ;;  %v2884_v50 = vsel %vm2736_vm13, %v13488_v35, 0.0 }
 0x42f   :  { %12054 = vpow2.f32 %v2843_v34  ;;  %v2816_v52 = vsub.f32 %v13239_v28, %v2760_v23  ;;  %2885 = vadd.xlane.f32.xlu0 %v2884_v50  ;;  %v2887_v3 = vsel %vm2736_vm13, %v13490_v5, 0.0 }
 0x430   :  { %v2849_v41 = vmul.f32 1.442695, %v2817_v43  ;;  %2888 = vadd.xlane.f32.xlu1 %v2887_v3 }
 0x431   :  { %v13498_v58 = vpop.eup %12046  ;;  %v2847_v55 = vmul.f32 1.442695, %v2816_v52 }
 0x432   :  { %12056 = vpow2.f32 %v2849_v41  ;;  %v2769_v29 = vpop.xlane.xlu1 %2768  ;;  %v2766_v44 = vpop.xlane.xlu0 %2765  ;;  %v2881_v11 = vsel %vm2736_vm13, %v13498_v58, 0.0 }
 0x433   :  { %v2819_v17 = vsub.f32 %v13273_v54, %v2769_v29  ;;  %12058 = vpow2.f32 %v2847_v55  ;;  %v2818_v28 = vsub.f32 %v13267_v7, %v2766_v44  ;;  %v13504_v10 = vpop.eup %12048 }
 0x434   :  { %2882 = vadd.xlane.f32.xlu1 %v2881_v11  ;;  %v2893_v7 = vsel %vm2736_vm13, %v13504_v10, 0.0 }
 0x435   :  { %v13506_v20 = vpop.eup %12050  ;;  %v2853_v15 = vmul.f32 1.442695, %v2819_v17  ;;  %v2851_v30 = vmul.f32 1.442695, %v2818_v28 }
 0x436   :  { %v2775_v62 = vpop.xlane.xlu1 %2774  ;;  %v2772_v14 = vpop.xlane.xlu0 %2771  ;;  %v2890_v26 = vsel %vm2736_vm13, %v13506_v20, 0.0 }
 0x437   :  { %12060 = vpow2.f32 %v2853_v15  ;;  %v2821_v22 = vsub.f32 %v13297_v38, %v2775_v62  ;;  %v2820_v54 = vsub.f32 %v13294_v4, %v2772_v14  ;;  %2891 = vadd.xlane.f32.xlu0 %v2890_v26  ;;  %v13514_v34 = vpop.eup %12052 }
 0x438   :  { %12062 = vpow2.f32 %v2851_v30  ;;  %2894 = vadd.xlane.f32.xlu1 %v2893_v7  ;;  %v2899_v41 = vsel %vm2736_vm13, %v13514_v34, 0.0 }
 0x439   :  { %v13516_v43 = vpop.eup %12054  ;;  %v2857_v23 = vmul.f32 1.442695, %v2821_v22  ;;  %v2855_v50 = vmul.f32 1.442695, %v2820_v54 }
 0x43a   :  { %v2778_v52 = vpop.xlane.xlu0 %2777  ;;  %v2896_v3 = vsel %vm2736_vm13, %v13516_v43, 0.0 }
 0x43b   :  { %12064 = vpow2.f32 %v2857_v23  ;;  %v2781_v38 = vpop.xlane.xlu1 %2780  ;;  %v2822_v4 = vsub.f32 %v13315_v53, %v2778_v52  ;;  %2897 = vadd.xlane.f32.xlu0 %v2896_v3 }
 0x43c   :  { %v13523_v55 = vpop.eup %12056  ;;  %v2823_v29 = vsub.f32 %v13323_v39, %v2781_v38  ;;  %12066 = vpow2.f32 %v2855_v50  ;;  %2900 = vadd.xlane.f32.xlu1 %v2899_v41 }
 0x43d   :  { %v13526_v44 = vpop.eup %12058  ;;  %v2859_v11 = vmul.f32 1.442695, %v2822_v4  ;;  %v2905_v62 = vsel %vm2736_vm13, %v13523_v55, 0.0 }
 0x43e   :  { %v2861_v17 = vmul.f32 1.442695, %v2823_v29  ;;  %v2784_v28 = vpop.xlane.xlu0 %2783  ;;  %v2902_v15 = vsel %vm2736_vm13, %v13526_v44, 0.0 }
 0x43f   :  { %v2787_v30 = vpop.xlane.xlu1 %2786  ;;  %12068 = vpow2.f32 %v2859_v11  ;;  %v2824_v53 = vsub.f32 %v13341_v49, %v2784_v28  ;;  %2903 = vadd.xlane.f32.xlu0 %v2902_v15 }
 0x440   :  { %12070 = vpow2.f32 %v2861_v17  ;;  %v2825_v39 = vsub.f32 %v13347_v16, %v2787_v30  ;;  %2906 = vadd.xlane.f32.xlu1 %v2905_v62 }
 0x441   :  { %v13534_v14 = vpop.eup %12060  ;;  %v2863_v26 = vmul.f32 1.442695, %v2824_v53 }
 0x442   :  { %v13536_v22 = vpop.eup %12062  ;;  %v2865_v54 = vmul.f32 1.442695, %v2825_v39  ;;  %v2790_v7 = vpop.xlane.xlu0 %2789  ;;  %v2911_v49 = vsel %vm2736_vm13, %v13534_v14, 0.0 }
 0x443   :  { %v2793_v23 = vpop.xlane.xlu1 %2792  ;;  %12072 = vpow2.f32 %v2863_v26  ;;  %v2826_v50 = vsub.f32 %v13362_v42, %v2790_v7  ;;  %v2908_v52 = vsel %vm2736_vm13, %v13536_v22, 0.0 }
 0x444   :  { %12074 = vpow2.f32 %v2865_v54  ;;  %v2827_v16 = vsub.f32 %v13370_v21, %v2793_v23  ;;  %2912 = vadd.xlane.f32.xlu1 %v2911_v49  ;;  %2909 = vadd.xlane.f32.xlu0 %v2908_v52 }
 0x445   :  { %v13544_v3 = vpop.eup %12064  ;;  %v2867_v38 = vmul.f32 1.442695, %v2826_v50 }
 0x446   :  { %v13546_v4 = vpop.eup %12066  ;;  %v2869_v41 = vmul.f32 1.442695, %v2827_v16  ;;  %v2796_v29 = vpop.xlane.xlu0 %2795  ;;  %v2917_v17 = vsel %vm2736_vm13, %v13544_v3, 0.0 }
 0x447   :  { %v2799_v11 = vpop.xlane.xlu1 %2798  ;;  %12076 = vpow2.f32 %v2867_v38  ;;  %v2828_v42 = vsub.f32 %v13380_v56, %v2796_v29  ;;  %v2914_v28 = vsel %vm2736_vm13, %v13546_v4, 0.0 }
 0x448   :  { %12078 = vpow2.f32 %v2869_v41  ;;  %v2829_v21 = vsub.f32 %v13386_v36, %v2799_v11  ;;  %2918 = vadd.xlane.f32.xlu1 %v2917_v17  ;;  %2915 = vadd.xlane.f32.xlu0 %v2914_v28 }
 0x449   :  { %v13554_v15 = vpop.eup %12068  ;;  %v2871_v30 = vmul.f32 1.442695, %v2828_v42 }
 0x44a   :  { %v13556_v53 = vpop.eup %12070  ;;  %v2873_v62 = vmul.f32 1.442695, %v2829_v21  ;;  %v2802_v39 = vpop.xlane.xlu0 %2801  ;;  %v2920_v56 = vsel %vm2736_vm13, %v13554_v15, 0.0 }
 0x44b   :  { %12080 = vpow2.f32 %v2871_v30  ;;  %v2830_v26 = vsub.f32 %v13400_v33, %v2802_v39  ;;  %v2923_v54 = vsel %vm2736_vm13, %v13556_v53, 0.0  ;;  %v2805_v21 = vpop.xlane.xlu1 %2804 }
 0x44c   :  { %12082 = vpow2.f32 %v2873_v62  ;;  %2924 = vadd.xlane.f32.xlu1 %v2923_v54  ;;  %2921 = vadd.xlane.f32.xlu0 %v2920_v56  ;;  %v2831_v30 = vsub.f32 %v13406_v59, %v2805_v21 }
 0x44d   :  { %v13563_v36 = vpop.eup %12072  ;;  %v2875_v7 = vmul.f32 1.442695, %v2830_v26 }
 0x44e   :  { %v13565_v23 = vpop.eup %12074  ;;  %v2926_v50 = vsel %vm2736_vm13, %v13563_v36, 0.0  ;;  %v2808_v62 = vpop.xlane.xlu0 %2807  ;;  %v2877_v39 = vmul.f32 1.442695, %v2831_v30 }
 0x44f   :  { %12084 = vpow2.f32 %v2875_v7  ;;  %v2929_v49 = vsel %vm2736_vm13, %v13565_v23, 0.0  ;;  %v2832_v56 = vsub.f32 %v13413_v45, %v2808_v62 }
 0x450   :  { %2930 = vadd.xlane.f32.xlu1 %v2929_v49  ;;  %2927 = vadd.xlane.f32.xlu0 %v2926_v50  ;;  %12086 = vpow2.f32 %v2877_v39 }
 0x451   :  { %v13571_v33 = vpop.eup %12076  ;;  %v2879_v26 = vmul.f32 1.442695, %v2832_v56  ;;  %v15820_v56 = vmov 0.0  }
 0x452   :  { %v13573_v52 = vpop.eup %12078  ;;  %v2932_v16 = vsel %vm2736_vm13, %v13571_v33, 0.0 }
 0x453   :  { %v2935_v38 = vsel %vm2736_vm13, %v13573_v52, 0.0  ;;  %12088 = vpow2.f32 %v2879_v26 }
 0x454   :  { %2936 = vadd.xlane.f32.xlu1 %v2935_v38  ;;  %2933 = vadd.xlane.f32.xlu0 %v2932_v16 }
 0x455   :  { %v13579_v41 = vpop.eup %12080 }
 0x456   :  { %v13581_v29 = vpop.eup %12082  ;;  %v2938_v11 = vsel %vm2736_vm13, %v13579_v41, 0.0 }
 0x457   :  { %v2941_v42 = vsel %vm2736_vm13, %v13581_v29, 0.0 }
 0x458   :  { %2942 = vadd.xlane.f32.xlu1 %v2941_v42  ;;  %2939 = vadd.xlane.f32.xlu0 %v2938_v11 }
 0x459   :  { %v13587_v17 = vpop.eup %12084 }
 0x45a   :  { %v2944_v28 = vsel %vm2736_vm13, %v13587_v17, 0.0  ;;  %v13597_v54 = vpop.eup %12086 }
 0x45b   :  { %v2947_v7 = vsel %vm2736_vm13, %v13597_v54, 0.0 }
 0x45c   :  { %2945 = vadd.xlane.f32.xlu0 %v2944_v28 }
 0x45d   :  { %v13601_v50 = vpop.eup %12088 }
 0x45e   :  { %v2950_v49 = vsel %vm2736_vm13, %v13601_v50, 0.0 }
 0x469   :  { %5683 = vrot.lane.b32.xlu1 %v12822_v31, %s12390_s16 }
 0x472   :  { %5605 = vrot.lane.b32.xlu0 %v12817_v32, %s12390_s16 }
 0x48d   :  { %2948 = vadd.xlane.f32.xlu1 %v2947_v7 }
 0x491   :  { %2951 = vadd.xlane.f32.xlu0 %v2950_v49 }
 0x49e   :  { %5841 = vrot.lane.b32.xlu1 %v12832_v46, %s12389_s15 }
 0x4a2   :  { %5839 = vrot.lane.b32.xlu1 %v12832_v46, %s12390_s16 }
 0x4a6   :  { %5997 = vrot.lane.b32.xlu1 %v12842_v48, %s12389_s15 }
 0x4a7   :  { %5763 = vrot.lane.b32.xlu0 %v12827_v40, %s12389_s15 }
 0x4aa   :  { %5995 = vrot.lane.b32.xlu1 %v12842_v48, %s12390_s16 }
 0x4ab   :  { %5761 = vrot.lane.b32.xlu0 %v12827_v40, %s12390_s16 }
 0x4ae   :  { %6153 = vrot.lane.b32.xlu1 %v12852_v63, %s12389_s15 }
 0x4af   :  { %5919 = vrot.lane.b32.xlu0 %v12837_v47, %s12389_s15 }
 0x4b2   :  { %6151 = vrot.lane.b32.xlu1 %v12852_v63, %s12390_s16 }
 0x4b3   :  { %5917 = vrot.lane.b32.xlu0 %v12837_v47, %s12390_s16 }
 0x4b6   :  { %6309 = vrot.lane.b32.xlu1 %v12862_v2, %s12389_s15 }
 0x4b7   :  { %6075 = vrot.lane.b32.xlu0 %v12847_v51, %s12389_s15 }
 0x4ba   :  { %6307 = vrot.lane.b32.xlu1 %v12862_v2, %s12390_s16 }
 0x4bb   :  { %6073 = vrot.lane.b32.xlu0 %v12847_v51, %s12390_s16 }
 0x4bc   :  { %v2886_v59 = vpop.xlane.xlu0 %2885 }
 0x4bd   :  { %v2889_v45 = vpop.xlane.xlu1 %2888  ;;  %12090 = vrcp.f32 %v2886_v59 }
 0x4be   :  { %6465 = vrot.lane.b32.xlu1 %v12872_v24, %s12389_s15 }
 0x4bf   :  { %6231 = vrot.lane.b32.xlu0 %v12857_v0, %s12389_s15 }
 0x4c1   :  { %v2883_v16 = vpop.xlane.xlu1 %2882 }
 0x4c2   :  { %12092 = vrcp.f32 %v2883_v16  ;;  %6463 = vrot.lane.b32.xlu1 %v12872_v24, %s12390_s16 }
 0x4c3   :  { %6229 = vrot.lane.b32.xlu0 %v12857_v0, %s12390_s16  ;;  %12094 = vrcp.f32 %v2889_v45 }
 0x4c4   :  { %v2892_v38 = vpop.xlane.xlu0 %2891 }
 0x4c5   :  { %v2895_v11 = vpop.xlane.xlu1 %2894  ;;  %12096 = vrcp.f32 %v2892_v38 }
 0x4c6   :  { %6621 = vrot.lane.b32.xlu1 %v12882_v27, %s12389_s15  ;;  %12098 = vrcp.f32 %v2895_v11  ;;  %v15824_v11 = vld [vmem:[#allocation52_spill] sm:$0xff] }
 0x4c7   :  { %v12091_v42 = vpop.eup %12090  ;;  %6387 = vrot.lane.b32.xlu0 %v12867_v12, %s12389_s15 }
 0x4c8   :  { %v2898_v28 = vpop.xlane.xlu0 %2897  ;;  %v2978_v21 = vmul.f32 %v12091_v42, %v13488_v35 }
 0x4c9   :  { %v2901_v30 = vpop.xlane.xlu1 %2900  ;;  %12100 = vrcp.f32 %v2898_v28 }
 0x4ca   :  { %6619 = vrot.lane.b32.xlu1 %v12882_v27, %s12390_s16  ;;  %11499 = vmatmul.mubr.msk.f32.vlgmr.msra.gmra.mrb[58].mxu1 %vm2736_vm13, %v2978_v21  ;;  %12102 = vrcp.f32 %v2901_v30 }
 0x4cb   :  { %6385 = vrot.lane.b32.xlu0 %v12867_v12, %s12390_s16  ;;  %11507 = vmatpush3.msra.mxu1 %v13249_v6 }
 0x4cc   :  { %v12093_v62 = vpop.eup %12092  ;;  %v2904_v39 = vpop.xlane.xlu0 %2903  ;;  %11508 = vmatprep.mubr.msk.f32.mxu1 %vm12386_vm11, %v15820_v56  ;;  %11516 = vmatprep.subr.mxu1 %v15820_v56 }
 0x4cd   :  { %v2907_v35 = vpop.xlane.xlu1 %2906  ;;  %12104 = vrcp.f32 %v2904_v39  ;;  %v2977_v26 = vmul.f32 %v12093_v62, %v13498_v58  ;;  %v12095_v7 = vpop.eup %12094 }
 0x4ce   :  { %7009 = vrot.lane.b32.xlu1 %v12769_v1, %s12391_s1  ;;  %v2979_v45 = vmul.f32 %v12095_v7, %v13490_v5  ;;  %12106 = vrcp.f32 %v2907_v35  ;;  %v15825_v35 = vld [vmem:[#allocation49_spill] sm:$0xff] }
 0x4cf   :  { %v12097_v49 = vpop.eup %12096  ;;  %11494 = vmatmul.mubr.msk.f32.vlgmr.msra.gmra.mrb[38].mxu0 %vm2736_vm13, %v2977_v26  ;;  %6543 = vrot.lane.b32.xlu0 %v12877_v25, %s12389_s15 }
 0x4d0   :  { %11502 = vmatpush3.msra.mxu0 %v13199_v19  ;;  %11503 = vmatprep.mubr.msk.f32.mxu0 %vm12386_vm11, %v15820_v56  ;;  %v2980_v6 = vmul.f32 %v12097_v49, %v13506_v20  ;;  %v12099_v1 = vpop.eup %12098 }
 0x4d1   :  { %v2913_v59 = vpop.xlane.xlu1 %2912  ;;  %v2910_v58 = vpop.xlane.xlu0 %2909  ;;  %11511 = vmatprep.subr.mxu0 %v15820_v56 }
 0x4d2   :  { %7161 = vrot.lane.b32.xlu1 %v12777_v9, %s12391_s1  ;;  %11509 = vmatmul.mubr.msk.f32.vlgmr.msra.gmra.mrb[60].mxu1 %vm2736_vm13, %v2980_v6  ;;  %12108 = vrcp.f32 %v2910_v58  ;;  %v2981_v9 = vmul.f32 %v12099_v1, %v13504_v10  ;;  %v15830_v58 = vld [vmem:[#allocation59_spill] sm:$0xff] }
 0x4d3   :  { %v12101_v16 = vpop.eup %12100  ;;  %11504 = vmatmul.mubr.msk.f32.vlgmr.msra.gmra.mrb[40].mxu0 %vm2736_vm13, %v2979_v45  ;;  %6541 = vrot.lane.b32.xlu0 %v12877_v25, %s12390_s16  ;;  %12110 = vrcp.f32 %v2913_v59 }
 0x4d4   :  { %11512 = vmatpush3.msra.mxu0 %v13233_v57  ;;  %11517 = vmatpush3.msra.mxu1 %v13288_v37  ;;  %v2982_v20 = vmul.f32 %v12101_v16, %v13516_v43  ;;  %v12103_v38 = vpop.eup %12102 }
 0x4d5   :  { %v2919_v19 = vpop.xlane.xlu1 %2918  ;;  %v2916_v5 = vpop.xlane.xlu0 %2915  ;;  %11513 = vmatprep.mubr.msk.f32.mxu0 %vm12386_vm11, %v15820_v56  ;;  %11518 = vmatprep.mubr.msk.f32.mxu1 %vm12386_vm11, %v15820_v56  ;;  %v2983_v10 = vmul.f32 %v12103_v38, %v13514_v34 }
 0x4d6   :  { %7313 = vrot.lane.b32.xlu1 %v12787_v13, %s12391_s1  ;;  %11521 = vmatprep.subr.mxu0 %v15820_v56  ;;  %12112 = vrcp.f32 %v2916_v5  ;;  %v15831_v5 = vld [vmem:[#allocation61_spill] sm:$0xff] }
 0x4d7   :  { %v12105_v57 = vpop.eup %12104  ;;  %11526 = vmatprep.subr.mxu1 %v15820_v56  ;;  %11514 = vmatmul.mubr.msk.f32.vlgmr.msra.gmra.mrb[42].mxu0 %vm2736_vm13, %v2981_v9  ;;  %12114 = vrcp.f32 %v2919_v19  ;;  %v15833_v9 = vld [vmem:[#allocation62_spill] sm:$0xff] }
 0x4d8   :  { %11522 = vmatpush3.msra.mxu0 %v13264_v60  ;;  %7085 = vrot.lane.b32.xlu0 %v12772_v8, %s12391_s1  ;;  %v2984_v43 = vmul.f32 %v12105_v57, %v13526_v44  ;;  %v12107_v8 = vpop.eup %12106  ;;  %v15821_v60 = vld [vmem:[#allocation45_spill] sm:$0xff] }
 0x4d9   :  { %11519 = vmatmul.mubr.msk.f32.vlgmr.msra.gmra.mrb[62].mxu1 %vm2736_vm13, %v2982_v20  ;;  %v2922_v37 = vpop.xlane.xlu0 %2921  ;;  %11523 = vmatprep.mubr.msk.f32.mxu0 %vm12386_vm11, %v15820_v56  ;;  %v2925_v13 = vpop.xlane.xlu1 %2924  ;;  %v15823_v44 = vld [vmem:[#allocation29_spill] sm:$0xff]  ;;  %v2985_v42 = vmul.f32 %v12107_v8, %v13523_v55  ;;  %v15826_v55 = vld [vmem:[#allocation27_spill] sm:$0xff] }
 0x4da   :  { %11527 = vmatpush3.msra.mxu1 %v13320_v61  ;;  %7465 = vrot.lane.b32.xlu1 %v12797_v18, %s12391_s1  ;;  %12116 = vrcp.f32 %v2922_v37  ;;  %v15822_v18 = vld [vmem:[#allocation26_spill] sm:$0xff] }
 0x4db   :  { %11528 = vmatprep.mubr.msk.f32.mxu1 %vm12386_vm11, %v15820_v56  ;;  %11531 = vmatprep.subr.mxu0 %v15820_v56  ;;  %12118 = vrcp.f32 %v2925_v13 }
 0x4dc   :  { %11536 = vmatprep.subr.mxu1 %v15820_v56  ;;  %11524 = vmatmul.mubr.msk.f32.vlgmr.msra.gmra.mrb[44].mxu0 %vm2736_vm13, %v2983_v10  ;;  %v12109_v61 = vpop.eup %12108 }
 0x4dd   :  { %11532 = vmatpush3.msra.mxu0 %v15821_v60  ;;  %7237 = vrot.lane.b32.xlu0 %v15822_v18, %s12391_s1  ;;  %v2928_v34 = vpop.xlane.xlu0 %2927  ;;  %v2986_v28 = vmul.f32 %v12109_v61, %v13536_v22  ;;  %v12111_v21 = vpop.eup %12110  ;;  %v15827_v22 = vld [vmem:[#allocation58_spill] sm:$0xff] }
 0x4de   :  { %11529 = vmatmul.mubr.msk.f32.vlgmr.msra.gmra.mrb[64].mxu1 %vm2736_vm13, %v2984_v43  ;;  %7617 = vrot.lane.b32.xlu1 %v15823_v44, %s12391_s1  ;;  %v2931_v30 = vpop.xlane.xlu1 %2930  ;;  %12120 = vrcp.f32 %v2928_v34  ;;  %v2987_v26 = vmul.f32 %v12111_v21, %v13534_v14  ;;  %v15829_v14 = vld [vmem:[#allocation28_spill] sm:$0xff] }
 0x4df   :  { %11537 = vmatpush3.msra.mxu1 %v15824_v11  ;;  %11533 = vmatprep.mubr.msk.f32.mxu0 %vm12386_vm11, %v15820_v56  ;;  %12122 = vrcp.f32 %v2931_v30 }
 0x4e0   :  { %11538 = vmatprep.mubr.msk.f32.mxu1 %vm12386_vm11, %v15820_v56  ;;  %11541 = vmatprep.subr.mxu0 %v15820_v56  ;;  %v12113_v62 = vpop.eup %12112 }
 0x4e1   :  { %11546 = vmatprep.subr.mxu1 %v15820_v56  ;;  %11534 = vmatmul.mubr.msk.f32.vlgmr.msra.gmra.mrb[46].mxu0 %vm2736_vm13, %v2985_v42  ;;  %v2934_v39 = vpop.xlane.xlu0 %2933  ;;  %v2988_v7 = vmul.f32 %v12113_v62, %v13546_v4  ;;  %v12115_v49 = vpop.eup %12114  ;;  %v15842_v62 = vld [vmem:[#allocation71_spill] sm:$0xff] }
 0x4e2   :  { %11542 = vmatpush3.msra.mxu0 %v15825_v35  ;;  %7389 = vrot.lane.b32.xlu0 %v15826_v55, %s12391_s1  ;;  %v2937_v59 = vpop.xlane.xlu1 %2936  ;;  %12124 = vrcp.f32 %v2934_v39  ;;  %v2989_v45 = vmul.f32 %v12115_v49, %v13544_v3  ;;  %v15832_v3 = vld [vmem:[#allocation30_spill] sm:$0xff] }
 0x4e3   :  { %11539 = vmatmul.mubr.msk.f32.vlgmr.msra.gmra.mrb[66].mxu1 %vm2736_vm13, %v2986_v28  ;;  %7769 = vrot.lane.b32.xlu1 %v12817_v32, %s12391_s1  ;;  %v15828_v32 = vld [vmem:[#allocation54_spill] sm:$0xff]  ;;  %12126 = vrcp.f32 %v2937_v59 }
 0x4e4   :  { %11547 = vmatpush3.msra.mxu1 %v15827_v22  ;;  %11543 = vmatprep.mubr.msk.f32.mxu0 %vm12386_vm11, %v15820_v56  ;;  %v12117_v6 = vpop.eup %12116  ;;  %v15844_v22 = vld [vmem:[#allocation70_spill] sm:$0xff] }
 0x4e5   :  { %11548 = vmatprep.mubr.msk.f32.mxu1 %vm12386_vm11, %v15820_v56  ;;  %11551 = vmatprep.subr.mxu0 %v15820_v56  ;;  %v2940_v4 = vpop.xlane.xlu0 %2939  ;;  %v2990_v1 = vmul.f32 %v12117_v6, %v13554_v15  ;;  %v12119_v16 = vpop.eup %12118  ;;  %v15847_v6 = vld [vmem:[#allocation77_spill] sm:$0xff]  ;;  %v15848_v59 = vld [vmem:[#allocation74_spill] sm:$0xff] }
 0x4e6   :  { %11556 = vmatprep.subr.mxu1 %v15820_v56  ;;  %11544 = vmatmul.mubr.msk.f32.vlgmr.msra.gmra.mrb[48].mxu0 %vm2736_vm13, %v2987_v26  ;;  %12128 = vrcp.f32 %v2940_v4  ;;  %v2991_v20 = vmul.f32 %v12119_v16, %v13556_v53  ;;  %v15835_v53 = vld [vmem:[#allocation64_spill] sm:$0xff]  ;;  %v15845_v26 = vld [vmem:[#allocation75_spill] sm:$0xff] }
 0x4e7   :  { %11552 = vmatpush3.msra.mxu0 %v15828_v32  ;;  %7541 = vrot.lane.b32.xlu0 %v15829_v14, %s12391_s1  ;;  %v15849_v32 = vld [vmem:[#allocation79_spill] sm:$0xff] }
 0x4e8   :  { %11549 = vmatmul.mubr.msk.f32.vlgmr.msra.gmra.mrb[68].mxu1 %vm2736_vm13, %v2988_v7  ;;  %7921 = vrot.lane.b32.xlu1 %v12827_v40, %s12391_s1  ;;  %v12121_v19 = vpop.eup %12120  ;;  %v2943_v40 = vpop.xlane.xlu1 %2942  ;;  %v15853_v16 = vld [vmem:[#allocation83_spill] sm:$0xff] }
 0x4e9   :  { %11557 = vmatpush3.msra.mxu1 %v15830_v58  ;;  %11553 = vmatprep.mubr.msk.f32.mxu0 %vm12386_vm11, %v15820_v56  ;;  %v2946_v15 = vpop.xlane.xlu0 %2945  ;;  %v2992_v38 = vmul.f32 %v12121_v19, %v13563_v36  ;;  %v12123_v57 = vpop.eup %12122  ;;  %12130 = vrcp.f32 %v2943_v40  ;;  %v15850_v58 = vld [vmem:[#allocation76_spill] sm:$0xff] }
 0x4ea   :  { %11558 = vmatprep.mubr.msk.f32.mxu1 %vm12386_vm11, %v15820_v56  ;;  %11561 = vmatprep.subr.mxu0 %v15820_v56  ;;  %12132 = vrcp.f32 %v2946_v15  ;;  %v2993_v36 = vmul.f32 %v12123_v57, %v13565_v23  ;;  %v15837_v23 = vld [vmem:[#allocation66_spill] sm:$0xff]  ;;  %v15858_v57 = vld [vmem:[#allocation84_spill] sm:$0xff] }
 0x4eb   :  { %11566 = vmatprep.subr.mxu1 %v15820_v56  ;;  %11554 = vmatmul.mubr.msk.f32.vlgmr.msra.gmra.mrb[50].mxu0 %vm2736_vm13, %v2989_v45  ;;  %v15851_v45 = vld [vmem:[#allocation81_spill] sm:$0xff]  ;;  %v15856_v15 = vld [vmem:[#allocation82_spill] sm:$0xff] }
 0x4ec   :  { %11562 = vmatpush3.msra.mxu0 %v15831_v5  ;;  %7693 = vrot.lane.b32.xlu0 %v15832_v3, %s12391_s1  ;;  %v12125_v37 = vpop.eup %12124  ;;  %v15854_v5 = vld [vmem:[#allocation80_spill] sm:$0xff]  ;;  %v15855_v3 = vld [vmem:[#allocation85_spill] sm:$0xff] }
 0x4ed   :  { %11559 = vmatmul.mubr.msk.f32.vlgmr.msra.gmra.mrb[70].mxu1 %vm2736_vm13, %v2990_v1  ;;  %7997 = vrot.lane.b32.xlu1 %v12832_v46, %s12391_s1  ;;  %v15834_v46 = vld [vmem:[#allocation63_spill] sm:$0xff]  ;;  %v2994_v13 = vmul.f32 %v12125_v37, %v13571_v33  ;;  %v12127_v10 = vpop.eup %12126  ;;  %v15852_v1 = vld [vmem:[#allocation78_spill] sm:$0xff]  ;;  %v15859_v37 = vld [vmem:[#allocation89_spill] sm:$0xff] }
 0x4ee   :  { %11567 = vmatpush3.msra.mxu1 %v15833_v9  ;;  %11563 = vmatprep.mubr.msk.f32.mxu0 %vm12386_vm11, %v15820_v56  ;;  %v2995_v33 = vmul.f32 %v12127_v10, %v13573_v52  ;;  %v15839_v52 = vld [vmem:[#allocation92_spill] sm:$0xff]  ;;  %v15857_v9 = vld [vmem:[#allocation87_spill] sm:$0xff] }
 0x4ef   :  { %11568 = vmatprep.mubr.msk.f32.mxu1 %vm12386_vm11, %v15820_v56  ;;  %11571 = vmatprep.subr.mxu0 %v15820_v56  ;;  %v15862_v10 = vld [vmem:[#allocation88_spill] sm:$0xff] }
 0x4f0   :  { %11576 = vmatprep.subr.mxu1 %v15820_v56  ;;  %11564 = vmatmul.mubr.msk.f32.vlgmr.msra.gmra.mrb[52].mxu0 %vm2736_vm13, %v2991_v20 }
 0x4f1   :  { %11572 = vmatpush3.msra.mxu0 %v15834_v46  ;;  %7845 = vrot.lane.b32.xlu0 %v12822_v31, %s12391_s1  ;;  %v12129_v31 = vpop.eup %12128  ;;  %v15860_v46 = vld [vmem:[#allocation86_spill] sm:$0xff] }
 0x4f2   :  { %11569 = vmatmul.mubr.msk.f32.vlgmr.msra.gmra.mrb[72].mxu1 %vm2736_vm13, %v2992_v38  ;;  %8149 = vrot.lane.b32.xlu1 %v12842_v48, %s12391_s1  ;;  %v15836_v48 = vld [vmem:[#allocation65_spill] sm:$0xff]  ;;  %v2996_v43 = vmul.f32 %v12129_v31, %v13579_v41  ;;  %v15863_v31 = vld [vmem:[#allocation90_spill] sm:$0xff] }
 0x4f3   :  { %11577 = vmatpush3.msra.mxu1 %v15835_v53  ;;  %11573 = vmatprep.mubr.msk.f32.mxu0 %vm12386_vm11, %v15820_v56  ;;  %v12131_v8 = vpop.eup %12130  ;;  %v15861_v53 = vld [vmem:[#allocation91_spill] sm:$0xff] }
 0x4f4   :  { %11578 = vmatprep.mubr.msk.f32.mxu1 %vm12386_vm11, %v15820_v56  ;;  %11581 = vmatprep.subr.mxu0 %v15820_v56  ;;  %v2997_v41 = vmul.f32 %v12131_v8, %v13581_v29  ;;  %v13825_v29 = vpop.permute.xlu1 %5683 }
 0x4f5   :  { %11586 = vmatprep.subr.mxu1 %v15820_v56  ;;  %11574 = vmatmul.mubr.msk.f32.vlgmr.msra.gmra.mrb[54].mxu0 %vm2736_vm13, %v2993_v36 }
 0x4f6   :  { %11582 = vmatpush3.msra.mxu0 %v15836_v48  ;;  %8073 = vrot.lane.b32.xlu0 %v12837_v47, %s12391_s1  ;;  %v12133_v47 = vpop.eup %12132 }
 0x4f7   :  { %11579 = vmatmul.mubr.msk.f32.vlgmr.msra.gmra.mrb[74].mxu1 %vm2736_vm13, %v2994_v13  ;;  %8301 = vrot.lane.b32.xlu1 %v12852_v63, %s12391_s1  ;;  %v15838_v63 = vld [vmem:[#allocation67_spill] sm:$0xff]  ;;  %v2998_v61 = vmul.f32 %v12133_v47, %v13587_v17  ;;  %v13827_v17 = vpop.permute.xlu0 %5605 }
 0x4f8   :  { %11587 = vmatpush3.msra.mxu1 %v15837_v23  ;;  %11583 = vmatprep.mubr.msk.f32.mxu0 %vm12386_vm11, %v15820_v56 }
 0x4f9   :  { %11588 = vmatprep.mubr.msk.f32.mxu1 %vm12386_vm11, %v15820_v56  ;;  %11591 = vmatprep.subr.mxu0 %v15820_v56 }
 0x4fa   :  { %11596 = vmatprep.subr.mxu1 %v15820_v56  ;;  %11584 = vmatmul.mubr.msk.f32.vlgmr.msra.gmra.mrb[56].mxu0 %vm2736_vm13, %v2995_v33 }
 0x4fb   :  { %11592 = vmatpush3.msra.mxu0 %v15838_v63  ;;  %8225 = vrot.lane.b32.xlu0 %v12847_v51, %s12391_s1  ;;  %v15840_v51 = vld [vmem:[#allocation69_spill] sm:$0xff] }
 0x4fc   :  { %11589 = vmatmul.mubr.msk.f32.vlgmr.msra.gmra.mrb[76].mxu1 %vm2736_vm13, %v2996_v43  ;;  %8453 = vrot.lane.b32.xlu1 %v12862_v2, %s12391_s1  ;;  %v15841_v2 = vld [vmem:[#allocation68_spill] sm:$0xff] }
 0x4fd   :  { %11597 = vmatpush3.msra.mxu1 %v15839_v52  ;;  %11593 = vmatprep.mubr.msk.f32.mxu0 %vm12386_vm11, %v15820_v56 }
 0x4fe   :  { %11598 = vmatprep.mubr.msk.f32.mxu1 %vm12386_vm11, %v15820_v56  ;;  %11601 = vmatprep.subr.mxu0 %v15820_v56 }
 0x4ff   :  { %11606 = vmatprep.subr.mxu1 %v15820_v56  ;;  %11594 = vmatmul.mubr.msk.f32.vlgmr.msra.gmra.mrb[58].mxu0 %vm2736_vm13, %v2997_v41 }
 0x500   :  { %11602 = vmatpush3.msra.mxu0 %v15840_v51  ;;  %8377 = vrot.lane.b32.xlu0 %v12857_v0, %s12391_s1 }
 0x501   :  { %11599 = vmatmul.mubr.msk.f32.vlgmr.msra.gmra.mrb[78].mxu1 %vm2736_vm13, %v2998_v61  ;;  %11603 = vmatprep.mubr.msk.f32.mxu0 %vm12386_vm11, %v15820_v56 }
 0x502   :  { %11607 = vmatpush3.msra.mxu1 %v15841_v2  ;;  %11611 = vmatprep.subr.mxu0 %v15820_v56 }
 0x503   :  { %11608 = vmatprep.mubr.msk.f32.mxu1 %vm12386_vm11, %v15820_v56  ;;  %11616 = vmatprep.subr.mxu1 %v15820_v56 }
 0x51a   :  { %v2949_v60 = vpop.xlane.xlu1 %2948 }
 0x51b   :  { %12134 = vrcp.f32 %v2949_v60 }
 0x51e   :  { %v13829_v0 = vpop.permute.xlu1 %5841  ;;  %v2952_v18 = vpop.xlane.xlu0 %2951 }
 0x51f   :  { %12136 = vrcp.f32 %v2952_v18 }
 0x522   :  { %v13831_v34 = vpop.permute.xlu1 %5839  ;;  %v13833_v44 = vpop.permute.xlu0 %5763 }
 0x525   :  { %v12135_v11 = vpop.eup %12134 }
 0x526   :  { %v13835_v42 = vpop.permute.xlu1 %5997  ;;  %v13837_v28 = vpop.permute.xlu0 %5761  ;;  %v2999_v21 = vmul.f32 %v12135_v11, %v13597_v54  ;;  %v15843_v54 = vld [vmem:[#allocation73_spill] sm:$0xff] }
 0x528   :  { %11604 = vmatmul.mubr.msk.f32.vlgmr.msra.gmra.mrb[60].mxu0 %vm2736_vm13, %v2999_v21 }
 0x529   :  { %v12137_v30 = vpop.eup %12136  ;;  %11612 = vmatpush3.xpose.msk.msra.mxu0 %vm698_vm12, %v15842_v62  ;;  %11613 = vmatprep.mubr.msk.f32.mxu0 %vm12386_vm11, %v15820_v56 }
 0x52a   :  { %v13845_v39 = vpop.permute.xlu1 %5995  ;;  %v13847_v35 = vpop.permute.xlu0 %5919  ;;  %11621 = vmatprep.subr.mxu0 %v15820_v56  ;;  %v3000_v55 = vmul.f32 %v12137_v30, %v13601_v50  ;;  %v15846_v50 = vld [vmem:[#allocation72_spill] sm:$0xff] }
 0x52c   :  { %11609 = vmatmul.mubr.msk.f32.vlgmr.msra.gmra.mrb[80].mxu1 %vm2736_vm13, %v3000_v55  ;;  %11614 = vmatmul.mubr.msk.f32.vlgmr.msra.gmra.mrb[62].mxu0 %vm698_vm12, %v15843_v54 }
 0x52d   :  { %11617 = vmatpush3.xpose.msk.msra.mxu1 %vm698_vm12, %v15844_v22  ;;  %11622 = vmatpush3.xpose.msk.msra.mxu0 %vm698_vm12, %v15845_v26 }
 0x52e   :  { %v13858_v7 = vpop.permute.xlu1 %6153  ;;  %v13860_v49 = vpop.permute.xlu0 %5917  ;;  %11618 = vmatprep.mubr.msk.f32.mxu1 %vm12386_vm11, %v15820_v56  ;;  %11623 = vmatprep.mubr.msk.f32.mxu0 %vm12386_vm11, %v15820_v56 }
 0x52f   :  { %11626 = vmatprep.subr.mxu1 %v15820_v56  ;;  %11631 = vmatprep.subr.mxu0 %v15820_v56 }
 0x530   :  { %11619 = vmatmul.mubr.msk.f32.vlgmr.msra.gmra.mrb[82].mxu1 %vm698_vm12, %v15846_v50  ;;  %11624 = vmatmul.mubr.msk.f32.vlgmr.msra.gmra.mrb[64].mxu0 %vm698_vm12, %v15847_v6 }
 0x531   :  { %11627 = vmatpush3.xpose.msk.msra.mxu1 %vm698_vm12, %v15848_v59  ;;  %11632 = vmatpush3.xpose.msk.msra.mxu0 %vm698_vm12, %v15849_v32 }
 0x532   :  { %v13876_v14 = vpop.permute.xlu1 %6151  ;;  %v6076_v4 = vpop.permute.xlu0 %6075  ;;  %11628 = vmatprep.mubr.msk.f32.mxu1 %vm12386_vm11, %v15820_v56  ;;  %11633 = vmatprep.mubr.msk.f32.mxu0 %vm12386_vm11, %v15820_v56 }
 0x533   :  { %11636 = vmatprep.subr.mxu1 %v15820_v56  ;;  %11641 = vmatprep.subr.mxu0 %v15820_v56 }
 0x534   :  { %11629 = vmatmul.mubr.msk.f32.vlgmr.msra.gmra.mrb[84].mxu1 %vm698_vm12, %v15850_v58  ;;  %11634 = vmatmul.mubr.msk.f32.vlgmr.msra.gmra.mrb[66].mxu0 %vm698_vm12, %v15851_v45 }
 0x535   :  { %11637 = vmatpush3.xpose.msk.msra.mxu1 %vm698_vm12, %v15852_v1  ;;  %11642 = vmatpush3.xpose.msk.msra.mxu0 %vm698_vm12, %v15853_v16 }
 0x536   :  { %v13892_v19 = vpop.permute.xlu1 %6309  ;;  %v6074_v40 = vpop.permute.xlu0 %6073  ;;  %11638 = vmatprep.mubr.msk.f32.mxu1 %vm12386_vm11, %v15820_v56  ;;  %11643 = vmatprep.mubr.msk.f32.mxu0 %vm12386_vm11, %v15820_v56 }
 0x537   :  { %11646 = vmatprep.subr.mxu1 %v15820_v56  ;;  %11651 = vmatprep.subr.mxu0 %v15820_v56 }
 0x538   :  { %11639 = vmatmul.mubr.msk.f32.vlgmr.msra.gmra.mrb[86].mxu1 %vm698_vm12, %v15854_v5  ;;  %11644 = vmatmul.mubr.msk.f32.vlgmr.msra.gmra.mrb[68].mxu0 %vm698_vm12, %v15855_v3 }
 0x539   :  { %11647 = vmatpush3.xpose.msk.msra.mxu1 %vm698_vm12, %v15856_v15  ;;  %11652 = vmatpush3.xpose.msk.msra.mxu0 %vm698_vm12, %v15857_v9 }
 0x53a   :  { %v6308_v20 = vpop.permute.xlu1 %6307  ;;  %v6232_v38 = vpop.permute.xlu0 %6231  ;;  %11648 = vmatprep.mubr.msk.f32.mxu1 %vm12386_vm11, %v15820_v56  ;;  %11653 = vmatprep.mubr.msk.f32.mxu0 %vm12386_vm11, %v15820_v56 }
 0x53b   :  { %11656 = vmatprep.subr.mxu1 %v15820_v56  ;;  %11661 = vmatprep.subr.mxu0 %v15820_v56 }
 0x53c   :  { %11649 = vmatmul.mubr.msk.f32.vlgmr.msra.gmra.mrb[88].mxu1 %vm698_vm12, %v15858_v57  ;;  %11654 = vmatmul.mubr.msk.f32.vlgmr.msra.gmra.mrb[70].mxu0 %vm698_vm12, %v15859_v37 }
 0x53d   :  { %11657 = vmatpush3.xpose.msk.msra.mxu1 %vm698_vm12, %v15860_v46  ;;  %11662 = vmatpush3.xpose.msk.msra.mxu0 %vm698_vm12, %v15861_v53 }
 0x53e   :  { %v6230_v36 = vpop.permute.xlu0 %6229  ;;  %11658 = vmatprep.mubr.msk.f32.mxu1 %vm12386_vm11, %v15820_v56  ;;  %11663 = vmatprep.mubr.msk.f32.mxu0 %vm12386_vm11, %v15820_v56  ;;  %v6466_v13 = vpop.permute.xlu1 %6465 }
 0x53f   :  { %11666 = vmatprep.subr.mxu1 %v15820_v56  ;;  %11671 = vmatprep.subr.mxu0 %v15820_v56 }
 0x540   :  { %11659 = vmatmul.mubr.msk.f32.vlgmr.msra.gmra.mrb[90].mxu1 %vm698_vm12, %v15862_v10  ;;  %11664 = vmatmul.mubr.msk.f32.vlgmr.msra.gmra.mrb[72].mxu0 %vm698_vm12, %v13827_v17 }
 0x541   :  { %11667 = vmatpush3.xpose.msk.msra.mxu1 %vm698_vm12, %v15863_v31  ;;  %11672 = vmatpush3.xpose.msk.msra.mxu0 %vm698_vm12, %v13833_v44 }
 0x542   :  { %11668 = vmatprep.mubr.msk.f32.mxu1 %vm12386_vm11, %v15820_v56  ;;  %11673 = vmatprep.mubr.msk.f32.mxu0 %vm12386_vm11, %v15820_v56  ;;  %v6388_v48 = vpop.permute.xlu0 %6387  ;;  %v6464_v23 = vpop.permute.xlu1 %6463 }
 0x543   :  { %11676 = vmatprep.subr.mxu1 %v15820_v56  ;;  %11681 = vmatprep.subr.mxu0 %v15820_v56 }
 0x544   :  { %11669 = vmatmul.mubr.msk.f32.vlgmr.msra.gmra.mrb[92].mxu1 %vm698_vm12, %v13825_v29  ;;  %11674 = vmatmul.mubr.msk.f32.vlgmr.msra.gmra.mrb[74].mxu0 %vm698_vm12, %v13837_v28 }
 0x545   :  { %11677 = vmatpush3.xpose.msk.msra.mxu1 %vm698_vm12, %v13829_v0  ;;  %11682 = vmatpush3.xpose.msk.msra.mxu0 %vm698_vm12, %v13847_v35 }
 0x546   :  { %11678 = vmatprep.mubr.msk.f32.mxu1 %vm12386_vm11, %v15820_v56  ;;  %11683 = vmatprep.mubr.msk.f32.mxu0 %vm12386_vm11, %v15820_v56  ;;  %v6386_v33 = vpop.permute.xlu0 %6385  ;;  %v6622_v43 = vpop.permute.xlu1 %6621 }
 0x547   :  { %11686 = vmatprep.subr.mxu1 %v15820_v56  ;;  %11691 = vmatprep.subr.mxu0 %v15820_v56 }
 0x548   :  { %11679 = vmatmul.mubr.msk.f32.vlgmr.msra.gmra.mrb[94].mxu1 %vm698_vm12, %v13831_v34  ;;  %11684 = vmatmul.mubr.msk.f32.vlgmr.msra.gmra.mrb[76].mxu0 %vm698_vm12, %v13860_v49 }
 0x549   :  { %11687 = vmatpush3.xpose.msk.msra.mxu1 %vm698_vm12, %v13835_v42  ;;  %11692 = vmatpush3.xpose.msk.msra.mxu0 %vm698_vm12, %v6076_v4 }
 0x54a   :  { %11688 = vmatprep.mubr.msk.f32.mxu1 %vm12386_vm11, %v15820_v56  ;;  %11693 = vmatprep.mubr.msk.f32.mxu0 %vm12386_vm11, %v15820_v56  ;;  %v6544_v8 = vpop.permute.xlu0 %6543  ;;  %v6620_v47 = vpop.permute.xlu1 %6619 }
 0x54b   :  { %11696 = vmatprep.subr.mxu1 %v15820_v56  ;;  %11701 = vmatprep.subr.mxu0 %v15820_v56 }
 0x54c   :  { %11689 = vmatmul.mubr.msk.f32.vlgmr.msra.gmra.mrb[96].mxu1 %vm698_vm12, %v13845_v39  ;;  %11694 = vmatmul.mubr.msk.f32.vlgmr.msra.gmra.mrb[78].mxu0 %vm698_vm12, %v6074_v40 }
 0x54d   :  { %11697 = vmatpush3.xpose.msk.msra.mxu1 %vm698_vm12, %v13858_v7  ;;  %11702 = vmatpush3.xpose.msk.msra.mxu0 %vm698_vm12, %v6232_v38 }
 0x54e   :  { %11698 = vmatprep.mubr.msk.f32.mxu1 %vm12386_vm11, %v15820_v56  ;;  %11703 = vmatprep.mubr.msk.f32.mxu0 %vm12386_vm11, %v15820_v56  ;;  %v6542_v63 = vpop.permute.xlu0 %6541  ;;  %v7010_v52 = vpop.permute.xlu1 %7009 }
 0x54f   :  { %11706 = vmatprep.subr.mxu1 %v15820_v56  ;;  %11711 = vmatprep.subr.mxu0 %v15820_v56 }
 0x550   :  { %11699 = vmatmul.mubr.msk.f32.vlgmr.msra.gmra.mrb[98].mxu1 %vm698_vm12, %v13876_v14  ;;  %11704 = vmatmul.mubr.msk.f32.vlgmr.msra.gmra.mrb[80].mxu0 %vm698_vm12, %v6230_v36 }
 0x551   :  { %11707 = vmatpush3.xpose.msk.msra.mxu1 %vm698_vm12, %v13892_v19  ;;  %11712 = vmatpush3.xpose.msk.msra.mxu0 %vm698_vm12, %v6388_v48 }
 0x552   :  { %11708 = vmatprep.mubr.msk.f32.mxu1 %vm12386_vm11, %v15820_v56  ;;  %11713 = vmatprep.mubr.msk.f32.mxu0 %vm12386_vm11, %v15820_v56  ;;  %v7086_v41 = vpop.permute.xlu0 %7085 }
 0x553   :  { %11716 = vmatprep.subr.mxu1 %v15820_v56  ;;  %11721 = vmatprep.subr.mxu0 %v15820_v56 }
 0x554   :  { %11709 = vmatmul.mubr.msk.f32.vlgmr.msra.gmra.mrb[100].mxu1 %vm698_vm12, %v6308_v20  ;;  %11714 = vmatmul.mubr.msk.f32.vlgmr.msra.gmra.mrb[82].mxu0 %vm698_vm12, %v6386_v33 }
 0x555   :  { %11717 = vmatpush3.xpose.msk.msra.mxu1 %vm698_vm12, %v6466_v13  ;;  %11722 = vmatpush3.xpose.msk.msra.mxu0 %vm698_vm12, %v6544_v8 }
 0x556   :  { %11718 = vmatprep.mubr.msk.f32.mxu1 %vm12386_vm11, %v15820_v56  ;;  %11723 = vmatprep.mubr.msk.f32.mxu0 %vm12386_vm11, %v15820_v56 }
 0x557   :  { %11726 = vmatprep.subr.mxu1 %v15820_v56  ;;  %11731 = vmatprep.subr.mxu0 %v15820_v56 }
 0x558   :  { %11719 = vmatmul.mubr.msk.f32.vlgmr.msra.gmra.mrb[102].mxu1 %vm698_vm12, %v6464_v23  ;;  %11724 = vmatmul.mubr.msk.f32.vlgmr.msra.gmra.mrb[84].mxu0 %vm698_vm12, %v6542_v63  ;;  %v15883_v23 = vld [vmem:[#allocation33_spill] sm:$0xff] }
 0x559   :  { %11727 = vmatpush3.xpose.msk.msra.mxu1 %vm698_vm12, %v6622_v43  ;;  %11732 = vmatpush3.msra.mxu0 %v7010_v52 }
 0x55a   :  { %11728 = vmatprep.mubr.msk.f32.mxu1 %vm12386_vm11, %v15820_v56  ;;  %11736 = vmatprep.subr.mxu1 %v15820_v56 }
 0x55b   :  { %11733 = vmatprep.mubr.msk.f32.mxu0 %vm12386_vm11, %v15820_v56  ;;  %11741 = vmatprep.subr.mxu0 %v15820_v56 }
 0x55c   :  { %11729 = vmatmul.mubr.msk.f32.vlgmr.msra.gmra.mrb[104].mxu1 %vm698_vm12, %v6620_v47 }
 0x55d   :  { %11737 = vmatpush3.msra.mxu1 %v7086_v41  ;;  %11738 = vmatprep.mubr.msk.f32.mxu1 %vm12386_vm11, %v15820_v56 }
 0x55e   :  { %11746 = vmatprep.subr.mxu1 %v15820_v56 }
 0x59d   :  { %v14016_v61 = vpop.f32.mrb[58].mxu1 }
 0x59e   :  { %v11500_v51 = vpop.f32.mrb[59].mxu1 }
 0x5a2   :  { %v14018_v2 = vpop.f32.mrb[38].mxu0 }
 0x5a3   :  { %v11495_v29 = vpop.f32.mrb[39].mxu0 }
 0x5a4   :  { %v15884_v29 = vld [vmem:[#allocation31_spill] sm:$0xff] }
 0x5a5   :  { %v14020_v17 = vpop.f32.mrb[60].mxu1 }
 0x5a6   :  { %v14022_v60 = vpop.f32.mrb[40].mxu0  ;;  %v11510_v0 = vpop.f32.mrb[61].mxu1 }
 0x5a7   :  { %v11505_v18 = vpop.f32.mrb[41].mxu0 }
 0x5a8   :  { %v15885_v18 = vld [vmem:[#allocation32_spill] sm:$0xff] }
 0x5aa   :  { %v14024_v34 = vpop.f32.mrb[42].mxu0 }
 0x5ab   :  { %15864 = vst [vmem:[#allocation45_spill] sm:$0xff] %v14024_v34  ;;  %v11515_v44 = vpop.f32.mrb[43].mxu0 }
 0x5ac   :  { %v14026_v11 = vpop.f32.mrb[62].mxu1 }
 0x5ad   :  { %v11520_v42 = vpop.f32.mrb[63].mxu1 }
 0x5af   :  { %v14028_v28 = vpop.f32.mrb[44].mxu0 }
 0x5b0   :  { %15865 = vst [vmem:[#allocation26_spill] sm:$0xff] %v14028_v28  ;;  %v11525_v21 = vpop.f32.mrb[45].mxu0 }
 0x5b1   :  { %v14030_v30 = vpop.f32.mrb[64].mxu1 }
 0x5b2   :  { %15866 = vst [vmem:[#allocation29_spill] sm:$0xff] %v14030_v30  ;;  %v11530_v62 = vpop.f32.mrb[65].mxu1 }
 0x5b4   :  { %v14032_v39 = vpop.f32.mrb[46].mxu0 }
 0x5b5   :  { %15867 = vst [vmem:[#allocation52_spill] sm:$0xff] %v14032_v39  ;;  %v11535_v35 = vpop.f32.mrb[47].mxu0 }
 0x5b6   :  { %v14034_v55 = vpop.f32.mrb[66].mxu1 }
 0x5b7   :  { %15868 = vst [vmem:[#allocation49_spill] sm:$0xff] %v14034_v55  ;;  %v11540_v54 = vpop.f32.mrb[67].mxu1 }
 0x5b9   :  { %v14036_v22 = vpop.f32.mrb[48].mxu0 }
 0x5ba   :  { %15869 = vst [vmem:[#allocation27_spill] sm:$0xff] %v14036_v22  ;;  %v11545_v26 = vpop.f32.mrb[49].mxu0 }
 0x5bb   :  { %v14038_v7 = vpop.f32.mrb[68].mxu1 }
 0x5bc   :  { %15870 = vst [vmem:[#allocation58_spill] sm:$0xff] %v14038_v7  ;;  %v11550_v49 = vpop.f32.mrb[69].mxu1 }
 0x5be   :  { %v14040_v50 = vpop.f32.mrb[50].mxu0 }
 0x5bf   :  { %15871 = vst [vmem:[#allocation54_spill] sm:$0xff] %v14040_v50  ;;  %v11555_v6 = vpop.f32.mrb[51].mxu0 }
 0x5c0   :  { %v14042_v59 = vpop.f32.mrb[70].mxu1 }
 0x5c1   :  { %15872 = vst [vmem:[#allocation28_spill] sm:$0xff] %v14042_v59  ;;  %v11560_v32 = vpop.f32.mrb[71].mxu1 }
 0x5c2   :  { %v15886_v32 = vld [vmem:[#allocation35_spill] sm:$0xff] }
 0x5c3   :  { %v14044_v14 = vpop.f32.mrb[52].mxu0 }
 0x5c4   :  { %15873 = vst [vmem:[#allocation59_spill] sm:$0xff] %v14044_v14  ;;  %v11565_v4 = vpop.f32.mrb[53].mxu0 }
 0x5c5   :  { %v14046_v58 = vpop.f32.mrb[72].mxu1 }
 0x5c6   :  { %15874 = vst [vmem:[#allocation61_spill] sm:$0xff] %v14046_v58  ;;  %v11570_v45 = vpop.f32.mrb[73].mxu1 }
 0x5c7   :  { %v15887_v45 = vld [vmem:[#allocation34_spill] sm:$0xff] }
 0x5c8   :  { %v14048_v1 = vpop.f32.mrb[54].mxu0 }
 0x5c9   :  { %15875 = vst [vmem:[#allocation30_spill] sm:$0xff] %v14048_v1  ;;  %v11575_v16 = vpop.f32.mrb[55].mxu0 }
 0x5ca   :  { %v14050_v19 = vpop.f32.mrb[74].mxu1 }
 0x5cb   :  { %15876 = vst [vmem:[#allocation62_spill] sm:$0xff] %v14050_v19  ;;  %v11580_v40 = vpop.f32.mrb[75].mxu1 }
 0x5cd   :  { %v14052_v5 = vpop.f32.mrb[56].mxu0 }
 0x5ce   :  { %15877 = vst [vmem:[#allocation63_spill] sm:$0xff] %v14052_v5  ;;  %v11585_v3 = vpop.f32.mrb[57].mxu0 }
 0x5cf   :  { %v14054_v15 = vpop.f32.mrb[76].mxu1 }
 0x5d0   :  { %15878 = vst [vmem:[#allocation64_spill] sm:$0xff] %v14054_v15  ;;  %v11590_v9 = vpop.f32.mrb[77].mxu1 }
 0x5d2   :  { %v14056_v20 = vpop.f32.mrb[58].mxu0 }
 0x5d3   :  { %15879 = vst [vmem:[#allocation65_spill] sm:$0xff] %v14056_v20  ;;  %v11595_v38 = vpop.f32.mrb[59].mxu0 }
 0x5d4   :  { %v14058_v57 = vpop.f32.mrb[78].mxu1 }
 0x5d5   :  { %15880 = vst [vmem:[#allocation66_spill] sm:$0xff] %v14058_v57  ;;  %v11600_v37 = vpop.f32.mrb[79].mxu1 }
 0x5fb   :  { %v14060_v46 = vpop.f32.mrb[60].mxu0 }
 0x5fc   :  { %15881 = vst [vmem:[#allocation67_spill] sm:$0xff] %v14060_v46  ;;  %v11605_v53 = vpop.f32.mrb[61].mxu0 }
 0x5ff   :  { %v14062_v36 = vpop.f32.mrb[80].mxu1  ;;  %v4899_v13 = vpop.f32.mrb[62].mxu0 }
 0x600   :  { %15882 = vst [vmem:[#allocation92_spill] sm:$0xff] %v14062_v36  ;;  %v6697_v10 = vmul.f32 0.25, %v4899_v13  ;;  %v11610_v31 = vpop.f32.mrb[81].mxu1  ;;  %v11615_v48 = vpop.f32.mrb[63].mxu0 }
 0x601   :  { %v15888_v31 = vld [vmem:[#allocation36_spill] sm:$0xff] }
 0x602   :  { %v14065_v33 = vadd.f32 %v6697_v10, %v15883_v23  ;;  %v15889_v23 = vld [vmem:[#allocation37_spill] sm:$0xff] }
 0x603   :  { %v4977_v43 = vpop.f32.mrb[82].mxu1  ;;  %v5055_v8 = vpop.f32.mrb[64].mxu0 }
 0x604   :  { %v6698_v47 = vmul.f32 0.25, %v4977_v43  ;;  %v6699_v63 = vmul.f32 0.25, %v5055_v8  ;;  %v11620_v52 = vpop.f32.mrb[83].mxu1  ;;  %v11625_v41 = vpop.f32.mrb[65].mxu0  ;;  %v6745_v51 = vsel %vm2736_vm13, %v14065_v33, -inf }
 0x605   :  { %6746 = vmax.xlane.f32.xlu0 %v6745_v51 }
 0x606   :  { %v14070_v0 = vadd.f32 %v6698_v47, %v15884_v29  ;;  %v14073_v44 = vadd.f32 %v6699_v63, %v15885_v18 }
 0x607   :  { %v5133_v42 = vpop.f32.mrb[84].mxu1  ;;  %v5211_v21 = vpop.f32.mrb[66].mxu0 }
 0x608   :  { %v6700_v62 = vmul.f32 0.25, %v5133_v42  ;;  %v6701_v35 = vmul.f32 0.25, %v5211_v21  ;;  %v11630_v54 = vpop.f32.mrb[85].mxu1  ;;  %v11635_v26 = vpop.f32.mrb[67].mxu0  ;;  %v6751_v49 = vsel %vm2736_vm13, %v14073_v44, -inf  ;;  %v6748_v6 = vsel %vm2736_vm13, %v14070_v0, -inf }
 0x609   :  { %6752 = vmax.xlane.f32.xlu0 %v6751_v49  ;;  %6749 = vmax.xlane.f32.xlu1 %v6748_v6  ;;  %v15890_v42 = vld [vmem:[#allocation38_spill] sm:$0xff] }
 0x60a   :  { %v14080_v4 = vadd.f32 %v6700_v62, %v15886_v32  ;;  %v14083_v16 = vadd.f32 %v6701_v35, %v15887_v45  ;;  %v15891_v62 = vld [vmem:[#allocation39_spill] sm:$0xff] }
 0x60b   :  { %v5289_v40 = vpop.f32.mrb[86].mxu1  ;;  %v5367_v3 = vpop.f32.mrb[68].mxu0 }
 0x60c   :  { %v6702_v9 = vmul.f32 0.25, %v5289_v40  ;;  %v6703_v38 = vmul.f32 0.25, %v5367_v3  ;;  %v11640_v37 = vpop.f32.mrb[87].mxu1  ;;  %v11645_v53 = vpop.f32.mrb[69].mxu0  ;;  %v6757_v13 = vsel %vm2736_vm13, %v14083_v16, -inf  ;;  %v6754_v10 = vsel %vm2736_vm13, %v14080_v4, -inf }
 0x60d   :  { %6758 = vmax.xlane.f32.xlu1 %v6757_v13  ;;  %6755 = vmax.xlane.f32.xlu0 %v6754_v10  ;;  %v15893_v37 = vld [vmem:[#allocation41_spill] sm:$0xff] }
 0x60e   :  { %v14090_v48 = vadd.f32 %v6702_v9, %v15888_v31  ;;  %v14093_v43 = vadd.f32 %v6703_v38, %v15889_v23  ;;  %v15892_v9 = vld [vmem:[#allocation40_spill] sm:$0xff] }
 0x60f   :  { %v5445_v8 = vpop.f32.mrb[88].mxu1  ;;  %v5523_v47 = vpop.f32.mrb[70].mxu0 }
 0x610   :  { %v6704_v63 = vmul.f32 0.25, %v5445_v8  ;;  %v6705_v52 = vmul.f32 0.25, %v5523_v47  ;;  %v11650_v41 = vpop.f32.mrb[89].mxu1  ;;  %v11655_v51 = vpop.f32.mrb[71].mxu0  ;;  %v6763_v29 = vsel %vm2736_vm13, %v14093_v43, -inf  ;;  %v6760_v18 = vsel %vm2736_vm13, %v14090_v48, -inf }
 0x611   :  { %6764 = vmax.xlane.f32.xlu1 %v6763_v29  ;;  %6761 = vmax.xlane.f32.xlu0 %v6760_v18  ;;  %v15894_v41 = vld [vmem:[#allocation42_spill] sm:$0xff]  ;;  %v15895_v29 = vld [vmem:[#allocation43_spill] sm:$0xff] }
 0x612   :  { %v14100_v21 = vadd.f32 %v6704_v63, %v15890_v42  ;;  %v14103_v35 = vadd.f32 %v6705_v52, %v15891_v62 }
 0x613   :  { %v5601_v54 = vpop.f32.mrb[90].mxu1  ;;  %v5679_v26 = vpop.f32.mrb[72].mxu0 }
 0x614   :  { %v6706_v49 = vmul.f32 0.25, %v5601_v54  ;;  %v6707_v6 = vmul.f32 0.25, %v5679_v26  ;;  %v11660_v32 = vpop.f32.mrb[91].mxu1  ;;  %v11665_v45 = vpop.f32.mrb[73].mxu0  ;;  %v6769_v40 = vsel %vm2736_vm13, %v14103_v35, -inf  ;;  %v6766_v3 = vsel %vm2736_vm13, %v14100_v21, -inf }
 0x615   :  { %6770 = vmax.xlane.f32.xlu1 %v6769_v40  ;;  %6767 = vmax.xlane.f32.xlu0 %v6766_v3  ;;  %v15896_v40 = vld [vmem:[#allocation44_spill] sm:$0xff] }
 0x616   :  { %v14110_v38 = vadd.f32 %v6706_v49, %v15892_v9  ;;  %v14113_v53 = vadd.f32 %v6707_v6, %v15893_v37  ;;  %v15897_v9 = vld [vmem:[#allocation46_spill] sm:$0xff] }
 0x617   :  { %v5757_v13 = vpop.f32.mrb[92].mxu1  ;;  %v5835_v10 = vpop.f32.mrb[74].mxu0 }
 0x618   :  { %v6708_v31 = vmul.f32 0.25, %v5757_v13  ;;  %v6709_v23 = vmul.f32 0.25, %v5835_v10  ;;  %v11670_v8 = vpop.f32.mrb[93].mxu1  ;;  %v11675_v47 = vpop.f32.mrb[75].mxu0  ;;  %v6775_v63 = vsel %vm2736_vm13, %v14113_v53, -inf  ;;  %v6772_v52 = vsel %vm2736_vm13, %v14110_v38, -inf }
 0x619   :  { %6776 = vmax.xlane.f32.xlu1 %v6775_v63  ;;  %6773 = vmax.xlane.f32.xlu0 %v6772_v52 }
 0x61a   :  { %v14120_v51 = vadd.f32 %v6708_v31, %v15894_v41  ;;  %v14123_v18 = vadd.f32 %v6709_v23, %v15895_v29  ;;  %v15898_v41 = vld [vmem:[#allocation47_spill] sm:$0xff] }
 0x61b   :  { %v5913_v42 = vpop.f32.mrb[94].mxu1  ;;  %v5991_v62 = vpop.f32.mrb[76].mxu0 }
 0x61c   :  { %v6710_v54 = vmul.f32 0.25, %v5913_v42  ;;  %v6711_v26 = vmul.f32 0.25, %v5991_v62  ;;  %v11680_v49 = vpop.f32.mrb[95].mxu1  ;;  %v11685_v6 = vpop.f32.mrb[77].mxu0  ;;  %v6778_v32 = vsel %vm2736_vm13, %v14120_v51, -inf  ;;  %v6781_v45 = vsel %vm2736_vm13, %v14123_v18, -inf }
 0x61d   :  { %6779 = vmax.xlane.f32.xlu0 %v6778_v32  ;;  %6782 = vmax.xlane.f32.xlu1 %v6781_v45  ;;  %v15899_v42 = vld [vmem:[#allocation48_spill] sm:$0xff] }
 0x61e   :  { %v14130_v3 = vadd.f32 %v6710_v54, %v15896_v40  ;;  %v14133_v37 = vadd.f32 %v6711_v26, %v15897_v9 }
 0x61f   :  { %v6069_v13 = vpop.f32.mrb[96].mxu1  ;;  %v6147_v10 = vpop.f32.mrb[78].mxu0 }
 0x620   :  { %v6712_v31 = vmul.f32 0.25, %v6069_v13  ;;  %v6713_v23 = vmul.f32 0.25, %v6147_v10  ;;  %v11690_v8 = vpop.f32.mrb[97].mxu1  ;;  %v11695_v47 = vpop.f32.mrb[79].mxu0  ;;  %v6784_v63 = vsel %vm2736_vm13, %v14130_v3, -inf  ;;  %v6787_v52 = vsel %vm2736_vm13, %v14133_v37, -inf }
 0x621   :  { %6785 = vmax.xlane.f32.xlu0 %v6784_v63  ;;  %6788 = vmax.xlane.f32.xlu1 %v6787_v52  ;;  %v15900_v13 = vld [vmem:[#allocation50_spill] sm:$0xff] }
 0x622   :  { %v14140_v29 = vadd.f32 %v6712_v31, %v15898_v41  ;;  %v14143_v62 = vadd.f32 %v6713_v23, %v15899_v42  ;;  %v15901_v31 = vld [vmem:[#allocation51_spill] sm:$0xff] }
 0x623   :  { %v6225_v54 = vpop.f32.mrb[98].mxu1  ;;  %v6303_v26 = vpop.f32.mrb[80].mxu0 }
 0x624   :  { %v6714_v49 = vmul.f32 0.25, %v6225_v54  ;;  %v6715_v6 = vmul.f32 0.25, %v6303_v26  ;;  %v11700_v32 = vpop.f32.mrb[99].mxu1  ;;  %v11705_v45 = vpop.f32.mrb[81].mxu0  ;;  %v6790_v40 = vsel %vm2736_vm13, %v14140_v29, -inf  ;;  %v6793_v9 = vsel %vm2736_vm13, %v14143_v62, -inf }
 0x625   :  { %6791 = vmax.xlane.f32.xlu0 %v6790_v40  ;;  %6794 = vmax.xlane.f32.xlu1 %v6793_v9  ;;  %v15902_v32 = vld [vmem:[#allocation53_spill] sm:$0xff]  ;;  %v15903_v45 = vld [vmem:[#allocation55_spill] sm:$0xff] }
 0x626   :  { %v14150_v10 = vadd.f32 %v6714_v49, %v15900_v13  ;;  %v14153_v23 = vadd.f32 %v6715_v6, %v15901_v31 }
 0x627   :  { %v6381_v8 = vpop.f32.mrb[100].mxu1  ;;  %v6459_v47 = vpop.f32.mrb[82].mxu0 }
 0x628   :  { %v6716_v63 = vmul.f32 0.25, %v6381_v8  ;;  %v6717_v52 = vmul.f32 0.25, %v6459_v47  ;;  %v11710_v41 = vpop.f32.mrb[101].mxu1  ;;  %v11715_v42 = vpop.f32.mrb[83].mxu0  ;;  %v6796_v54 = vsel %vm2736_vm13, %v14150_v10, -inf  ;;  %v6799_v26 = vsel %vm2736_vm13, %v14153_v23, -inf }
 0x629   :  { %6797 = vmax.xlane.f32.xlu0 %v6796_v54  ;;  %6800 = vmax.xlane.f32.xlu1 %v6799_v26  ;;  %v15904_v54 = vld [vmem:[#allocation56_spill] sm:$0xff]  ;;  %v15905_v26 = vld [vmem:[#allocation57_spill] sm:$0xff] }
 0x62a   :  { %v14160_v49 = vadd.f32 %v6716_v63, %v15902_v32  ;;  %v14163_v6 = vadd.f32 %v6717_v52, %v15903_v45 }
 0x62b   :  { %v6537_v40 = vpop.f32.mrb[102].mxu1  ;;  %v6615_v9 = vpop.f32.mrb[84].mxu0 }
 0x62c   :  { %v6718_v13 = vmul.f32 0.25, %v6537_v40  ;;  %v6719_v31 = vmul.f32 0.25, %v6615_v9  ;;  %v11720_v8 = vpop.f32.mrb[103].mxu1  ;;  %v11725_v47 = vpop.f32.mrb[85].mxu0  ;;  %v6802_v41 = vsel %vm2736_vm13, %v14160_v49, -inf  ;;  %v6805_v42 = vsel %vm2736_vm13, %v14163_v6, -inf }
 0x62d   :  { %6803 = vmax.xlane.f32.xlu0 %v6802_v41  ;;  %6806 = vmax.xlane.f32.xlu1 %v6805_v42  ;;  %v15906_v47 = vld [vmem:[#allocation60_spill] sm:$0xff] }
 0x62e   :  { %v14170_v63 = vadd.f32 %v6718_v13, %v15904_v54  ;;  %v14173_v52 = vadd.f32 %v6719_v31, %v15905_v26  ;;  %v14188_v31 = vpop.permute.xlu1 %7161  ;;  %v14192_v54 = vpop.permute.xlu0 %7237 }
 0x62f   :  { %v6693_v32 = vpop.f32.mrb[104].mxu1 }
 0x630   :  { %v6720_v45 = vmul.f32 0.25, %v6693_v32  ;;  %v11730_v40 = vpop.f32.mrb[105].mxu1  ;;  %v6808_v9 = vsel %vm2736_vm13, %v14170_v63, -inf  ;;  %v6811_v8 = vsel %vm2736_vm13, %v14173_v52, -inf }
 0x631   :  { %6809 = vmax.xlane.f32.xlu0 %v6808_v9  ;;  %6812 = vmax.xlane.f32.xlu1 %v6811_v8 }
 0x632   :  { %v14180_v41 = vadd.f32 %v6720_v45, %v15906_v47  ;;  %v14190_v42 = vpop.permute.xlu1 %7313  ;;  %v14196_v32 = vpop.permute.xlu0 %7389 }
 0x634   :  { %v6814_v13 = vsel %vm2736_vm13, %v14180_v41, -inf }
 0x635   :  { %6815 = vmax.xlane.f32.xlu0 %v6814_v13 }
 0x636   :  { %v14194_v26 = vpop.permute.xlu1 %7465  ;;  %v14200_v40 = vpop.permute.xlu0 %7541 }
 0x63a   :  { %v14198_v45 = vpop.permute.xlu1 %7617 }
 0x63e   :  { %v14202_v9 = vpop.permute.xlu1 %7769 }
 0x642   :  { %8605 = vrot.lane.b32.xlu1 %v12872_v24, %s12391_s1  ;;  %v14204_v24 = vpop.permute.xlu0 %7693  ;;  %v14206_v8 = vpop.permute.xlu1 %7921 }
 0x646   :  { %v14210_v47 = vpop.permute.xlu1 %7997 }
 0x64a   :  { %v14214_v46 = vpop.permute.xlu1 %8149 }
 0x64b   :  { %8529 = vrot.lane.b32.xlu0 %v12867_v12, %s12391_s1  ;;  %v14208_v12 = vpop.permute.xlu0 %7845 }
 0x64e   :  { %v14218_v20 = vpop.permute.xlu1 %8301 }
 0x64f   :  { %v14212_v13 = vpop.permute.xlu0 %8073 }
 0x652   :  { %v14222_v5 = vpop.permute.xlu1 %8453 }
 0x653   :  { %v14216_v36 = vpop.permute.xlu0 %8225 }
 0x657   :  { %v14220_v57 = vpop.permute.xlu0 %8377 }
 0x692   :  { %v6747_v15 = vpop.xlane.xlu0 %6746 }
 0x693   :  { %v6817_v1 = vsub.f32 %v14065_v33, %v6747_v15 }
 0x695   :  { %v6841_v19 = vmul.f32 1.442695, %v6817_v1 }
 0x696   :  { %v6750_v14 = vpop.xlane.xlu1 %6749  ;;  %v6753_v58 = vpop.xlane.xlu0 %6752 }
 0x697   :  { %12138 = vpow2.f32 %v6841_v19  ;;  %v6818_v50 = vsub.f32 %v14070_v0, %v6750_v14  ;;  %v6819_v59 = vsub.f32 %v14073_v44, %v6753_v58 }
 0x699   :  { %v6843_v22 = vmul.f32 1.442695, %v6818_v50  ;;  %v6845_v7 = vmul.f32 1.442695, %v6819_v59 }
 0x69a   :  { %v6759_v39 = vpop.xlane.xlu1 %6758  ;;  %v6756_v55 = vpop.xlane.xlu0 %6755 }
 0x69b   :  { %12140 = vpow2.f32 %v6843_v22  ;;  %v6821_v28 = vsub.f32 %v14083_v16, %v6759_v39  ;;  %v6820_v30 = vsub.f32 %v14080_v4, %v6756_v55 }
 0x69c   :  { %12142 = vpow2.f32 %v6845_v7 }
 0x69d   :  { %v6849_v34 = vmul.f32 1.442695, %v6821_v28  ;;  %v6847_v15 = vmul.f32 1.442695, %v6820_v30 }
 0x69e   :  { %v6765_v1 = vpop.xlane.xlu1 %6764  ;;  %v6762_v33 = vpop.xlane.xlu0 %6761 }
 0x69f   :  { %12144 = vpow2.f32 %v6849_v34  ;;  %v6823_v19 = vsub.f32 %v14093_v43, %v6765_v1  ;;  %v6822_v14 = vsub.f32 %v14090_v48, %v6762_v33 }
 0x6a0   :  { %12146 = vpow2.f32 %v6847_v15 }
 0x6a1   :  { %v14231_v50 = vpop.eup %12138  ;;  %v6853_v59 = vmul.f32 1.442695, %v6823_v19  ;;  %v6851_v58 = vmul.f32 1.442695, %v6822_v14 }
 0x6a2   :  { %v6771_v22 = vpop.xlane.xlu1 %6770  ;;  %v6768_v0 = vpop.xlane.xlu0 %6767  ;;  %v6889_v39 = vsel %vm2736_vm13, %v14231_v50, 0.0 }
 0x6a3   :  { %12148 = vpow2.f32 %v6853_v59  ;;  %v6825_v28 = vsub.f32 %v14103_v35, %v6771_v22  ;;  %v6824_v30 = vsub.f32 %v14100_v21, %v6768_v0  ;;  %6890 = vadd.xlane.f32.xlu1 %v6889_v39 }
 0x6a4   :  { %12150 = vpow2.f32 %v6851_v58 }
 0x6a5   :  { %v14237_v34 = vpop.eup %12140  ;;  %v6857_v55 = vmul.f32 1.442695, %v6825_v28  ;;  %v6855_v7 = vmul.f32 1.442695, %v6824_v30 }
 0x6a6   :  { %v14239_v44 = vpop.eup %12142  ;;  %v6777_v4 = vpop.xlane.xlu1 %6776  ;;  %v6892_v48 = vsel %vm2736_vm13, %v14237_v34, 0.0 }
 0x6a7   :  { %v6774_v16 = vpop.xlane.xlu0 %6773  ;;  %12152 = vpow2.f32 %v6857_v55  ;;  %v6827_v43 = vsub.f32 %v14113_v53, %v6777_v4  ;;  %6893 = vadd.xlane.f32.xlu0 %v6892_v48  ;;  %v6895_v21 = vsel %vm2736_vm13, %v14239_v44, 0.0 }
 0x6a8   :  { %v6826_v35 = vsub.f32 %v14110_v38, %v6774_v16  ;;  %12154 = vpow2.f32 %v6855_v7  ;;  %6896 = vadd.xlane.f32.xlu1 %v6895_v21 }
 0x6a9   :  { %v14247_v15 = vpop.eup %12144  ;;  %v6861_v1 = vmul.f32 1.442695, %v6827_v43 }
 0x6aa   :  { %v6859_v33 = vmul.f32 1.442695, %v6826_v35  ;;  %v14249_v19 = vpop.eup %12146  ;;  %v6783_v14 = vpop.xlane.xlu1 %6782  ;;  %v6901_v58 = vsel %vm2736_vm13, %v14247_v15, 0.0 }
 0x6ab   :  { %v6780_v59 = vpop.xlane.xlu0 %6779  ;;  %12156 = vpow2.f32 %v6861_v1  ;;  %v6829_v38 = vsub.f32 %v14123_v18, %v6783_v14  ;;  %v6898_v22 = vsel %vm2736_vm13, %v14249_v19, 0.0 }
 0x6ac   :  { %v6828_v53 = vsub.f32 %v14120_v51, %v6780_v59  ;;  %12158 = vpow2.f32 %v6859_v33  ;;  %6902 = vadd.xlane.f32.xlu1 %v6901_v58  ;;  %6899 = vadd.xlane.f32.xlu0 %v6898_v22 }
 0x6ad   :  { %v14257_v0 = vpop.eup %12148  ;;  %v6865_v39 = vmul.f32 1.442695, %v6829_v38 }
 0x6ae   :  { %v6863_v28 = vmul.f32 1.442695, %v6828_v53  ;;  %v14259_v30 = vpop.eup %12150  ;;  %v6789_v55 = vpop.xlane.xlu1 %6788  ;;  %v6907_v4 = vsel %vm2736_vm13, %v14257_v0, 0.0 }
 0x6af   :  { %v6786_v7 = vpop.xlane.xlu0 %6785  ;;  %12160 = vpow2.f32 %v6865_v39  ;;  %v6831_v51 = vsub.f32 %v14133_v37, %v6789_v55  ;;  %v6904_v16 = vsel %vm2736_vm13, %v14259_v30, 0.0 }
 0x6b0   :  { %v6830_v18 = vsub.f32 %v14130_v3, %v6786_v7  ;;  %12162 = vpow2.f32 %v6863_v28  ;;  %6908 = vadd.xlane.f32.xlu1 %v6907_v4  ;;  %6905 = vadd.xlane.f32.xlu0 %v6904_v16 }
 0x6b1   :  { %v14267_v48 = vpop.eup %12152  ;;  %v6869_v43 = vmul.f32 1.442695, %v6831_v51 }
 0x6b2   :  { %v6867_v35 = vmul.f32 1.442695, %v6830_v18  ;;  %v14269_v21 = vpop.eup %12154  ;;  %v6795_v1 = vpop.xlane.xlu1 %6794  ;;  %v6913_v14 = vsel %vm2736_vm13, %v14267_v48, 0.0 }
 0x6b3   :  { %v6792_v33 = vpop.xlane.xlu0 %6791  ;;  %12164 = vpow2.f32 %v6869_v43  ;;  %v6833_v3 = vsub.f32 %v14143_v62, %v6795_v1  ;;  %v6910_v59 = vsel %vm2736_vm13, %v14269_v21, 0.0 }
 0x6b4   :  { %v6832_v37 = vsub.f32 %v14140_v29, %v6792_v33  ;;  %12166 = vpow2.f32 %v6867_v35  ;;  %6914 = vadd.xlane.f32.xlu1 %v6913_v14  ;;  %6911 = vadd.xlane.f32.xlu0 %v6910_v59 }
 0x6b5   :  { %v14277_v58 = vpop.eup %12156  ;;  %v6873_v38 = vmul.f32 1.442695, %v6833_v3 }
 0x6b6   :  { %v6871_v53 = vmul.f32 1.442695, %v6832_v37  ;;  %v14279_v22 = vpop.eup %12158  ;;  %v6801_v39 = vpop.xlane.xlu1 %6800  ;;  %v6919_v55 = vsel %vm2736_vm13, %v14277_v58, 0.0 }
 0x6b7   :  { %v6798_v28 = vpop.xlane.xlu0 %6797  ;;  %12168 = vpow2.f32 %v6873_v38  ;;  %v6835_v29 = vsub.f32 %v14153_v23, %v6801_v39  ;;  %v6916_v7 = vsel %vm2736_vm13, %v14279_v22, 0.0 }
 0x6b8   :  { %v6834_v62 = vsub.f32 %v14150_v10, %v6798_v28  ;;  %12170 = vpow2.f32 %v6871_v53  ;;  %6920 = vadd.xlane.f32.xlu1 %v6919_v55  ;;  %6917 = vadd.xlane.f32.xlu0 %v6916_v7 }
 0x6b9   :  { %v14287_v4 = vpop.eup %12160  ;;  %v6877_v51 = vmul.f32 1.442695, %v6835_v29 }
 0x6ba   :  { %v6875_v18 = vmul.f32 1.442695, %v6834_v62  ;;  %v14289_v16 = vpop.eup %12162  ;;  %v6807_v43 = vpop.xlane.xlu1 %6806  ;;  %v6925_v1 = vsel %vm2736_vm13, %v14287_v4, 0.0 }
 0x6bb   :  { %v6804_v35 = vpop.xlane.xlu0 %6803  ;;  %12172 = vpow2.f32 %v6877_v51  ;;  %v6837_v10 = vsub.f32 %v14163_v6, %v6807_v43  ;;  %v6922_v33 = vsel %vm2736_vm13, %v14289_v16, 0.0 }
 0x6bc   :  { %v6836_v23 = vsub.f32 %v14160_v49, %v6804_v35  ;;  %12174 = vpow2.f32 %v6875_v18  ;;  %6926 = vadd.xlane.f32.xlu1 %v6925_v1  ;;  %6923 = vadd.xlane.f32.xlu0 %v6922_v33 }
 0x6bd   :  { %v14297_v14 = vpop.eup %12164  ;;  %v6881_v3 = vmul.f32 1.442695, %v6837_v10 }
 0x6be   :  { %v6879_v37 = vmul.f32 1.442695, %v6836_v23  ;;  %v14299_v59 = vpop.eup %12166  ;;  %v6813_v38 = vpop.xlane.xlu1 %6812  ;;  %v6931_v39 = vsel %vm2736_vm13, %v14297_v14, 0.0 }
 0x6bf   :  { %v6810_v53 = vpop.xlane.xlu0 %6809  ;;  %12176 = vpow2.f32 %v6881_v3  ;;  %v6839_v49 = vsub.f32 %v14173_v52, %v6813_v38  ;;  %v6928_v28 = vsel %vm2736_vm13, %v14299_v59, 0.0 }
 0x6c0   :  { %v6838_v6 = vsub.f32 %v14170_v63, %v6810_v53  ;;  %12178 = vpow2.f32 %v6879_v37  ;;  %6932 = vadd.xlane.f32.xlu1 %v6931_v39  ;;  %6929 = vadd.xlane.f32.xlu0 %v6928_v28 }
 0x6c1   :  { %v14307_v55 = vpop.eup %12168  ;;  %v6885_v29 = vmul.f32 1.442695, %v6839_v49 }
 0x6c2   :  { %v6883_v62 = vmul.f32 1.442695, %v6838_v6  ;;  %v14309_v7 = vpop.eup %12170  ;;  %v6937_v18 = vsel %vm2736_vm13, %v14307_v55, 0.0 }
 0x6c3   :  { %v6816_v51 = vpop.xlane.xlu0 %6815  ;;  %12180 = vpow2.f32 %v6885_v29  ;;  %v6934_v63 = vsel %vm2736_vm13, %v14309_v7, 0.0  ;;  %v14348_v29 = vpop.permute.xlu1 %8605 }
 0x6c4   :  { %v6840_v52 = vsub.f32 %v14180_v41, %v6816_v51  ;;  %12182 = vpow2.f32 %v6883_v62  ;;  %6938 = vadd.xlane.f32.xlu1 %v6937_v18  ;;  %6935 = vadd.xlane.f32.xlu0 %v6934_v63 }
 0x6c5   :  { %v14316_v43 = vpop.eup %12172 }
 0x6c6   :  { %v6887_v35 = vmul.f32 1.442695, %v6840_v52  ;;  %v14318_v1 = vpop.eup %12174  ;;  %v6943_v10 = vsel %vm2736_vm13, %v14316_v43, 0.0 }
 0x6c7   :  { %v6940_v23 = vsel %vm2736_vm13, %v14318_v1, 0.0  ;;  %v14350_v62 = vpop.permute.xlu0 %8529 }
 0x6c8   :  { %12184 = vpow2.f32 %v6887_v35  ;;  %6944 = vadd.xlane.f32.xlu1 %v6943_v10  ;;  %6941 = vadd.xlane.f32.xlu0 %v6940_v23 }
 0x6c9   :  { %v14324_v41 = vpop.eup %12176 }
 0x6ca   :  { %v14326_v33 = vpop.eup %12178  ;;  %v6949_v3 = vsel %vm2736_vm13, %v14324_v41, 0.0 }
 0x6cb   :  { %v6946_v37 = vsel %vm2736_vm13, %v14326_v33, 0.0 }
 0x6cc   :  { %6950 = vadd.xlane.f32.xlu1 %v6949_v3  ;;  %6947 = vadd.xlane.f32.xlu0 %v6946_v37 }
 0x6cd   :  { %v14332_v38 = vpop.eup %12180 }
 0x6ce   :  { %v14334_v53 = vpop.eup %12182  ;;  %v6955_v39 = vsel %vm2736_vm13, %v14332_v38, 0.0 }
 0x6cf   :  { %v6952_v49 = vsel %vm2736_vm13, %v14334_v53, 0.0 }
 0x6d0   :  { %6956 = vadd.xlane.f32.xlu1 %v6955_v39  ;;  %6953 = vadd.xlane.f32.xlu0 %v6952_v49 }
 0x6d2   :  { %v14340_v6 = vpop.eup %12184 }
 0x6d3   :  { %v6958_v28 = vsel %vm2736_vm13, %v14340_v6, 0.0 }
 0x6d4   :  { %6959 = vadd.xlane.f32.xlu0 %v6958_v28 }
 0x6e1   :  { %8757 = vrot.lane.b32.xlu1 %v12882_v27, %s12391_s1 }
 0x6ea   :  { %8681 = vrot.lane.b32.xlu0 %v12877_v25, %s12391_s1 }
 0x730   :  { %v6891_v51 = vpop.xlane.xlu1 %6890 }
 0x731   :  { %12186 = vrcp.f32 %v6891_v51 }
 0x734   :  { %v6894_v18 = vpop.xlane.xlu0 %6893 }
 0x735   :  { %v6897_v52 = vpop.xlane.xlu1 %6896  ;;  %12188 = vrcp.f32 %v6894_v18 }
 0x736   :  { %12190 = vrcp.f32 %v6897_v52 }
 0x739   :  { %v6903_v63 = vpop.xlane.xlu1 %6902  ;;  %v6900_v35 = vpop.xlane.xlu0 %6899 }
 0x73a   :  { %12192 = vrcp.f32 %v6903_v63 }
 0x73b   :  { %v12187_v10 = vpop.eup %12186  ;;  %12194 = vrcp.f32 %v6900_v35 }
 0x73c   :  { %v6985_v27 = vmul.f32 %v12187_v10, %v14231_v50 }
 0x73d   :  { %v6909_v23 = vpop.xlane.xlu1 %6908  ;;  %v6906_v3 = vpop.xlane.xlu0 %6905 }
 0x73e   :  { %12196 = vrcp.f32 %v6909_v23  ;;  %11734 = vmatmul.mubr.msk.f32.vlgmr.msra.gmra.mrb[86].mxu0 %vm2736_vm13, %v6985_v27 }
 0x73f   :  { %v12189_v25 = vpop.eup %12188  ;;  %12198 = vrcp.f32 %v6906_v3  ;;  %11742 = vmatpush3.msra.mxu0 %v14188_v31  ;;  %11743 = vmatprep.mubr.msk.f32.mxu0 %vm12386_vm11, %v15820_v56 }
 0x740   :  { %v12191_v37 = vpop.eup %12190  ;;  %11751 = vmatprep.subr.mxu0 %v15820_v56  ;;  %v6986_v39 = vmul.f32 %v12189_v25, %v14237_v34 }
 0x741   :  { %v6915_v49 = vpop.xlane.xlu1 %6914  ;;  %v6912_v28 = vpop.xlane.xlu0 %6911  ;;  %v6987_v50 = vmul.f32 %v12191_v37, %v14239_v44 }
 0x742   :  { %12200 = vrcp.f32 %v6915_v49  ;;  %11739 = vmatmul.mubr.msk.f32.vlgmr.msra.gmra.mrb[106].mxu1 %vm2736_vm13, %v6986_v39 }
 0x743   :  { %12202 = vrcp.f32 %v6912_v28  ;;  %11744 = vmatmul.mubr.msk.f32.vlgmr.msra.gmra.mrb[88].mxu0 %vm2736_vm13, %v6987_v50  ;;  %11747 = vmatpush3.msra.mxu1 %v14192_v54 }
 0x744   :  { %v12193_v31 = vpop.eup %12192  ;;  %11752 = vmatpush3.msra.mxu0 %v14190_v42  ;;  %11748 = vmatprep.mubr.msk.f32.mxu1 %vm12386_vm11, %v15820_v56 }
 0x745   :  { %v12195_v51 = vpop.eup %12194  ;;  %v6921_v34 = vpop.xlane.xlu1 %6920  ;;  %11753 = vmatprep.mubr.msk.f32.mxu0 %vm12386_vm11, %v15820_v56  ;;  %11756 = vmatprep.subr.mxu1 %v15820_v56  ;;  %v6989_v44 = vmul.f32 %v12193_v31, %v14247_v15 }
 0x746   :  { %v6918_v18 = vpop.xlane.xlu0 %6917  ;;  %12204 = vrcp.f32 %v6921_v34  ;;  %11761 = vmatprep.subr.mxu0 %v15820_v56  ;;  %v6988_v54 = vmul.f32 %v12195_v51, %v14249_v19 }
 0x747   :  { %12206 = vrcp.f32 %v6918_v18  ;;  %11754 = vmatmul.mubr.msk.f32.vlgmr.msra.gmra.mrb[90].mxu0 %vm2736_vm13, %v6989_v44 }
 0x748   :  { %v12197_v42 = vpop.eup %12196  ;;  %11749 = vmatmul.mubr.msk.f32.vlgmr.msra.gmra.mrb[108].mxu1 %vm2736_vm13, %v6988_v54  ;;  %11762 = vmatpush3.msra.mxu0 %v14194_v26  ;;  %v12033_v54 = vld [vmem:[%s15666_s5 + $0x8] sm:$0xff]  }
 0x749   :  { %v12199_v52 = vpop.eup %12198  ;;  %11757 = vmatpush3.msra.mxu1 %v14196_v32  ;;  %v6927_v63 = vpop.xlane.xlu1 %6926  ;;  %11758 = vmatprep.mubr.msk.f32.mxu1 %vm12386_vm11, %v15820_v56  ;;  %v6991_v15 = vmul.f32 %v12197_v42, %v14257_v0 }
 0x74a   :  { %v6924_v35 = vpop.xlane.xlu0 %6923  ;;  %12208 = vrcp.f32 %v6927_v63  ;;  %11763 = vmatprep.mubr.msk.f32.mxu0 %vm12386_vm11, %v15820_v56  ;;  %11766 = vmatprep.subr.mxu1 %v15820_v56  ;;  %v6990_v19 = vmul.f32 %v12199_v52, %v14259_v30 }
 0x74b   :  { %12210 = vrcp.f32 %v6924_v35  ;;  %11771 = vmatprep.subr.mxu0 %v15820_v56  ;;  %11764 = vmatmul.mubr.msk.f32.vlgmr.msra.gmra.mrb[92].mxu0 %vm2736_vm13, %v6991_v15 }
 0x74c   :  { %v12201_v26 = vpop.eup %12200  ;;  %11759 = vmatmul.mubr.msk.f32.vlgmr.msra.gmra.mrb[110].mxu1 %vm2736_vm13, %v6990_v19  ;;  %11772 = vmatpush3.msra.mxu0 %v14198_v45 }
 0x74d   :  { %v12203_v32 = vpop.eup %12202  ;;  %11767 = vmatpush3.msra.mxu1 %v14200_v40  ;;  %v6933_v0 = vpop.xlane.xlu1 %6932  ;;  %11768 = vmatprep.mubr.msk.f32.mxu1 %vm12386_vm11, %v15820_v56  ;;  %v6993_v30 = vmul.f32 %v12201_v26, %v14267_v48 }
 0x74e   :  { %v6930_v10 = vpop.xlane.xlu0 %6929  ;;  %12212 = vrcp.f32 %v6933_v0  ;;  %11773 = vmatprep.mubr.msk.f32.mxu0 %vm12386_vm11, %v15820_v56  ;;  %11776 = vmatprep.subr.mxu1 %v15820_v56  ;;  %v6992_v27 = vmul.f32 %v12203_v32, %v14269_v21 }
 0x74f   :  { %12214 = vrcp.f32 %v6930_v10  ;;  %11781 = vmatprep.subr.mxu0 %v15820_v56  ;;  %11774 = vmatmul.mubr.msk.f32.vlgmr.msra.gmra.mrb[94].mxu0 %vm2736_vm13, %v6993_v30 }
 0x750   :  { %v12205_v45 = vpop.eup %12204  ;;  %11769 = vmatmul.mubr.msk.f32.vlgmr.msra.gmra.mrb[112].mxu1 %vm2736_vm13, %v6992_v27  ;;  %11782 = vmatpush3.msra.mxu0 %v14202_v9 }
 0x751   :  { %v12207_v40 = vpop.eup %12206  ;;  %11777 = vmatpush3.msra.mxu1 %v14204_v24  ;;  %v6939_v48 = vpop.xlane.xlu1 %6938  ;;  %11778 = vmatprep.mubr.msk.f32.mxu1 %vm12386_vm11, %v15820_v56  ;;  %v6995_v21 = vmul.f32 %v12205_v45, %v14277_v58 }
 0x752   :  { %v6936_v23 = vpop.xlane.xlu0 %6935  ;;  %12216 = vrcp.f32 %v6939_v48  ;;  %11783 = vmatprep.mubr.msk.f32.mxu0 %vm12386_vm11, %v15820_v56  ;;  %11786 = vmatprep.subr.mxu1 %v15820_v56  ;;  %v6994_v3 = vmul.f32 %v12207_v40, %v14279_v22 }
 0x753   :  { %12218 = vrcp.f32 %v6936_v23  ;;  %11791 = vmatprep.subr.mxu0 %v15820_v56  ;;  %11784 = vmatmul.mubr.msk.f32.vlgmr.msra.gmra.mrb[96].mxu0 %vm2736_vm13, %v6995_v21 }
 0x754   :  { %v12209_v9 = vpop.eup %12208  ;;  %11779 = vmatmul.mubr.msk.f32.vlgmr.msra.gmra.mrb[114].mxu1 %vm2736_vm13, %v6994_v3  ;;  %11792 = vmatpush3.msra.mxu0 %v14206_v8 }
 0x755   :  { %v12211_v24 = vpop.eup %12210  ;;  %11787 = vmatpush3.msra.mxu1 %v14208_v12  ;;  %v6945_v58 = vpop.xlane.xlu1 %6944  ;;  %11788 = vmatprep.mubr.msk.f32.mxu1 %vm12386_vm11, %v15820_v56  ;;  %v6997_v22 = vmul.f32 %v12209_v9, %v14287_v4 }
 0x756   :  { %v6942_v25 = vpop.xlane.xlu0 %6941  ;;  %12220 = vrcp.f32 %v6945_v58  ;;  %11793 = vmatprep.mubr.msk.f32.mxu0 %vm12386_vm11, %v15820_v56  ;;  %11796 = vmatprep.subr.mxu1 %v15820_v56  ;;  %v6996_v37 = vmul.f32 %v12211_v24, %v14289_v16 }
 0x757   :  { %12222 = vrcp.f32 %v6942_v25  ;;  %11801 = vmatprep.subr.mxu0 %v15820_v56  ;;  %11794 = vmatmul.mubr.msk.f32.vlgmr.msra.gmra.mrb[98].mxu0 %vm2736_vm13, %v6997_v22 }
 0x758   :  { %v12213_v8 = vpop.eup %12212  ;;  %11789 = vmatmul.mubr.msk.f32.vlgmr.msra.gmra.mrb[116].mxu1 %vm2736_vm13, %v6996_v37  ;;  %11802 = vmatpush3.msra.mxu0 %v14212_v13 }
 0x759   :  { %v12215_v12 = vpop.eup %12214  ;;  %11797 = vmatpush3.msra.mxu1 %v14210_v47  ;;  %v6951_v4 = vpop.xlane.xlu1 %6950  ;;  %11798 = vmatprep.mubr.msk.f32.mxu1 %vm12386_vm11, %v15820_v56  ;;  %v6999_v16 = vmul.f32 %v12213_v8, %v14297_v14 }
 0x75a   :  { %v6948_v39 = vpop.xlane.xlu0 %6947  ;;  %12224 = vrcp.f32 %v6951_v4  ;;  %11803 = vmatprep.mubr.msk.f32.mxu0 %vm12386_vm11, %v15820_v56  ;;  %11806 = vmatprep.subr.mxu1 %v15820_v56  ;;  %v6998_v49 = vmul.f32 %v12215_v12, %v14299_v59 }
 0x75b   :  { %12226 = vrcp.f32 %v6948_v39  ;;  %11811 = vmatprep.subr.mxu0 %v15820_v56  ;;  %11804 = vmatmul.mubr.msk.f32.vlgmr.msra.gmra.mrb[100].mxu0 %vm2736_vm13, %v6999_v16 }
 0x75c   :  { %v12217_v47 = vpop.eup %12216  ;;  %11799 = vmatmul.mubr.msk.f32.vlgmr.msra.gmra.mrb[118].mxu1 %vm2736_vm13, %v6998_v49  ;;  %11812 = vmatpush3.msra.mxu0 %v14216_v36 }
 0x75d   :  { %v12219_v13 = vpop.eup %12218  ;;  %11807 = vmatpush3.msra.mxu1 %v14214_v46  ;;  %v6957_v14 = vpop.xlane.xlu1 %6956  ;;  %11808 = vmatprep.mubr.msk.f32.mxu1 %vm12386_vm11, %v15820_v56  ;;  %v7001_v59 = vmul.f32 %v12217_v47, %v14307_v55 }
 0x75e   :  { %v6954_v28 = vpop.xlane.xlu0 %6953  ;;  %12228 = vrcp.f32 %v6957_v14  ;;  %11813 = vmatprep.mubr.msk.f32.mxu0 %vm12386_vm11, %v15820_v56  ;;  %11816 = vmatprep.subr.mxu1 %v15820_v56  ;;  %v7000_v50 = vmul.f32 %v12219_v13, %v14309_v7 }
 0x75f   :  { %12230 = vrcp.f32 %v6954_v28  ;;  %11821 = vmatprep.subr.mxu0 %v15820_v56  ;;  %11814 = vmatmul.mubr.msk.f32.vlgmr.msra.gmra.mrb[102].mxu0 %vm2736_vm13, %v7001_v59 }
 0x760   :  { %v12221_v46 = vpop.eup %12220  ;;  %11809 = vmatmul.mubr.msk.f32.vlgmr.msra.gmra.mrb[120].mxu1 %vm2736_vm13, %v7000_v50  ;;  %11822 = vmatpush3.msra.mxu0 %v14220_v57 }
 0x761   :  { %v12223_v36 = vpop.eup %12222  ;;  %11817 = vmatpush3.msra.mxu1 %v14218_v20  ;;  %11818 = vmatprep.mubr.msk.f32.mxu1 %vm12386_vm11, %v15820_v56  ;;  %v7003_v31 = vmul.f32 %v12221_v46, %v14316_v43  ;;  %v8758_v18 = vpop.permute.xlu1 %8757 }
 0x762   :  { %v6960_v55 = vpop.xlane.xlu0 %6959  ;;  %11823 = vmatprep.mubr.msk.f32.mxu0 %vm12386_vm11, %v15820_v56  ;;  %11826 = vmatprep.subr.mxu1 %v15820_v56  ;;  %v7002_v7 = vmul.f32 %v12223_v36, %v14318_v1 }
 0x763   :  { %12232 = vrcp.f32 %v6960_v55  ;;  %11831 = vmatprep.subr.mxu0 %v15820_v56  ;;  %11824 = vmatmul.mubr.msk.f32.vlgmr.msra.gmra.mrb[104].mxu0 %vm2736_vm13, %v7003_v31 }
 0x764   :  { %v12225_v57 = vpop.eup %12224  ;;  %11819 = vmatmul.mubr.msk.f32.vlgmr.msra.gmra.mrb[122].mxu1 %vm2736_vm13, %v7002_v7  ;;  %11832 = vmatpush3.msra.mxu0 %v14350_v62 }
 0x765   :  { %v12227_v20 = vpop.eup %12226  ;;  %11827 = vmatpush3.msra.mxu1 %v14222_v5  ;;  %11828 = vmatprep.mubr.msk.f32.mxu1 %vm12386_vm11, %v15820_v56  ;;  %v7005_v51 = vmul.f32 %v12225_v57, %v14324_v41 }
 0x766   :  { %v8682_v43 = vpop.permute.xlu0 %8681  ;;  %11833 = vmatprep.mubr.msk.f32.mxu0 %vm12386_vm11, %v15820_v56  ;;  %11836 = vmatprep.subr.mxu1 %v15820_v56  ;;  %v7004_v1 = vmul.f32 %v12227_v20, %v14326_v33 }
 0x767   :  { %11841 = vmatprep.subr.mxu0 %v15820_v56  ;;  %11834 = vmatmul.mubr.msk.f32.vlgmr.msra.gmra.mrb[106].mxu0 %vm2736_vm13, %v7005_v51 }
 0x768   :  { %v12229_v62 = vpop.eup %12228  ;;  %11829 = vmatmul.mubr.msk.f32.vlgmr.msra.gmra.mrb[124].mxu1 %vm2736_vm13, %v7004_v1  ;;  %11842 = vmatpush3.msra.mxu0 %v8682_v43 }
 0x769   :  { %v12231_v5 = vpop.eup %12230  ;;  %11837 = vmatpush3.msra.mxu1 %v14348_v29  ;;  %11838 = vmatprep.mubr.msk.f32.mxu1 %vm12386_vm11, %v15820_v56  ;;  %v7007_v41 = vmul.f32 %v12229_v62, %v14332_v38  ;;  %v12032_v38 = vld [vmem:[%s15666_s5] sm:$0xff]  }
 0x76a   :  { %11843 = vmatprep.mubr.msk.f32.mxu0 %vm12386_vm11, %v15820_v56  ;;  %11846 = vmatprep.subr.mxu1 %v15820_v56  ;;  %v7006_v33 = vmul.f32 %v12231_v5, %v14334_v53 }
 0x76b   :  { %11844 = vmatmul.mubr.msk.f32.vlgmr.msra.gmra.mrb[108].mxu0 %vm2736_vm13, %v7007_v41  ;;  %11851 = vmatprep.subr.bf16.mxu0 %v12032_v38 }
 0x76c   :  { %11839 = vmatmul.mubr.msk.f32.vlgmr.msra.gmra.mrb[126].mxu1 %vm2736_vm13, %v7006_v33  ;;  %11852 = vmatpush3.bf16.msra.mxu0 %v12032_v38 }
 0x76d   :  { %v12233_v34 = vpop.eup %12232  ;;  %11847 = vmatpush3.msra.mxu1 %v8758_v18  ;;  %11848 = vmatprep.mubr.msk.f32.mxu1 %vm12386_vm11, %v15820_v56 }
 0x76e   :  { %v7008_v29 = vmul.f32 %v12233_v34, %v14340_v6  ;;  %11853 = vmatprep.subr.bf16.mxu0 %v12033_v54 }
 0x770   :  { %11849 = vmatmul.mubr.msk.f32.vlgmr.msra.gmra.mrb[128].mxu1 %vm2736_vm13, %v7008_v29  ;;  %11854 = vmatpush3.bf16.msra.mxu0 %v12033_v54 }
 0x811   :  { %v7081_v53 = vpop.f32.mrb[86].mxu0 }
 0x812   :  { %v11735_v44 = vpop.f32.mrb[87].mxu0 }
 0x815   :  { %v7157_v42 = vpop.f32.mrb[106].mxu1 }
 0x816   :  { %v11966_v52 = vpack.i.bf16 %v7157_v42, %v7081_v53  ;;  %v7233_v63 = vpop.f32.mrb[88].mxu0  ;;  %v11740_v56 = vpop.f32.mrb[107].mxu1 }
 0x817   :  { %v11745_v6 = vpop.f32.mrb[89].mxu0 }
 0x818   :  { %11967 = vrot.lane.b32.xlu0 %v11966_v52, %s12392_s22 }
 0x81a   :  { %v7385_v35 = vpop.f32.mrb[90].mxu0 }
 0x81b   :  { %v7309_v15 = vpop.f32.mrb[108].mxu1  ;;  %v11755_v19 = vpop.f32.mrb[91].mxu0 }
 0x81c   :  { %v11971_v26 = vpack.i.bf16 %v7309_v15, %v7233_v63  ;;  %v11750_v32 = vpop.f32.mrb[109].mxu1 }
 0x81e   :  { %11972 = vrot.lane.b32.xlu1 %v11971_v26, %s12392_s22  ;;  %v7537_v0 = vpop.f32.mrb[92].mxu0 }
 0x81f   :  { %v7461_v10 = vpop.f32.mrb[110].mxu1  ;;  %v11765_v30 = vpop.f32.mrb[93].mxu0 }
 0x820   :  { %v11976_v27 = vpack.i.bf16 %v7461_v10, %v7385_v35  ;;  %v11760_v45 = vpop.f32.mrb[111].mxu1 }
 0x822   :  { %11977 = vrot.lane.b32.xlu0 %v11976_v27, %s12392_s22  ;;  %v7689_v40 = vpop.f32.mrb[94].mxu0 }
 0x823   :  { %v7613_v48 = vpop.f32.mrb[112].mxu1  ;;  %v11775_v23 = vpop.f32.mrb[95].mxu0 }
 0x824   :  { %v11981_v21 = vpack.i.bf16 %v7613_v48, %v7537_v0  ;;  %v11770_v3 = vpop.f32.mrb[113].mxu1 }
 0x825   :  { %v15909_v3 = vld [vmem:[#allocation26_spill] sm:$0xff] }
 0x826   :  { %11982 = vrot.lane.b32.xlu1 %v11981_v21, %s12392_s22  ;;  %v7841_v9 = vpop.f32.mrb[96].mxu0 }
 0x827   :  { %v7765_v24 = vpop.f32.mrb[114].mxu1  ;;  %v11785_v58 = vpop.f32.mrb[97].mxu0 }
 0x828   :  { %v11986_v25 = vpack.i.bf16 %v7765_v24, %v7689_v40  ;;  %v11780_v22 = vpop.f32.mrb[115].mxu1 }
 0x82a   :  { %11987 = vrot.lane.b32.xlu0 %v11986_v25, %s12392_s22  ;;  %v7993_v37 = vpop.f32.mrb[98].mxu0 }
 0x82b   :  { %v7917_v8 = vpop.f32.mrb[116].mxu1  ;;  %v11795_v12 = vpop.f32.mrb[99].mxu0 }
 0x82c   :  { %v11991_v4 = vpack.i.bf16 %v7917_v8, %v7841_v9  ;;  %v11790_v39 = vpop.f32.mrb[117].mxu1  ;;  %v15911_v8 = vld [vmem:[#allocation52_spill] sm:$0xff] }
 0x82e   :  { %11992 = vrot.lane.b32.xlu1 %v11991_v4, %s12392_s22  ;;  %v8145_v16 = vpop.f32.mrb[100].mxu0 }
 0x82f   :  { %v8069_v49 = vpop.f32.mrb[118].mxu1  ;;  %v11805_v47 = vpop.f32.mrb[101].mxu0 }
 0x830   :  { %v11996_v13 = vpack.i.bf16 %v8069_v49, %v7993_v37  ;;  %v11800_v14 = vpop.f32.mrb[119].mxu1  ;;  %v15912_v47 = vld [vmem:[#allocation58_spill] sm:$0xff] }
 0x831   :  { %v15913_v14 = vld [vmem:[#allocation27_spill] sm:$0xff] }
 0x832   :  { %11997 = vrot.lane.b32.xlu0 %v11996_v13, %s12392_s22  ;;  %v8297_v28 = vpop.f32.mrb[102].mxu0 }
 0x833   :  { %v8221_v59 = vpop.f32.mrb[120].mxu1  ;;  %v11815_v50 = vpop.f32.mrb[103].mxu0 }
 0x834   :  { %v12001_v46 = vpack.i.bf16 %v8221_v59, %v8145_v16  ;;  %v11810_v36 = vpop.f32.mrb[121].mxu1 }
 0x836   :  { %12002 = vrot.lane.b32.xlu1 %v12001_v46, %s12392_s22  ;;  %v8449_v55 = vpop.f32.mrb[104].mxu0 }
 0x837   :  { %v8373_v31 = vpop.f32.mrb[122].mxu1  ;;  %v11825_v7 = vpop.f32.mrb[105].mxu0 }
 0x838   :  { %v12006_v57 = vpack.i.bf16 %v8373_v31, %v8297_v28  ;;  %v11820_v20 = vpop.f32.mrb[123].mxu1  ;;  %v15915_v7 = vld [vmem:[#allocation54_spill] sm:$0xff] }
 0x83a   :  { %12007 = vrot.lane.b32.xlu0 %v12006_v57, %s12392_s22  ;;  %v8601_v43 = vpop.f32.mrb[106].mxu0 }
 0x83b   :  { %v8525_v51 = vpop.f32.mrb[124].mxu1  ;;  %v11835_v1 = vpop.f32.mrb[107].mxu0 }
 0x83c   :  { %v12011_v62 = vpack.i.bf16 %v8525_v51, %v8449_v55  ;;  %v11830_v5 = vpop.f32.mrb[125].mxu1  ;;  %v15914_v55 = vld [vmem:[#allocation28_spill] sm:$0xff] }
 0x83e   :  { %12012 = vrot.lane.b32.xlu1 %v12011_v62, %s12392_s22  ;;  %v8753_v41 = vpop.f32.mrb[108].mxu0  ;;  %v15916_v62 = vld [vmem:[#allocation61_spill] sm:$0xff] }
 0x83f   :  { %v8677_v33 = vpop.f32.mrb[126].mxu1  ;;  %v11845_v34 = vpop.f32.mrb[109].mxu0 }
 0x840   :  { %v12016_v18 = vpack.i.bf16 %v8677_v33, %v8601_v43  ;;  %v11840_v29 = vpop.f32.mrb[127].mxu1 }
 0x842   :  { %12017 = vrot.lane.b32.xlu0 %v12016_v18, %s12392_s22 }
 0x843   :  { %v8829_v38 = vpop.f32.mrb[128].mxu1 }
 0x844   :  { %v12021_v53 = vpack.i.bf16 %v8829_v38, %v8753_v41  ;;  %v11850_v44 = vpop.f32.mrb[129].mxu1  ;;  %v15917_v41 = vld [vmem:[#allocation59_spill] sm:$0xff] }
 0x846   :  { %12022 = vrot.lane.b32.xlu1 %v12021_v53, %s12392_s22  ;;  %v15918_v53 = vld [vmem:[#allocation62_spill] sm:$0xff] }
 0x88a   :  { %v11968_v54 = vpop.permute.xlu0 %11967 }
 0x88b   :  { %v11970_v42 = vunpack.i.h.bf16 %v11968_v54  ;;  %v11969_v52 = vunpack.i.l.bf16 %v11968_v54  ;;  %v15919_v54 = vld [vmem:[#allocation30_spill] sm:$0xff] }
 0x88d   :  { %v8930_v63 = vsel %vm698_vm12, %v14016_v61, %v11970_v42  ;;  %v8929_v56 = vsel %vm698_vm12, %v14018_v2, %v11969_v52  ;;  %v15907_v2 = vld [vmem:[#allocation45_spill] sm:$0xff] }
 0x88e   :  { %v8953_v6 = vpack.c.bf16 %v8930_v63, %v8929_v56 }
 0x890   :  { %v11973_v35 = vpop.permute.xlu1 %11972  ;;  %11855 = vmatprep.mubr.msk.bf16.mxu0 %vm457_vm10, %v8953_v6 }
 0x891   :  { %v11975_v15 = vunpack.i.h.bf16 %v11973_v35  ;;  %v11974_v19 = vunpack.i.l.bf16 %v11973_v35  ;;  %v15920_v35 = vld [vmem:[#allocation64_spill] sm:$0xff] }
 0x893   :  { %v8932_v26 = vsel %vm698_vm12, %v14020_v17, %v11975_v15  ;;  %v8931_v32 = vsel %vm698_vm12, %v14022_v60, %v11974_v19  ;;  %v15908_v17 = vld [vmem:[#allocation29_spill] sm:$0xff]  ;;  %v15921_v19 = vld [vmem:[#allocation63_spill] sm:$0xff] }
 0x894   :  { %v8954_v0 = vpack.c.bf16 %v8932_v26, %v8931_v32  ;;  %v11978_v10 = vpop.permute.xlu0 %11977 }
 0x895   :  { %v11980_v30 = vunpack.i.h.bf16 %v11978_v10  ;;  %v11979_v27 = vunpack.i.l.bf16 %v11978_v10 }
 0x896   :  { %11856 = vmatmul.mubr.msk.bf16.vlgmr.msra.gmra.mrb[112].mxu0 %vm457_vm10, %v8954_v0 }
 0x897   :  { %v8934_v61 = vsel %vm698_vm12, %v14026_v11, %v11980_v30  ;;  %v8933_v45 = vsel %vm698_vm12, %v15907_v2, %v11979_v27  ;;  %v15910_v11 = vld [vmem:[#allocation49_spill] sm:$0xff]  ;;  %v15922_v27 = vld [vmem:[#allocation66_spill] sm:$0xff] }
 0x898   :  { %v11983_v40 = vpop.permute.xlu1 %11982  ;;  %v8955_v48 = vpack.c.bf16 %v8934_v61, %v8933_v45  ;;  %v15923_v2 = vld [vmem:[#allocation65_spill] sm:$0xff] }
 0x899   :  { %v11985_v23 = vunpack.i.h.bf16 %v11983_v40  ;;  %v11984_v21 = vunpack.i.l.bf16 %v11983_v40 }
 0x89a   :  { %11859 = vmatprep.mubr.msk.bf16.mxu0 %vm457_vm10, %v8955_v48 }
 0x89b   :  { %v8936_v60 = vsel %vm698_vm12, %v15908_v17, %v11985_v23  ;;  %v8935_v9 = vsel %vm698_vm12, %v15909_v3, %v11984_v21  ;;  %v15924_v17 = vld [vmem:[#allocation92_spill] sm:$0xff]  ;;  %v15925_v3 = vld [vmem:[#allocation67_spill] sm:$0xff] }
 0x89c   :  { %v11988_v24 = vpop.permute.xlu0 %11987  ;;  %v8956_v58 = vpack.c.bf16 %v8936_v60, %v8935_v9 }
 0x89d   :  { %v11990_v25 = vunpack.i.h.bf16 %v11988_v24  ;;  %v11989_v22 = vunpack.i.l.bf16 %v11988_v24 }
 0x89e   :  { %11860 = vmatmul.mubr.msk.bf16.gmra.mrb[116].mxu0 %vm457_vm10, %v8956_v58  ;;  %v14565_v58 = vld [vmem:[%s15664_s9 + $0x1] ss:$0 sm:$0xff] }
 0x89f   :  { %v8938_v37 = vsel %vm698_vm12, %v15910_v11, %v11990_v25  ;;  %v8937_v12 = vsel %vm698_vm12, %v15911_v8, %v11989_v22 }
 0x8a0   :  { %v11993_v4 = vpop.permute.xlu1 %11992  ;;  %v8957_v39 = vpack.c.bf16 %v8938_v37, %v8937_v12 }
 0x8a1   :  { %v11995_v16 = vunpack.i.h.bf16 %v11993_v4  ;;  %v11994_v49 = vunpack.i.l.bf16 %v11993_v4  ;;  %v15926_v4 = vld [vmem:[#allocation3_spill] sm:$0xff] }
 0x8a2   :  { %11863 = vmatprep.mubr.msk.bf16.mxu0 %vm457_vm10, %v8957_v39 }
 0x8a3   :  { %v8940_v13 = vsel %vm698_vm12, %v15912_v47, %v11995_v16  ;;  %v8939_v28 = vsel %vm698_vm12, %v15913_v14, %v11994_v49  ;;  %v15927_v49 = vld [vmem:[#allocation5_spill] sm:$0xff]  ;;  %v15928_v14 = vld [vmem:[#allocation4_spill] sm:$0xff] }
 0x8a4   :  { %v11998_v59 = vpop.permute.xlu0 %11997  ;;  %v8958_v50 = vpack.c.bf16 %v8940_v13, %v8939_v28 }
 0x8a5   :  { %v12000_v46 = vunpack.i.h.bf16 %v11998_v59  ;;  %v11999_v36 = vunpack.i.l.bf16 %v11998_v59 }
 0x8a6   :  { %11864 = vmatmul.mubr.msk.bf16.gmra.mrb[120].mxu0 %vm457_vm10, %v8958_v50 }
 0x8a7   :  { %v8942_v31 = vsel %vm698_vm12, %v15914_v55, %v12000_v46  ;;  %v8941_v57 = vsel %vm698_vm12, %v15915_v7, %v11999_v36  ;;  %v15929_v55 = vld [vmem:[#allocation2_spill] sm:$0xff] }
 0x8a8   :  { %v12003_v20 = vpop.permute.xlu1 %12002  ;;  %v8959_v43 = vpack.c.bf16 %v8942_v31, %v8941_v57 }
 0x8a9   :  { %v12005_v51 = vunpack.i.h.bf16 %v12003_v20  ;;  %v12004_v1 = vunpack.i.l.bf16 %v12003_v20 }
 0x8aa   :  { %11867 = vmatprep.mubr.msk.bf16.mxu0 %vm457_vm10, %v8959_v43 }
 0x8ab   :  { %v8944_v5 = vsel %vm698_vm12, %v15916_v62, %v12005_v51  ;;  %v8943_v33 = vsel %vm698_vm12, %v15917_v41, %v12004_v1  ;;  %v15930_v1 = vld [vmem:[#allocation7_spill] sm:$0xff] }
 0x8ac   :  { %v12008_v34 = vpop.permute.xlu0 %12007  ;;  %v8960_v18 = vpack.c.bf16 %v8944_v5, %v8943_v33  ;;  %v15931_v33 = vld [vmem:[#allocation9_spill] sm:$0xff] }
 0x8ad   :  { %v12010_v29 = vunpack.i.h.bf16 %v12008_v34  ;;  %v12009_v38 = vunpack.i.l.bf16 %v12008_v34 }
 0x8ae   :  { %11868 = vmatmul.mubr.msk.bf16.gmra.mrb[124].mxu0 %vm457_vm10, %v8960_v18  ;;  %v15932_v18 = vld [vmem:[#allocation8_spill] sm:$0xff] }
 0x8af   :  { %v8946_v44 = vsel %vm698_vm12, %v15918_v53, %v12010_v29  ;;  %v8945_v42 = vsel %vm698_vm12, %v15919_v54, %v12009_v38  ;;  %v15933_v54 = vld [vmem:[#allocation6_spill] sm:$0xff] }
 0x8b0   :  { %v12013_v52 = vpop.permute.xlu1 %12012  ;;  %v8961_v63 = vpack.c.bf16 %v8946_v44, %v8945_v42 }
 0x8b1   :  { %v12015_v56 = vunpack.i.h.bf16 %v12013_v52  ;;  %v12014_v6 = vunpack.i.l.bf16 %v12013_v52 }
 0x8b2   :  { %11871 = vmatprep.mubr.msk.bf16.mxu0 %vm457_vm10, %v8961_v63 }
 0x8b3   :  { %v8948_v15 = vsel %vm698_vm12, %v15920_v35, %v12015_v56  ;;  %v8947_v26 = vsel %vm698_vm12, %v15921_v19, %v12014_v6 }
 0x8b4   :  { %v12018_v32 = vpop.permute.xlu0 %12017  ;;  %v8962_v0 = vpack.c.bf16 %v8948_v15, %v8947_v26  ;;  %v15934_v26 = vld [vmem:[#allocation11_spill] sm:$0xff] }
 0x8b5   :  { %v12020_v10 = vunpack.i.h.bf16 %v12018_v32  ;;  %v12019_v30 = vunpack.i.l.bf16 %v12018_v32 }
 0x8b6   :  { %11872 = vmatmul.mubr.msk.bf16.gmra.mrb[128].mxu0 %vm457_vm10, %v8962_v0 }
 0x8b7   :  { %v8950_v61 = vsel %vm698_vm12, %v15922_v27, %v12020_v10  ;;  %v8949_v45 = vsel %vm698_vm12, %v15923_v2, %v12019_v30  ;;  %v15935_v30 = vld [vmem:[#allocation13_spill] sm:$0xff] }
 0x8b8   :  { %v12023_v40 = vpop.permute.xlu1 %12022  ;;  %v8963_v48 = vpack.c.bf16 %v8950_v61, %v8949_v45  ;;  %v15936_v61 = vld [vmem:[#allocation12_spill] sm:$0xff] }
 0x8b9   :  { %v12025_v23 = vunpack.i.h.bf16 %v12023_v40  ;;  %v12024_v21 = vunpack.i.l.bf16 %v12023_v40 }
 0x8ba   :  { %11875 = vmatprep.mubr.msk.bf16.mxu0 %vm457_vm10, %v8963_v48 }
 0x8bb   :  { %v8952_v60 = vsel %vm698_vm12, %v15924_v17, %v12025_v23  ;;  %v8951_v9 = vsel %vm698_vm12, %v15925_v3, %v12024_v21  ;;  %v15937_v23 = vld [vmem:[#allocation10_spill] sm:$0xff] }
 0x8bc   :  { %v8964_v24 = vpack.c.bf16 %v8952_v60, %v8951_v9 }
 0x8be   :  { %11876 = vmatmul.mubr.msk.bf16.gmra.mrb[132].mxu0 %vm457_vm10, %v8964_v24 }
 0x969   :  { %v11857_v25 = vpop.f32.mrb[112].mxu0 }
 0x96a   :  { %v9055_v22 = vpop.f32.mrb[113].mxu0  ;;  %v9064_v11 = vadd.f32 %v11857_v25, %v14565_v58 }
 0x96b   :  { %v9056_v37 = vadd.f32 %v14565_v58, %v9055_v22  ;;  %v11858_v8 = vpop.f32.mrb[114].mxu0 }
 0x96c   :  { %v9058_v12 = vpop.f32.mrb[115].mxu0  ;;  %v14574_v47 = vadd.f32 %v9064_v11, %v15927_v49  ;;  %v9067_v13 = vadd.f32 %v11858_v8, %v14565_v58  ;;  %v15938_v11 = vld [vmem:[#allocation15_spill] sm:$0xff]  ;;  %v15940_v49 = vld [vmem:[#allocation16_spill] sm:$0xff] }
 0x96d   :  { %v14570_v39 = vadd.f32 %v9056_v37, %v15926_v4  ;;  %v9059_v16 = vadd.f32 %v14565_v58, %v9058_v12  ;;  %v15939_v4 = vld [vmem:[#allocation17_spill] sm:$0xff] }
 0x96e   :  { %v14585_v31 = vadd.f32 %v9067_v13, %v15929_v55  ;;  %v9180_v43 = vsel %vm457_vm10, %v14574_v47, 0.0 }
 0x96f   :  { %v14578_v28 = vadd.f32 %v9059_v16, %v15928_v14  ;;  %v9174_v59 = vsel %vm457_vm10, %v14570_v39, 0.0 }
 0x970   :  { %9175 = vadd.xlane.f32.xlu0 %v9174_v59  ;;  %v9183_v53 = vsel %vm457_vm10, %v14585_v31, 0.0 }
 0x971   :  { %v11861_v50 = vpop.f32.mrb[116].mxu0  ;;  %v9177_v46 = vsel %vm457_vm10, %v14578_v28, 0.0 }
 0x972   :  { %v9071_v36 = vpop.f32.mrb[117].mxu0  ;;  %9178 = vadd.xlane.f32.xlu1 %v9177_v46  ;;  %v9080_v7 = vadd.f32 %v11861_v50, %v14565_v58  ;;  %v15941_v46 = vld [vmem:[#allocation14_spill] sm:$0xff] }
 0x973   :  { %v9072_v57 = vadd.f32 %v14565_v58, %v9071_v36  ;;  %v11862_v20 = vpop.f32.mrb[118].mxu0 }
 0x974   :  { %v9074_v51 = vpop.f32.mrb[119].mxu0  ;;  %9181 = vadd.xlane.f32.xlu0 %v9180_v43  ;;  %v9083_v41 = vadd.f32 %v11862_v20, %v14565_v58  ;;  %v14597_v34 = vadd.f32 %v9080_v7, %v15931_v33 }
 0x975   :  { %v14592_v62 = vadd.f32 %v9072_v57, %v15930_v1  ;;  %v9075_v5 = vadd.f32 %v14565_v58, %v9074_v51 }
 0x976   :  { %v14607_v42 = vadd.f32 %v9083_v41, %v15933_v54  ;;  %v9192_v35 = vsel %vm457_vm10, %v14597_v34, 0.0 }
 0x977   :  { %v14600_v29 = vadd.f32 %v9075_v5, %v15932_v18  ;;  %v9186_v38 = vsel %vm457_vm10, %v14592_v62, 0.0  ;;  %v15942_v5 = vld [vmem:[#allocation18_spill] sm:$0xff] }
 0x978   :  { %9187 = vadd.xlane.f32.xlu1 %v9186_v38  ;;  %9184 = vadd.xlane.f32.xlu0 %v9183_v53  ;;  %v9195_v40 = vsel %vm457_vm10, %v14607_v42, 0.0  ;;  %v15943_v38 = vld [vmem:[#allocation21_spill] sm:$0xff] }
 0x979   :  { %v11865_v44 = vpop.f32.mrb[120].mxu0  ;;  %v9189_v15 = vsel %vm457_vm10, %v14600_v29, 0.0 }
 0x97a   :  { %v9087_v52 = vpop.f32.mrb[121].mxu0  ;;  %v9096_v63 = vadd.f32 %v11865_v44, %v14565_v58  ;;  %v15944_v44 = vld [vmem:[#allocation20_spill] sm:$0xff] }
 0x97b   :  { %v9088_v56 = vadd.f32 %v14565_v58, %v9087_v52  ;;  %v11866_v6 = vpop.f32.mrb[122].mxu0 }
 0x97c   :  { %v9090_v19 = vpop.f32.mrb[123].mxu0  ;;  %9193 = vadd.xlane.f32.xlu1 %v9192_v35  ;;  %9190 = vadd.xlane.f32.xlu0 %v9189_v15  ;;  %v9099_v10 = vadd.f32 %v11866_v6, %v14565_v58  ;;  %v14621_v27 = vadd.f32 %v9096_v63, %v15935_v30  ;;  %v15945_v6 = vld [vmem:[#allocation19_spill] sm:$0xff] }
 0x97d   :  { %v14616_v32 = vadd.f32 %v9088_v56, %v15934_v26  ;;  %v9091_v0 = vadd.f32 %v14565_v58, %v9090_v19 }
 0x97e   :  { %v14631_v21 = vadd.f32 %v9099_v10, %v15937_v23  ;;  %v9204_v24 = vsel %vm457_vm10, %v14621_v27, 0.0 }
 0x97f   :  { %v14624_v2 = vadd.f32 %v9091_v0, %v15936_v61  ;;  %v9198_v45 = vsel %vm457_vm10, %v14616_v32, 0.0 }
 0x980   :  { %9199 = vadd.xlane.f32.xlu1 %v9198_v45  ;;  %9196 = vadd.xlane.f32.xlu0 %v9195_v40  ;;  %v9207_v59 = vsel %vm457_vm10, %v14631_v21, 0.0  ;;  %v15946_v45 = vld [vmem:[#allocation22_spill] sm:$0xff] }
 0x981   :  { %v11869_v48 = vpop.f32.mrb[124].mxu0  ;;  %v9201_v25 = vsel %vm457_vm10, %v14624_v2, 0.0 }
 0x982   :  { %v9103_v17 = vpop.f32.mrb[125].mxu0  ;;  %v9112_v60 = vadd.f32 %v11869_v48, %v14565_v58 }
 0x983   :  { %v9104_v3 = vadd.f32 %v14565_v58, %v9103_v17  ;;  %v11870_v9 = vpop.f32.mrb[126].mxu0  ;;  %v15947_v17 = vld [vmem:[#allocation25_spill] sm:$0xff] }
 0x984   :  { %v9106_v22 = vpop.f32.mrb[127].mxu0  ;;  %9205 = vadd.xlane.f32.xlu1 %v9204_v24  ;;  %9202 = vadd.xlane.f32.xlu0 %v9201_v25  ;;  %v9115_v12 = vadd.f32 %v11870_v9, %v14565_v58  ;;  %v14645_v16 = vadd.f32 %v9112_v60, %v15939_v4  ;;  %v15948_v9 = vld [vmem:[#allocation24_spill] sm:$0xff] }
 0x985   :  { %v14640_v37 = vadd.f32 %v9104_v3, %v15938_v11  ;;  %v9107_v8 = vadd.f32 %v14565_v58, %v9106_v22  ;;  %v15949_v22 = vld [vmem:[#allocation23_spill] sm:$0xff] }
 0x986   :  { %v14655_v36 = vadd.f32 %v9115_v12, %v15941_v46  ;;  %v9216_v43 = vsel %vm457_vm10, %v14645_v16, 0.0 }
 0x987   :  { %v14648_v13 = vadd.f32 %v9107_v8, %v15940_v49  ;;  %v9210_v14 = vsel %vm457_vm10, %v14640_v37, 0.0 }
 0x988   :  { %9211 = vadd.xlane.f32.xlu1 %v9210_v14  ;;  %9208 = vadd.xlane.f32.xlu0 %v9207_v59  ;;  %v9219_v63 = vsel %vm457_vm10, %v14655_v36, 0.0 }
 0x989   :  { %v11873_v50 = vpop.f32.mrb[128].mxu0  ;;  %v9213_v51 = vsel %vm457_vm10, %v14648_v13, 0.0 }
 0x98a   :  { %v9119_v55 = vpop.f32.mrb[129].mxu0  ;;  %v9128_v7 = vadd.f32 %v11873_v50, %v14565_v58 }
 0x98b   :  { %v9120_v57 = vadd.f32 %v14565_v58, %v9119_v55  ;;  %v11874_v20 = vpop.f32.mrb[130].mxu0 }
 0x98c   :  { %v9122_v1 = vpop.f32.mrb[131].mxu0  ;;  %9217 = vadd.xlane.f32.xlu1 %v9216_v43  ;;  %9214 = vadd.xlane.f32.xlu0 %v9213_v51  ;;  %v9131_v18 = vadd.f32 %v11874_v20, %v14565_v58  ;;  %v14669_v53 = vadd.f32 %v9128_v7, %v15943_v38 }
 0x98d   :  { %v14664_v41 = vadd.f32 %v9120_v57, %v15942_v5  ;;  %v9123_v33 = vadd.f32 %v14565_v58, %v9122_v1 }
 0x98e   :  { %v14679_v35 = vadd.f32 %v9131_v18, %v15945_v6  ;;  %v9228_v10 = vsel %vm457_vm10, %v14669_v53, 0.0 }
 0x98f   :  { %v14672_v54 = vadd.f32 %v9123_v33, %v15944_v44  ;;  %v9222_v52 = vsel %vm457_vm10, %v14664_v41, 0.0 }
 0x990   :  { %9223 = vadd.xlane.f32.xlu1 %v9222_v52  ;;  %9220 = vadd.xlane.f32.xlu0 %v9219_v63  ;;  %v9231_v23 = vsel %vm457_vm10, %v14679_v35, 0.0 }
 0x991   :  { %v11877_v56 = vpop.f32.mrb[132].mxu0  ;;  %v9225_v30 = vsel %vm457_vm10, %v14672_v54, 0.0 }
 0x992   :  { %v9135_v15 = vpop.f32.mrb[133].mxu0  ;;  %v9144_v19 = vadd.f32 %v11877_v56, %v14565_v58 }
 0x993   :  { %v9136_v26 = vadd.f32 %v14565_v58, %v9135_v15  ;;  %v11878_v0 = vpop.f32.mrb[134].mxu0 }
 0x994   :  { %v9138_v61 = vpop.f32.mrb[135].mxu0  ;;  %9229 = vadd.xlane.f32.xlu1 %v9228_v10  ;;  %9226 = vadd.xlane.f32.xlu0 %v9225_v30  ;;  %v14694_v60 = vadd.f32 %v9144_v19, %v15947_v17  ;;  %v9147_v3 = vadd.f32 %v11878_v0, %v14565_v58 }
 0x995   :  { %v14688_v40 = vadd.f32 %v9136_v26, %v15946_v45  ;;  %v9139_v48 = vadd.f32 %v14565_v58, %v9138_v61 }
 0x996   :  { %v14703_v11 = vadd.f32 %v9147_v3, %v15949_v22  ;;  %v9240_v8 = vsel %vm457_vm10, %v14694_v60, 0.0 }
 0x997   :  { %v14698_v24 = vadd.f32 %v9139_v48, %v15948_v9  ;;  %v9234_v25 = vsel %vm457_vm10, %v14688_v40, 0.0 }
 0x998   :  { %9235 = vadd.xlane.f32.xlu1 %v9234_v25  ;;  %9232 = vadd.xlane.f32.xlu0 %v9231_v23  ;;  %v9243_v58 = vsel %vm457_vm10, %v14703_v11, 0.0 }
 0x999   :  { %v9237_v12 = vsel %vm457_vm10, %v14698_v24, 0.0 }
 0x99c   :  { %9241 = vadd.xlane.f32.xlu1 %v9240_v8  ;;  %9238 = vadd.xlane.f32.xlu0 %v9237_v12 }
 0x9a0   :  { %9244 = vadd.xlane.f32.xlu0 %v9243_v58 }
 0x9fd   :  { %v9176_v4 = vpop.xlane.xlu0 %9175 }
 0x9fe   :  { %v9247_v49 = vmul.f32 0.03125, %v9176_v4 }
 0x9ff   :  { %v9179_v14 = vpop.xlane.xlu1 %9178 }
 0xa00   :  { %v14712_v59 = vsub.f32 %v14570_v39, %v9247_v49  ;;  %v9248_v50 = vmul.f32 0.03125, %v9179_v14 }
 0xa01   :  { %v9182_v46 = vpop.xlane.xlu0 %9181 }
 0xa02   :  { %v14715_v55 = vsub.f32 %v14578_v28, %v9248_v50  ;;  %v9249_v7 = vmul.f32 0.03125, %v9182_v46  ;;  %v9295_v57 = vmul.f32 %v14712_v59, %v14712_v59 }
 0xa04   :  { %v14720_v20 = vsub.f32 %v14574_v47, %v9249_v7  ;;  %v9319_v43 = vsel %vm457_vm10, %v9295_v57, 0.0  ;;  %v9296_v51 = vmul.f32 %v14715_v55, %v14715_v55 }
 0xa05   :  { %v9188_v1 = vpop.xlane.xlu1 %9187  ;;  %9320 = vadd.xlane.f32.xlu1 %v9319_v43  ;;  %v9185_v39 = vpop.xlane.xlu0 %9184 }
 0xa06   :  { %v9251_v5 = vmul.f32 0.03125, %v9188_v1  ;;  %v9250_v33 = vmul.f32 0.03125, %v9185_v39  ;;  %v9322_v28 = vsel %vm457_vm10, %v9296_v51, 0.0  ;;  %v9297_v18 = vmul.f32 %v14720_v20, %v14720_v20 }
 0xa07   :  { %9323 = vadd.xlane.f32.xlu0 %v9322_v28 }
 0xa08   :  { %v14729_v38 = vsub.f32 %v14592_v62, %v9251_v5  ;;  %v14732_v47 = vsub.f32 %v14585_v31, %v9250_v33  ;;  %v9325_v44 = vsel %vm457_vm10, %v9297_v18, 0.0 }
 0xa09   :  { %v9194_v52 = vpop.xlane.xlu1 %9193  ;;  %9326 = vadd.xlane.f32.xlu1 %v9325_v44  ;;  %v9191_v63 = vpop.xlane.xlu0 %9190 }
 0xa0a   :  { %v9253_v56 = vmul.f32 0.03125, %v9194_v52  ;;  %v9252_v6 = vmul.f32 0.03125, %v9191_v63  ;;  %v9299_v15 = vmul.f32 %v14729_v38, %v14729_v38  ;;  %v9298_v19 = vmul.f32 %v14732_v47, %v14732_v47 }
 0xa0c   :  { %v14740_v26 = vsub.f32 %v14597_v34, %v9253_v56  ;;  %v14743_v62 = vsub.f32 %v14600_v29, %v9252_v6  ;;  %v9331_v31 = vsel %vm457_vm10, %v9299_v15, 0.0  ;;  %v9328_v0 = vsel %vm457_vm10, %v9298_v19, 0.0 }
 0xa0d   :  { %v9200_v10 = vpop.xlane.xlu1 %9199  ;;  %9332 = vadd.xlane.f32.xlu1 %v9331_v31  ;;  %9329 = vadd.xlane.f32.xlu0 %v9328_v0  ;;  %v9197_v30 = vpop.xlane.xlu0 %9196 }
 0xa0e   :  { %v9255_v61 = vmul.f32 0.03125, %v9200_v10  ;;  %v9254_v45 = vmul.f32 0.03125, %v9197_v30  ;;  %v9301_v48 = vmul.f32 %v14740_v26, %v14740_v26  ;;  %v9300_v34 = vmul.f32 %v14743_v62, %v14743_v62 }
 0xa10   :  { %v14752_v23 = vsub.f32 %v14616_v32, %v9255_v61  ;;  %v14755_v29 = vsub.f32 %v14607_v42, %v9254_v45  ;;  %v9337_v17 = vsel %vm457_vm10, %v9301_v48, 0.0  ;;  %v9334_v3 = vsel %vm457_vm10, %v9300_v34, 0.0 }
 0xa11   :  { %v9206_v9 = vpop.xlane.xlu1 %9205  ;;  %9338 = vadd.xlane.f32.xlu1 %v9337_v17  ;;  %9335 = vadd.xlane.f32.xlu0 %v9334_v3  ;;  %v9203_v25 = vpop.xlane.xlu0 %9202 }
 0xa12   :  { %v9257_v22 = vmul.f32 0.03125, %v9206_v9  ;;  %v9256_v8 = vmul.f32 0.03125, %v9203_v25  ;;  %v9303_v12 = vmul.f32 %v14752_v23, %v14752_v23  ;;  %v9302_v32 = vmul.f32 %v14755_v29, %v14755_v29 }
 0xa14   :  { %v14764_v58 = vsub.f32 %v14621_v27, %v9257_v22  ;;  %v14767_v42 = vsub.f32 %v14624_v2, %v9256_v8  ;;  %v9343_v4 = vsel %vm457_vm10, %v9303_v12, 0.0  ;;  %v9340_v49 = vsel %vm457_vm10, %v9302_v32, 0.0 }
 0xa15   :  { %v9212_v14 = vpop.xlane.xlu1 %9211  ;;  %9344 = vadd.xlane.f32.xlu1 %v9343_v4  ;;  %9341 = vadd.xlane.f32.xlu0 %v9340_v49  ;;  %v9209_v50 = vpop.xlane.xlu0 %9208 }
 0xa16   :  { %v9259_v46 = vmul.f32 0.03125, %v9212_v14  ;;  %v9258_v7 = vmul.f32 0.03125, %v9209_v50  ;;  %v9305_v57 = vmul.f32 %v14764_v58, %v14764_v58  ;;  %v9304_v27 = vmul.f32 %v14767_v42, %v14767_v42 }
 0xa18   :  { %v14776_v43 = vsub.f32 %v14640_v37, %v9259_v46  ;;  %v14779_v2 = vsub.f32 %v14631_v21, %v9258_v7  ;;  %v9349_v51 = vsel %vm457_vm10, %v9305_v57, 0.0  ;;  %v9346_v1 = vsel %vm457_vm10, %v9304_v27, 0.0 }
 0xa19   :  { %v9218_v39 = vpop.xlane.xlu1 %9217  ;;  %9350 = vadd.xlane.f32.xlu1 %v9349_v51  ;;  %9347 = vadd.xlane.f32.xlu0 %v9346_v1  ;;  %v9215_v5 = vpop.xlane.xlu0 %9214 }
 0xa1a   :  { %v9261_v33 = vmul.f32 0.03125, %v9218_v39  ;;  %v9260_v28 = vmul.f32 0.03125, %v9215_v5  ;;  %v9307_v18 = vmul.f32 %v14776_v43, %v14776_v43  ;;  %v9306_v37 = vmul.f32 %v14779_v2, %v14779_v2 }
 0xa1c   :  { %v14788_v44 = vsub.f32 %v14645_v16, %v9261_v33  ;;  %v14791_v21 = vsub.f32 %v14648_v13, %v9260_v28  ;;  %v9355_v52 = vsel %vm457_vm10, %v9307_v18, 0.0  ;;  %v9352_v63 = vsel %vm457_vm10, %v9306_v37, 0.0 }
 0xa1d   :  { %v9224_v56 = vpop.xlane.xlu1 %9223  ;;  %9356 = vadd.xlane.f32.xlu1 %v9355_v52  ;;  %9353 = vadd.xlane.f32.xlu0 %v9352_v63  ;;  %v9221_v6 = vpop.xlane.xlu0 %9220  ;;  %v12034_v63 = vld [vmem:[%s15667_s6] sm:$0xff]  }
 0xa1e   :  { %v9263_v15 = vmul.f32 0.03125, %v9224_v56  ;;  %v9262_v19 = vmul.f32 0.03125, %v9221_v6  ;;  %v9309_v31 = vmul.f32 %v14788_v44, %v14788_v44  ;;  %v9308_v16 = vmul.f32 %v14791_v21, %v14791_v21  ;;  %11879 = vmatprep.subr.bf16.mxu1 %v12034_v63 }
 0xa1f   :  { %11880 = vmatpush3.bf16.msra.mxu1 %v12034_v63 }
 0xa20   :  { %v14800_v0 = vsub.f32 %v14664_v41, %v9263_v15  ;;  %v14803_v13 = vsub.f32 %v14655_v36, %v9262_v19  ;;  %v9361_v10 = vsel %vm457_vm10, %v9309_v31, 0.0  ;;  %v9358_v30 = vsel %vm457_vm10, %v9308_v16, 0.0 }
 0xa21   :  { %v9230_v61 = vpop.xlane.xlu1 %9229  ;;  %9362 = vadd.xlane.f32.xlu1 %v9361_v10  ;;  %9359 = vadd.xlane.f32.xlu0 %v9358_v30  ;;  %v9227_v45 = vpop.xlane.xlu0 %9226 }
 0xa22   :  { %v9265_v48 = vmul.f32 0.03125, %v9230_v61  ;;  %v9264_v34 = vmul.f32 0.03125, %v9227_v45  ;;  %v9311_v17 = vmul.f32 %v14800_v0, %v14800_v0  ;;  %v9310_v41 = vmul.f32 %v14803_v13, %v14803_v13 }
 0xa24   :  { %v14812_v3 = vsub.f32 %v14669_v53, %v9265_v48  ;;  %v14815_v36 = vsub.f32 %v14672_v54, %v9264_v34  ;;  %v9367_v9 = vsel %vm457_vm10, %v9311_v17, 0.0  ;;  %v9364_v25 = vsel %vm457_vm10, %v9310_v41, 0.0 }
 0xa25   :  { %v9236_v22 = vpop.xlane.xlu1 %9235  ;;  %9368 = vadd.xlane.f32.xlu1 %v9367_v9  ;;  %9365 = vadd.xlane.f32.xlu0 %v9364_v25  ;;  %v9233_v8 = vpop.xlane.xlu0 %9232 }
 0xa26   :  { %v9267_v12 = vmul.f32 0.03125, %v9236_v22  ;;  %v9266_v32 = vmul.f32 0.03125, %v9233_v8  ;;  %v9313_v4 = vmul.f32 %v14812_v3, %v14812_v3  ;;  %v9312_v53 = vmul.f32 %v14815_v36, %v14815_v36 }
 0xa28   :  { %v14824_v49 = vsub.f32 %v14688_v40, %v9267_v12  ;;  %v14827_v54 = vsub.f32 %v14679_v35, %v9266_v32  ;;  %v9373_v14 = vsel %vm457_vm10, %v9313_v4, 0.0  ;;  %v9370_v50 = vsel %vm457_vm10, %v9312_v53, 0.0 }
 0xa29   :  { %v9242_v46 = vpop.xlane.xlu1 %9241  ;;  %9374 = vadd.xlane.f32.xlu1 %v9373_v14  ;;  %9371 = vadd.xlane.f32.xlu0 %v9370_v50  ;;  %v9239_v7 = vpop.xlane.xlu0 %9238  ;;  %v14864_v14 = vld [vmem:[%s15664_s9 + $0x2] ss:$0 sm:$0xff] }
 0xa2a   :  { %v9269_v57 = vmul.f32 0.03125, %v9242_v46  ;;  %v9268_v27 = vmul.f32 0.03125, %v9239_v7  ;;  %v9315_v51 = vmul.f32 %v14824_v49, %v14824_v49  ;;  %v9314_v40 = vmul.f32 %v14827_v54, %v14827_v54 }
 0xa2c   :  { %v14836_v1 = vsub.f32 %v14694_v60, %v9269_v57  ;;  %v14839_v35 = vsub.f32 %v14698_v24, %v9268_v27  ;;  %v9379_v39 = vsel %vm457_vm10, %v9315_v51, 0.0  ;;  %v9376_v5 = vsel %vm457_vm10, %v9314_v40, 0.0 }
 0xa2d   :  { %9380 = vadd.xlane.f32.xlu1 %v9379_v39  ;;  %9377 = vadd.xlane.f32.xlu0 %v9376_v5  ;;  %v9245_v33 = vpop.xlane.xlu0 %9244 }
 0xa2e   :  { %v9270_v28 = vmul.f32 0.03125, %v9245_v33  ;;  %v9317_v18 = vmul.f32 %v14836_v1, %v14836_v1  ;;  %v9316_v37 = vmul.f32 %v14839_v35, %v14839_v35 }
 0xa30   :  { %v14848_v60 = vsub.f32 %v14703_v11, %v9270_v28  ;;  %v9385_v24 = vsel %vm457_vm10, %v9317_v18, 0.0  ;;  %v9382_v52 = vsel %vm457_vm10, %v9316_v37, 0.0  ;;  %v12035_v11 = vld [vmem:[%s15667_s6 + $0x8] sm:$0xff]  }
 0xa31   :  { %9386 = vadd.xlane.f32.xlu1 %v9385_v24  ;;  %9383 = vadd.xlane.f32.xlu0 %v9382_v52  ;;  %v14872_v24 = vld [vmem:[%s15664_s9 + $0x3] ss:$0 sm:$0xff] }
 0xa32   :  { %v9318_v56 = vmul.f32 %v14848_v60, %v14848_v60  ;;  %11881 = vmatprep.subr.bf16.mxu1 %v12035_v11 }
 0xa33   :  { %11882 = vmatpush3.bf16.msra.mxu1 %v12035_v11 }
 0xa34   :  { %v9388_v6 = vsel %vm457_vm10, %v9318_v56, 0.0 }
 0xa35   :  { %9389 = vadd.xlane.f32.xlu0 %v9388_v6 }
 0xa92   :  { %v9321_v15 = vpop.xlane.xlu1 %9320 }
 0xa93   :  { %v9391_v19 = vmul.f32 0.03125, %v9321_v15 }
 0xa94   :  { %v9324_v31 = vpop.xlane.xlu0 %9323 }
 0xa95   :  { %v9415_v16 = vadd.f32 1e-12, %v9391_v19  ;;  %v9392_v10 = vmul.f32 0.03125, %v9324_v31 }
 0xa96   :  { %v9327_v30 = vpop.xlane.xlu1 %9326 }
 0xa97   :  { %12234 = vrsqrt.f32 %v9415_v16  ;;  %v9416_v61 = vadd.f32 1e-12, %v9392_v10  ;;  %v9393_v45 = vmul.f32 0.03125, %v9327_v30 }
 0xa99   :  { %12236 = vrsqrt.f32 %v9416_v61  ;;  %v9417_v48 = vadd.f32 1e-12, %v9393_v45 }
 0xa9a   :  { %v9333_v34 = vpop.xlane.xlu1 %9332  ;;  %v9330_v17 = vpop.xlane.xlu0 %9329 }
 0xa9b   :  { %12238 = vrsqrt.f32 %v9417_v48  ;;  %v9395_v41 = vmul.f32 0.03125, %v9333_v34  ;;  %v9394_v9 = vmul.f32 0.03125, %v9330_v17 }
 0xa9d   :  { %v9419_v25 = vadd.f32 1e-12, %v9395_v41  ;;  %v9418_v22 = vadd.f32 1e-12, %v9394_v9 }
 0xa9e   :  { %v9339_v8 = vpop.xlane.xlu1 %9338  ;;  %v9336_v12 = vpop.xlane.xlu0 %9335 }
 0xa9f   :  { %12240 = vrsqrt.f32 %v9419_v25  ;;  %v9397_v32 = vmul.f32 0.03125, %v9339_v8  ;;  %v9396_v4 = vmul.f32 0.03125, %v9336_v12 }
 0xaa0   :  { %12242 = vrsqrt.f32 %v9418_v22 }
 0xaa1   :  { %v12235_v53 = vpop.eup %12234  ;;  %v9421_v50 = vadd.f32 1e-12, %v9397_v32  ;;  %v9420_v46 = vadd.f32 1e-12, %v9396_v4 }
 0xaa2   :  { %v9463_v7 = vmul.f32 %v12235_v53, %v14712_v59  ;;  %v9345_v57 = vpop.xlane.xlu1 %9344  ;;  %v9342_v27 = vpop.xlane.xlu0 %9341 }
 0xaa3   :  { %v12237_v51 = vpop.eup %12236  ;;  %12244 = vrsqrt.f32 %v9421_v50  ;;  %v9399_v40 = vmul.f32 0.03125, %v9345_v57  ;;  %v9398_v39 = vmul.f32 0.03125, %v9342_v27 }
 0xaa4   :  { %v9464_v5 = vmul.f32 %v12237_v51, %v14715_v55  ;;  %12246 = vrsqrt.f32 %v9420_v46  ;;  %v9491_v33 = vmul.f32 %v14864_v14, %v9463_v7 }
 0xaa5   :  { %v12239_v28 = vpop.eup %12238  ;;  %v9423_v18 = vadd.f32 1e-12, %v9399_v40  ;;  %v9422_v37 = vadd.f32 1e-12, %v9398_v39 }
 0xaa6   :  { %v9351_v59 = vpop.xlane.xlu1 %9350  ;;  %v9348_v52 = vpop.xlane.xlu0 %9347  ;;  %v9492_v63 = vmul.f32 %v14864_v14, %v9464_v5  ;;  %v9465_v55 = vmul.f32 %v12239_v28, %v14720_v20  ;;  %v14877_v11 = vadd.f32 %v14872_v24, %v9491_v33 }
 0xaa7   :  { %12248 = vrsqrt.f32 %v9423_v18  ;;  %v9401_v56 = vmul.f32 0.03125, %v9351_v59  ;;  %v9400_v6 = vmul.f32 0.03125, %v9348_v52 }
 0xaa8   :  { %12250 = vrsqrt.f32 %v9422_v37  ;;  %v14880_v15 = vadd.f32 %v14872_v24, %v9492_v63  ;;  %v9493_v17 = vmul.f32 %v14864_v14, %v9465_v55 }
 0xaa9   :  { %v12241_v19 = vpop.eup %12240  ;;  %v9425_v31 = vadd.f32 1e-12, %v9401_v56  ;;  %v9424_v16 = vadd.f32 1e-12, %v9400_v6 }
 0xaaa   :  { %v12243_v10 = vpop.eup %12242  ;;  %v9357_v30 = vpop.xlane.xlu1 %9356  ;;  %v9543_v45 = vpack.c.bf16 %v14880_v15, %v14877_v11  ;;  %v9467_v41 = vmul.f32 %v12241_v19, %v14729_v38  ;;  %v14892_v38 = vadd.f32 %v14872_v24, %v9493_v17 }
 0xaab   :  { %v9354_v61 = vpop.xlane.xlu0 %9353  ;;  %v9466_v48 = vmul.f32 %v12243_v10, %v14732_v47  ;;  %12252 = vrsqrt.f32 %v9425_v31  ;;  %v9403_v20 = vmul.f32 0.03125, %v9357_v30 }
 0xaac   :  { %v9402_v34 = vmul.f32 0.03125, %v9354_v61  ;;  %12254 = vrsqrt.f32 %v9424_v16  ;;  %11883 = vmatprep.mubr.msk.bf16.mxu1 %vm457_vm10, %v9543_v45  ;;  %v9495_v57 = vmul.f32 %v14864_v14, %v9467_v41 }
 0xaad   :  { %v12245_v9 = vpop.eup %12244  ;;  %v9494_v25 = vmul.f32 %v14864_v14, %v9466_v48  ;;  %v9427_v22 = vadd.f32 1e-12, %v9403_v20 }
 0xaae   :  { %v9426_v8 = vadd.f32 1e-12, %v9402_v34  ;;  %v12247_v12 = vpop.eup %12246  ;;  %v9469_v32 = vmul.f32 %v12245_v9, %v14740_v26  ;;  %v9363_v4 = vpop.xlane.xlu1 %9362  ;;  %v14906_v63 = vadd.f32 %v14872_v24, %v9495_v57 }
 0xaaf   :  { %v9360_v47 = vpop.xlane.xlu0 %9359  ;;  %v9468_v53 = vmul.f32 %v12247_v12, %v14743_v62  ;;  %12256 = vrsqrt.f32 %v9427_v22  ;;  %v9405_v50 = vmul.f32 0.03125, %v9363_v4  ;;  %v14895_v7 = vadd.f32 %v14872_v24, %v9494_v25 }
 0xab0   :  { %v9404_v46 = vmul.f32 0.03125, %v9360_v47  ;;  %12258 = vrsqrt.f32 %v9426_v8  ;;  %v9497_v28 = vmul.f32 %v14864_v14, %v9469_v32 }
 0xab1   :  { %v12249_v27 = vpop.eup %12248  ;;  %v9429_v51 = vadd.f32 1e-12, %v9405_v50  ;;  %v9496_v26 = vmul.f32 %v14864_v14, %v9468_v53  ;;  %v9544_v62 = vpack.c.bf16 %v14895_v7, %v14892_v38 }
 0xab2   :  { %v9428_v40 = vadd.f32 1e-12, %v9404_v46  ;;  %v12251_v39 = vpop.eup %12250  ;;  %v9369_v5 = vpop.xlane.xlu1 %9368  ;;  %v9471_v52 = vmul.f32 %v12249_v27, %v14752_v23  ;;  %v14915_v30 = vadd.f32 %v14872_v24, %v9497_v28 }
 0xab3   :  { %v9366_v33 = vpop.xlane.xlu0 %9365  ;;  %v9470_v18 = vmul.f32 %v12251_v39, %v14755_v29  ;;  %12260 = vrsqrt.f32 %v9429_v51  ;;  %v9407_v37 = vmul.f32 0.03125, %v9369_v5  ;;  %11884 = vmatmul.mubr.msk.bf16.vlgmr.msra.gmra.mrb[132].mxu1 %vm457_vm10, %v9544_v62  ;;  %v14909_v56 = vadd.f32 %v14872_v24, %v9496_v26 }
 0xab4   :  { %v9406_v59 = vmul.f32 0.03125, %v9366_v33  ;;  %12262 = vrsqrt.f32 %v9428_v40  ;;  %v9499_v17 = vmul.f32 %v14864_v14, %v9471_v52 }
 0xab5   :  { %v12253_v6 = vpop.eup %12252  ;;  %v9431_v55 = vadd.f32 1e-12, %v9407_v37  ;;  %v9498_v31 = vmul.f32 %v14864_v14, %v9470_v18  ;;  %v9545_v10 = vpack.c.bf16 %v14909_v56, %v14906_v63 }
 0xab6   :  { %v9430_v19 = vadd.f32 1e-12, %v9406_v59  ;;  %v12255_v29 = vpop.eup %12254  ;;  %v9375_v16 = vpop.xlane.xlu1 %9374  ;;  %v9473_v20 = vmul.f32 %v12253_v6, %v14764_v58  ;;  %v14931_v50 = vadd.f32 %v14872_v24, %v9499_v17 }
 0xab7   :  { %v9372_v23 = vpop.xlane.xlu0 %9371  ;;  %v9472_v61 = vmul.f32 %v12255_v29, %v14767_v42  ;;  %12264 = vrsqrt.f32 %v9431_v55  ;;  %v9409_v45 = vmul.f32 0.03125, %v9375_v16  ;;  %11887 = vmatprep.mubr.msk.bf16.mxu1 %vm457_vm10, %v9545_v10  ;;  %v14921_v34 = vadd.f32 %v14872_v24, %v9498_v31 }
 0xab8   :  { %v9408_v48 = vmul.f32 0.03125, %v9372_v23  ;;  %12266 = vrsqrt.f32 %v9430_v19 }
 0xab9   :  { %v12257_v41 = vpop.eup %12256  ;;  %v9433_v9 = vadd.f32 1e-12, %v9409_v45  ;;  %v9500_v22 = vmul.f32 %v14864_v14, %v9472_v61  ;;  %v9546_v58 = vpack.c.bf16 %v14921_v34, %v14915_v30 }
 0xaba   :  { %v9432_v25 = vadd.f32 1e-12, %v9408_v48  ;;  %v12259_v8 = vpop.eup %12258  ;;  %v9475_v42 = vmul.f32 %v12257_v41, %v14776_v43  ;;  %v9381_v12 = vpop.xlane.xlu1 %9380  ;;  %v9501_v43 = vmul.f32 %v14864_v14, %v9473_v20 }
 0xabb   :  { %v9378_v32 = vpop.xlane.xlu0 %9377  ;;  %v9474_v4 = vmul.f32 %v12259_v8, %v14779_v2  ;;  %12268 = vrsqrt.f32 %v9433_v9  ;;  %v9411_v47 = vmul.f32 0.03125, %v9381_v12  ;;  %11888 = vmatmul.mubr.msk.bf16.gmra.mrb[136].mxu1 %vm457_vm10, %v9546_v58  ;;  %v14934_v46 = vadd.f32 %v14872_v24, %v9500_v22 }
 0xabc   :  { %v9410_v53 = vmul.f32 0.03125, %v9378_v32  ;;  %12270 = vrsqrt.f32 %v9432_v25  ;;  %v9503_v33 = vmul.f32 %v14864_v14, %v9475_v42  ;;  %v14945_v59 = vadd.f32 %v14872_v24, %v9501_v43 }
 0xabd   :  { %v12261_v57 = vpop.eup %12260  ;;  %v9435_v27 = vadd.f32 1e-12, %v9411_v47  ;;  %v9502_v40 = vmul.f32 %v14864_v14, %v9474_v4  ;;  %v9547_v5 = vpack.c.bf16 %v14934_v46, %v14931_v50 }
 0xabe   :  { %v9434_v51 = vadd.f32 1e-12, %v9410_v53  ;;  %v12263_v2 = vpop.eup %12262  ;;  %v9477_v26 = vmul.f32 %v12261_v57, %v14788_v44  ;;  %v9387_v39 = vpop.xlane.xlu1 %9386  ;;  %v14955_v10 = vadd.f32 %v14872_v24, %v9503_v33 }
 0xabf   :  { %v9384_v62 = vpop.xlane.xlu0 %9383  ;;  %v9476_v28 = vmul.f32 %v12263_v2, %v14791_v21  ;;  %12272 = vrsqrt.f32 %v9435_v27  ;;  %v9413_v18 = vmul.f32 0.03125, %v9387_v39  ;;  %11891 = vmatprep.mubr.msk.bf16.mxu1 %vm457_vm10, %v9547_v5  ;;  %v14948_v44 = vadd.f32 %v14872_v24, %v9502_v40 }
 0xac0   :  { %v9412_v37 = vmul.f32 0.03125, %v9384_v62  ;;  %12274 = vrsqrt.f32 %v9434_v51  ;;  %v9505_v23 = vmul.f32 %v14864_v14, %v9477_v26 }
 0xac1   :  { %v12265_v52 = vpop.eup %12264  ;;  %v9437_v6 = vadd.f32 1e-12, %v9413_v18  ;;  %v9504_v19 = vmul.f32 %v14864_v14, %v9476_v28  ;;  %v9548_v29 = vpack.c.bf16 %v14948_v44, %v14945_v59 }
 0xac2   :  { %v9436_v55 = vadd.f32 1e-12, %v9412_v37  ;;  %v12267_v31 = vpop.eup %12266  ;;  %v9479_v21 = vmul.f32 %v12265_v52, %v14800_v0  ;;  %v14967_v25 = vadd.f32 %v14872_v24, %v9505_v23 }
 0xac3   :  { %v9390_v16 = vpop.xlane.xlu0 %9389  ;;  %v9478_v61 = vmul.f32 %v12267_v31, %v14803_v13  ;;  %12276 = vrsqrt.f32 %v9437_v6  ;;  %v14960_v48 = vadd.f32 %v14872_v24, %v9504_v19  ;;  %11892 = vmatmul.mubr.msk.bf16.gmra.mrb[140].mxu1 %vm457_vm10, %v9548_v29  ;;  %v12037_v19 = vld [vmem:[%s15668_s7 + $0x8] sm:$0xff]   ;;  %v12039_v31 = vld [vmem:[%s15668_s7 + $0x18] sm:$0xff]  }
 0xac4   :  { %v9414_v45 = vmul.f32 0.03125, %v9390_v16  ;;  %12278 = vrsqrt.f32 %v9436_v55  ;;  %v9507_v13 = vmul.f32 %v14864_v14, %v9479_v21  ;;  %v15042_v21 = vld [vmem:[%s15664_s9 + $0x6] ss:$0 sm:$0xff] }
 0xac5   :  { %v12269_v0 = vpop.eup %12268  ;;  %v9549_v17 = vpack.c.bf16 %v14960_v48, %v14955_v10  ;;  %v9506_v41 = vmul.f32 %v14864_v14, %v9478_v61 }
 0xac6   :  { %v9438_v20 = vadd.f32 1e-12, %v9414_v45  ;;  %v12271_v9 = vpop.eup %12270  ;;  %v9481_v22 = vmul.f32 %v12269_v0, %v14812_v3  ;;  %v14980_v47 = vadd.f32 %v14872_v24, %v9507_v13 }
 0xac7   :  { %v9480_v8 = vmul.f32 %v12271_v9, %v14815_v36  ;;  %11895 = vmatprep.mubr.msk.bf16.mxu1 %vm457_vm10, %v9549_v17  ;;  %v14974_v42 = vadd.f32 %v14872_v24, %v9506_v41 }
 0xac8   :  { %12280 = vrsqrt.f32 %v9438_v20  ;;  %v9509_v43 = vmul.f32 %v14864_v14, %v9481_v22 }
 0xac9   :  { %v12273_v12 = vpop.eup %12272  ;;  %v9550_v58 = vpack.c.bf16 %v14974_v42, %v14967_v25  ;;  %v9508_v32 = vmul.f32 %v14864_v14, %v9480_v8 }
 0xaca   :  { %v12275_v4 = vpop.eup %12274  ;;  %v9483_v3 = vmul.f32 %v12273_v12, %v14824_v49 }
 0xacb   :  { %v9482_v36 = vmul.f32 %v12275_v4, %v14827_v54  ;;  %v14985_v53 = vadd.f32 %v14872_v24, %v9508_v32  ;;  %11896 = vmatmul.mubr.msk.bf16.gmra.mrb[144].mxu1 %vm457_vm10, %v9550_v58  ;;  %v14996_v54 = vadd.f32 %v14872_v24, %v9509_v43 }
 0xacc   :  { %v9511_v39 = vmul.f32 %v14864_v14, %v9483_v3 }
 0xacd   :  { %v12277_v57 = vpop.eup %12276  ;;  %v9551_v27 = vpack.c.bf16 %v14985_v53, %v14980_v47  ;;  %v9510_v51 = vmul.f32 %v14864_v14, %v9482_v36 }
 0xace   :  { %v12279_v40 = vpop.eup %12278  ;;  %v9485_v2 = vmul.f32 %v12277_v57, %v14836_v1  ;;  %v15008_v28 = vadd.f32 %v14872_v24, %v9511_v39 }
 0xacf   :  { %v9484_v49 = vmul.f32 %v12279_v40, %v14839_v35  ;;  %11899 = vmatprep.mubr.msk.bf16.mxu1 %vm457_vm10, %v9551_v27  ;;  %v14999_v26 = vadd.f32 %v14872_v24, %v9510_v51 }
 0xad0   :  { %v9513_v35 = vmul.f32 %v14864_v14, %v9485_v2 }
 0xad1   :  { %v9552_v62 = vpack.c.bf16 %v14999_v26, %v14996_v54  ;;  %v9512_v33 = vmul.f32 %v14864_v14, %v9484_v49 }
 0xad2   :  { %v12281_v5 = vpop.eup %12280  ;;  %v15018_v6 = vadd.f32 %v14872_v24, %v9513_v35 }
 0xad3   :  { %v9486_v1 = vmul.f32 %v12281_v5, %v14848_v60  ;;  %v15011_v18 = vadd.f32 %v14872_v24, %v9512_v33  ;;  %11900 = vmatmul.mubr.msk.bf16.gmra.mrb[148].mxu1 %vm457_vm10, %v9552_v62 }
 0xad4   :  { %15951 = vst [vmem:[#allocation68_spill] sm:$0xff] %v15018_v6 }
 0xad5   :  { %15950 = vst [vmem:[#allocation69_spill] sm:$0xff] %v15011_v18  ;;  %v9514_v37 = vmul.f32 %v14864_v14, %v9486_v1  ;;  %v9553_v52 = vpack.c.bf16 %v15011_v18, %v15008_v28  ;;  %v12036_v14 = vld [vmem:[%s15668_s7] sm:$0xff]  }
 0xad6   :  { %11907 = vmatprep.subr.bf16.mxu0 %v12036_v14 }
 0xad7   :  { %v15021_v60 = vadd.f32 %v14872_v24, %v9514_v37  ;;  %11903 = vmatprep.mubr.msk.bf16.mxu1 %vm457_vm10, %v9553_v52  ;;  %11908 = vmatpush3.bf16.msra.mxu0 %v12036_v14  ;;  %v12038_v24 = vld [vmem:[%s15668_s7 + $0x10] sm:$0xff]  }
 0xad8   :  { %11909 = vmatprep.subr.bf16.mxu0 %v12037_v19 }
 0xad9   :  { %15952 = vst [vmem:[#allocation71_spill] sm:$0xff] %v15021_v60  ;;  %v9554_v55 = vpack.c.bf16 %v15021_v60, %v15018_v6 }
 0xadb   :  { %11904 = vmatmul.mubr.msk.bf16.gmra.mrb[152].mxu1 %vm457_vm10, %v9554_v55  ;;  %11910 = vmatpush3.bf16.msra.mxu0 %v12037_v19 }
 0xadc   :  { %11911 = vmatprep.subr.bf16.mxu0 %v12038_v24 }
 0xadf   :  { %11912 = vmatpush3.bf16.msra.mxu0 %v12038_v24 }
 0xae0   :  { %11913 = vmatprep.subr.bf16.mxu0 %v12039_v31 }
 0xae3   :  { %11914 = vmatpush3.bf16.msra.mxu0 %v12039_v31 }
 0xb86   :  { %v11885_v29 = vpop.f32.mrb[132].mxu1 }
 0xb87   :  { %v9654_v16 = vadd.f32 %v11885_v29, %v15042_v21  ;;  %v9645_v23 = vpop.f32.mrb[133].mxu1 }
 0xb88   :  { %v9646_v61 = vadd.f32 %v15042_v21, %v9645_v23  ;;  %v11886_v45 = vpop.f32.mrb[134].mxu1 }
 0xb89   :  { %v9766_v0 = vmul.f32 0.044715, %v9654_v16  ;;  %v9657_v20 = vadd.f32 %v11886_v45, %v15042_v21  ;;  %v9648_v17 = vpop.f32.mrb[135].mxu1  ;;  %v15048_v4 = vmul.f32 0.5, %v9654_v16 }
 0xb8a   :  { %v9764_v41 = vmul.f32 0.044715, %v9646_v61  ;;  %v9649_v9 = vadd.f32 %v15042_v21, %v9648_v17  ;;  %v15051_v2 = vmul.f32 0.5, %v9646_v61 }
 0xb8b   :  { %v9790_v13 = vmul.f32 %v9766_v0, %v9654_v16  ;;  %v9767_v22 = vmul.f32 0.044715, %v9657_v20  ;;  %v15053_v39 = vmul.f32 0.5, %v9657_v20 }
 0xb8c   :  { %v9788_v8 = vmul.f32 %v9764_v41, %v9646_v61  ;;  %v9765_v12 = vmul.f32 0.044715, %v9649_v9  ;;  %v15058_v41 = vmul.f32 0.5, %v9649_v9 }
 0xb8d   :  { %v9814_v58 = vmul.f32 %v9790_v13, %v9654_v16  ;;  %v9791_v32 = vmul.f32 %v9767_v22, %v9657_v20 }
 0xb8e   :  { %v9812_v3 = vmul.f32 %v9788_v8, %v9646_v61  ;;  %v9789_v36 = vmul.f32 %v9765_v12, %v9649_v9  ;;  %v11889_v43 = vpop.f32.mrb[136].mxu1 }
 0xb8f   :  { %v9838_v57 = vadd.f32 %v9814_v58, %v9654_v16  ;;  %v9815_v27 = vmul.f32 %v9791_v32, %v9657_v20  ;;  %v9670_v51 = vadd.f32 %v11889_v43, %v15042_v21  ;;  %v9661_v40 = vpop.f32.mrb[137].mxu1 }
 0xb90   :  { %v9836_v49 = vadd.f32 %v9812_v3, %v9646_v61  ;;  %v9813_v5 = vmul.f32 %v9789_v36, %v9649_v9  ;;  %v9662_v62 = vadd.f32 %v15042_v21, %v9661_v40  ;;  %v11890_v33 = vpop.f32.mrb[138].mxu1 }
 0xb91   :  { %v9862_v1 = vmul.f32 0.7978846, %v9838_v57  ;;  %v9839_v35 = vadd.f32 %v9815_v27, %v9657_v20  ;;  %v9770_v37 = vmul.f32 0.044715, %v9670_v51  ;;  %v9673_v52 = vadd.f32 %v11890_v33, %v15042_v21  ;;  %v9664_v55 = vpop.f32.mrb[139].mxu1 }
 0xb92   :  { %v9860_v14 = vmul.f32 0.7978846, %v9836_v49  ;;  %v9837_v19 = vadd.f32 %v9813_v5, %v9649_v9  ;;  %v9768_v24 = vmul.f32 0.044715, %v9662_v62  ;;  %v9665_v31 = vadd.f32 %v15042_v21, %v9664_v55 }
 0xb93   :  { %12282 = vtanh.f32 %v9862_v1  ;;  %v9863_v29 = vmul.f32 0.7978846, %v9839_v35  ;;  %v9794_v16 = vmul.f32 %v9770_v37, %v9670_v51  ;;  %v9771_v23 = vmul.f32 0.044715, %v9673_v52 }
 0xb94   :  { %12284 = vtanh.f32 %v9860_v14  ;;  %v9861_v61 = vmul.f32 0.7978846, %v9837_v19  ;;  %v9792_v45 = vmul.f32 %v9768_v24, %v9662_v62  ;;  %v9769_v0 = vmul.f32 0.044715, %v9665_v31 }
 0xb95   :  { %12286 = vtanh.f32 %v9863_v29  ;;  %v9818_v17 = vmul.f32 %v9794_v16, %v9670_v51  ;;  %v9795_v20 = vmul.f32 %v9771_v23, %v9673_v52  ;;  %v15060_v12 = vmul.f32 0.5, %v9662_v62 }
 0xb96   :  { %12288 = vtanh.f32 %v9861_v61  ;;  %v9816_v13 = vmul.f32 %v9792_v45, %v9662_v62  ;;  %v9793_v22 = vmul.f32 %v9769_v0, %v9665_v31  ;;  %v11893_v8 = vpop.f32.mrb[140].mxu1  ;;  %v15065_v43 = vmul.f32 0.5, %v9665_v31 }
 0xb97   :  { %v9842_v58 = vadd.f32 %v9818_v17, %v9670_v51  ;;  %v9819_v32 = vmul.f32 %v9795_v20, %v9673_v52  ;;  %v15063_v3 = vadd.f32 %v11893_v8, %v15042_v21  ;;  %v9677_v36 = vpop.f32.mrb[141].mxu1  ;;  %v15070_v49 = vmul.f32 0.5, %v9670_v51 }
 0xb98   :  { %v9840_v57 = vadd.f32 %v9816_v13, %v9662_v62  ;;  %v9817_v27 = vmul.f32 %v9793_v22, %v9665_v31  ;;  %v15068_v40 = vadd.f32 %v15042_v21, %v9677_v36  ;;  %v11894_v9 = vpop.f32.mrb[142].mxu1  ;;  %v15086_v17 = vmul.f32 0.5, %v9673_v52 }
 0xb99   :  { %v9866_v5 = vmul.f32 0.7978846, %v9842_v58  ;;  %v9843_v33 = vadd.f32 %v9819_v32, %v9673_v52  ;;  %v9774_v1 = vmul.f32 0.044715, %v15063_v3  ;;  %v15074_v35 = vadd.f32 %v11894_v9, %v15042_v21  ;;  %v9680_v37 = vpop.f32.mrb[143].mxu1 }
 0xb9a   :  { %v9864_v55 = vmul.f32 0.7978846, %v9840_v57  ;;  %v9841_v14 = vadd.f32 %v9817_v27, %v9665_v31  ;;  %v9772_v19 = vmul.f32 0.044715, %v15068_v40  ;;  %v15078_v62 = vadd.f32 %v15042_v21, %v9680_v37 }
 0xb9b   :  { %12290 = vtanh.f32 %v9866_v5  ;;  %v9867_v24 = vmul.f32 0.7978846, %v9843_v33  ;;  %v9798_v51 = vmul.f32 %v9774_v1, %v15063_v3  ;;  %v9775_v29 = vmul.f32 0.044715, %v15074_v35 }
 0xb9c   :  { %12292 = vtanh.f32 %v9864_v55  ;;  %v9865_v16 = vmul.f32 0.7978846, %v9841_v14  ;;  %v9796_v23 = vmul.f32 %v9772_v19, %v15068_v40  ;;  %v9773_v61 = vmul.f32 0.044715, %v15078_v62 }
 0xb9d   :  { %v12283_v45 = vpop.eup %12282  ;;  %12294 = vtanh.f32 %v9867_v24  ;;  %v9822_v31 = vmul.f32 %v9798_v51, %v15063_v3  ;;  %v9799_v0 = vmul.f32 %v9775_v29, %v15074_v35 }
 0xb9e   :  { %v12285_v20 = vpop.eup %12284  ;;  %v9910_v13 = vadd.f32 1.0, %v12283_v45  ;;  %12296 = vtanh.f32 %v9865_v16  ;;  %v9820_v22 = vmul.f32 %v9796_v23, %v15068_v40  ;;  %v9797_v8 = vmul.f32 %v9773_v61, %v15078_v62  ;;  %v11897_v58 = vpop.f32.mrb[144].mxu1 }
 0xb9f   :  { %v12287_v32 = vpop.eup %12286  ;;  %v9846_v36 = vadd.f32 %v9822_v31, %v15063_v3  ;;  %v9823_v57 = vmul.f32 %v9799_v0, %v15074_v35  ;;  %v15093_v27 = vadd.f32 %v11897_v58, %v15042_v21  ;;  %v9693_v9 = vpop.f32.mrb[145].mxu1  ;;  %v9908_v5 = vadd.f32 1.0, %v12285_v20 }
 0xba0   :  { %v12289_v52 = vpop.eup %12288  ;;  %v15096_v33 = vmul.f32 %v9910_v13, %v15048_v4  ;;  %v9911_v1 = vadd.f32 1.0, %v12287_v32  ;;  %v9844_v37 = vadd.f32 %v9820_v22, %v15068_v40  ;;  %v9821_v55 = vmul.f32 %v9797_v8, %v15078_v62  ;;  %v11898_v14 = vpop.f32.mrb[146].mxu1 }
 0xba1   :  { %v9870_v19 = vmul.f32 0.7978846, %v9846_v36  ;;  %v9847_v24 = vadd.f32 %v9823_v57, %v15074_v35  ;;  %v9778_v51 = vmul.f32 0.044715, %v15093_v27  ;;  %v15103_v29 = vadd.f32 %v15042_v21, %v9693_v9  ;;  %v9696_v16 = vpop.f32.mrb[147].mxu1 }
 0xba2   :  { %v9935_v23 = vmul.f32 %v9911_v1, %v15053_v39  ;;  %v9868_v61 = vmul.f32 0.7978846, %v9844_v37  ;;  %v9845_v4 = vadd.f32 %v9821_v55, %v15078_v62  ;;  %v15108_v45 = vadd.f32 %v11898_v14, %v15042_v21 }
 0xba3   :  { %12298 = vtanh.f32 %v9870_v19  ;;  %v9871_v31 = vmul.f32 0.7978846, %v9847_v24  ;;  %v9802_v0 = vmul.f32 %v9778_v51, %v15093_v27  ;;  %v9776_v20 = vmul.f32 0.044715, %v15103_v29 }
 0xba4   :  { %v9957_v13 = vpack.c.bf16 %v9935_v23, %v15096_v33  ;;  %12300 = vtanh.f32 %v9868_v61  ;;  %v9869_v22 = vmul.f32 0.7978846, %v9845_v4  ;;  %v9779_v8 = vmul.f32 0.044715, %v15108_v45 }
 0xba5   :  { %v15114_v58 = vpop.eup %12290  ;;  %12302 = vtanh.f32 %v9871_v31  ;;  %v9826_v39 = vmul.f32 %v9802_v0, %v15093_v27  ;;  %v9800_v32 = vmul.f32 %v9776_v20, %v15103_v29  ;;  %v15119_v36 = vadd.f32 %v15042_v21, %v9696_v16 }
 0xba6   :  { %v12293_v57 = vpop.eup %12292  ;;  %12304 = vtanh.f32 %v9869_v22  ;;  %v9803_v9 = vmul.f32 %v9779_v8, %v15108_v45  ;;  %v11901_v1 = vpop.f32.mrb[148].mxu1  ;;  %v9909_v33 = vadd.f32 1.0, %v12289_v52  ;;  %v9932_v37 = vmul.f32 %v9908_v5, %v15051_v2 }
 0xba7   :  { %v15123_v55 = vpop.eup %12294  ;;  %v9850_v14 = vadd.f32 %v9826_v39, %v15093_v27  ;;  %v9824_v19 = vmul.f32 %v9800_v32, %v15103_v29  ;;  %v9777_v24 = vmul.f32 0.044715, %v15119_v36  ;;  %v15129_v51 = vadd.f32 %v11901_v1, %v15042_v21  ;;  %v9709_v16 = vpop.f32.mrb[149].mxu1 }
 0xba8   :  { %v12297_v23 = vpop.eup %12296  ;;  %v9827_v61 = vmul.f32 %v9803_v9, %v15108_v45  ;;  %v15133_v4 = vadd.f32 %v15042_v21, %v9709_v16  ;;  %v9933_v2 = vmul.f32 %v9909_v33, %v15058_v41  ;;  %v11902_v5 = vpop.f32.mrb[150].mxu1  ;;  %v9912_v52 = vadd.f32 1.0, %v12293_v57 }
 0xba9   :  { %v9874_v31 = vmul.f32 0.7978846, %v9850_v14  ;;  %v9848_v0 = vadd.f32 %v9824_v19, %v15103_v29  ;;  %v9801_v20 = vmul.f32 %v9777_v24, %v15119_v36  ;;  %v9782_v22 = vmul.f32 0.044715, %v15129_v51  ;;  %v9712_v8 = vpop.f32.mrb[151].mxu1 }
 0xbaa   :  { %v9851_v39 = vadd.f32 %v9827_v61, %v15108_v45  ;;  %v9780_v32 = vmul.f32 0.044715, %v15133_v4  ;;  %v9956_v9 = vpack.c.bf16 %v9933_v2, %v9932_v37  ;;  %v15142_v1 = vadd.f32 %v11902_v5, %v15042_v21 }
 0xbab   :  { %12306 = vtanh.f32 %v9874_v31  ;;  %v9872_v41 = vmul.f32 0.7978846, %v9848_v0  ;;  %v9825_v57 = vmul.f32 %v9801_v20, %v15119_v36  ;;  %v9806_v33 = vmul.f32 %v9782_v22, %v15129_v51 }
 0xbac   :  { %v9875_v14 = vmul.f32 0.7978846, %v9851_v39  ;;  %v9804_v19 = vmul.f32 %v9780_v32, %v15133_v4  ;;  %11915 = vmatprep.mubr.msk.bf16.mxu0 %vm259_vm4, %v9956_v9  ;;  %v9783_v24 = vmul.f32 0.044715, %v15142_v1  ;;  %v15150_v16 = vadd.f32 %v15042_v21, %v9712_v8 }
 0xbad   :  { %v15152_v37 = vpop.eup %12298  ;;  %12308 = vtanh.f32 %v9872_v41  ;;  %v9849_v61 = vadd.f32 %v9825_v57, %v15119_v36  ;;  %v9830_v2 = vmul.f32 %v9806_v33, %v15129_v51  ;;  %11916 = vmatmul.mubr.msk.bf16.vlgmr.msra.gmra.mrb[136].mxu0 %vm259_vm4, %v9957_v13  ;;  %v9913_v5 = vadd.f32 1.0, %v12297_v23 }
 0xbae   :  { %v12301_v31 = vpop.eup %12300  ;;  %12310 = vtanh.f32 %v9875_v14  ;;  %v9828_v0 = vmul.f32 %v9804_v19, %v15133_v4  ;;  %v9807_v20 = vmul.f32 %v9783_v24, %v15142_v1  ;;  %v9781_v22 = vmul.f32 0.044715, %v15150_v16  ;;  %v11905_v8 = vpop.f32.mrb[152].mxu1 }
 0xbaf   :  { %v15160_v39 = vpop.eup %12302  ;;  %v9873_v32 = vmul.f32 0.7978846, %v9849_v61  ;;  %v9854_v9 = vadd.f32 %v9830_v2, %v15129_v51  ;;  %v15164_v41 = vadd.f32 %v11905_v8, %v15042_v21  ;;  %v9725_v57 = vpop.f32.mrb[153].mxu1  ;;  %v9936_v13 = vmul.f32 %v9912_v52, %v15060_v12 }
 0xbb0   :  { %v12305_v23 = vpop.eup %12304  ;;  %v9852_v33 = vadd.f32 %v9828_v0, %v15133_v4  ;;  %v9831_v14 = vmul.f32 %v9807_v20, %v15142_v1  ;;  %v9805_v19 = vmul.f32 %v9781_v22, %v15150_v16  ;;  %v15171_v24 = vadd.f32 %v15042_v21, %v9725_v57  ;;  %v11906_v60 = vpop.f32.mrb[154].mxu1 }
 0xbb1   :  { %12312 = vtanh.f32 %v9873_v32  ;;  %v9878_v61 = vmul.f32 0.7978846, %v9854_v9  ;;  %v9786_v2 = vmul.f32 0.044715, %v15164_v41  ;;  %v9937_v8 = vmul.f32 %v9913_v5, %v15065_v43  ;;  %v9728_v18 = vpop.f32.mrb[155].mxu1 }
 0xbb2   :  { %v9876_v6 = vmul.f32 0.7978846, %v9852_v33  ;;  %v9855_v12 = vadd.f32 %v9831_v14, %v15142_v1  ;;  %v9829_v52 = vmul.f32 %v9805_v19, %v15150_v16  ;;  %v9784_v0 = vmul.f32 0.044715, %v15171_v24 }
 0xbb3   :  { %12314 = vtanh.f32 %v9878_v61  ;;  %v9810_v20 = vmul.f32 %v9786_v2, %v15164_v41  ;;  %v9958_v22 = vpack.c.bf16 %v9937_v8, %v9936_v13  ;;  %v15180_v57 = vadd.f32 %v11906_v60, %v15042_v21 }
 0xbb4   :  { %12316 = vtanh.f32 %v9876_v6  ;;  %v9879_v32 = vmul.f32 0.7978846, %v9855_v12  ;;  %v9853_v9 = vadd.f32 %v9829_v52, %v15150_v16  ;;  %v9808_v43 = vmul.f32 %v9784_v0, %v15171_v24 }
 0xbb5   :  { %v12307_v5 = vpop.eup %12306  ;;  %v9834_v33 = vmul.f32 %v9810_v20, %v15164_v41  ;;  %11919 = vmatprep.mubr.msk.bf16.mxu0 %vm259_vm4, %v9958_v22  ;;  %v9787_v14 = vmul.f32 0.044715, %v15180_v57  ;;  %v9914_v19 = vadd.f32 1.0, %v15114_v58  ;;  %v9915_v13 = vadd.f32 1.0, %v15123_v55 }
 0xbb6   :  { %12318 = vtanh.f32 %v9879_v32  ;;  %v9877_v60 = vmul.f32 0.7978846, %v9853_v9  ;;  %v9832_v6 = vmul.f32 %v9808_v43, %v15171_v24  ;;  %v15191_v61 = vadd.f32 %v15042_v21, %v9728_v18 }
 0xbb7   :  { %v12309_v2 = vpop.eup %12308  ;;  %v9858_v8 = vadd.f32 %v9834_v33, %v15164_v41  ;;  %v9811_v12 = vmul.f32 %v9787_v14, %v15180_v57  ;;  %v9938_v52 = vmul.f32 %v9914_v19, %v15070_v49  ;;  %v9939_v0 = vmul.f32 %v9915_v13, %v15086_v17 }
 0xbb8   :  { %v12311_v20 = vpop.eup %12310  ;;  %12320 = vtanh.f32 %v9877_v60  ;;  %v9856_v58 = vadd.f32 %v9832_v6, %v15171_v24  ;;  %v9785_v55 = vmul.f32 0.044715, %v15191_v61  ;;  %v9748_v22 = vmul.f32 0.5, %v15068_v40 }
 0xbb9   :  { %v9882_v32 = vmul.f32 0.7978846, %v9858_v8  ;;  %v9835_v18 = vmul.f32 %v9811_v12, %v15180_v57  ;;  %v9959_v21 = vpack.c.bf16 %v9939_v0, %v9938_v52  ;;  %v9916_v9 = vadd.f32 1.0, %v12301_v31 }
 0xbba   :  { %v9880_v43 = vmul.f32 0.7978846, %v9856_v58  ;;  %v9809_v33 = vmul.f32 %v9785_v55, %v15191_v61  ;;  %v9749_v49 = vmul.f32 0.5, %v15078_v62  ;;  %v9917_v14 = vadd.f32 1.0, %v12305_v23 }
 0xbbb   :  { %v12313_v17 = vpop.eup %12312  ;;  %12322 = vtanh.f32 %v9882_v32  ;;  %v9859_v19 = vadd.f32 %v9835_v18, %v15180_v57  ;;  %11920 = vmatmul.mubr.msk.bf16.gmra.mrb[140].mxu0 %vm259_vm4, %v9959_v21  ;;  %v9940_v13 = vmul.f32 %v9916_v9, %v9748_v22  ;;  %v9750_v40 = vmul.f32 0.5, %v15063_v3 }
 0xbbc   :  { %v9833_v60 = vmul.f32 %v9809_v33, %v15191_v61  ;;  %v9941_v6 = vmul.f32 %v9917_v14, %v9749_v49  ;;  %v9751_v31 = vmul.f32 0.5, %v15074_v35  ;;  %v9918_v8 = vadd.f32 1.0, %v15152_v37 }
 0xbbd   :  { %v12315_v12 = vpop.eup %12314  ;;  %12324 = vtanh.f32 %v9880_v43  ;;  %v9883_v62 = vmul.f32 0.7978846, %v9859_v19  ;;  %v9919_v23 = vadd.f32 1.0, %v15160_v39  ;;  %v9752_v52 = vmul.f32 0.5, %v15103_v29 }
 0xbbe   :  { %v12317_v0 = vpop.eup %12316  ;;  %v9857_v58 = vadd.f32 %v9833_v60, %v15191_v61  ;;  %v9960_v55 = vpack.c.bf16 %v9941_v6, %v9940_v13  ;;  %v9753_v3 = vmul.f32 0.5, %v15119_v36  ;;  %v9920_v22 = vadd.f32 1.0, %v12309_v2 }
 0xbbf   :  { %12326 = vtanh.f32 %v9883_v62  ;;  %v9942_v32 = vmul.f32 %v9918_v8, %v9750_v40  ;;  %v9943_v18 = vmul.f32 %v9919_v23, %v9751_v31  ;;  %v9921_v35 = vadd.f32 1.0, %v12313_v17 }
 0xbc0   :  { %v12319_v21 = vpop.eup %12318  ;;  %v9881_v37 = vmul.f32 0.7978846, %v9857_v58  ;;  %11923 = vmatprep.mubr.msk.bf16.mxu0 %vm259_vm4, %v9960_v55  ;;  %v9944_v9 = vmul.f32 %v9920_v22, %v9752_v52  ;;  %v9754_v39 = vmul.f32 0.5, %v15093_v27  ;;  %v9922_v43 = vadd.f32 1.0, %v12307_v5 }
 0xbc1   :  { %v9961_v29 = vpack.c.bf16 %v9943_v18, %v9942_v32  ;;  %v9945_v33 = vmul.f32 %v9921_v35, %v9753_v3  ;;  %v9755_v49 = vmul.f32 0.5, %v15108_v45  ;;  %v9923_v14 = vadd.f32 1.0, %v12311_v20 }
 0xbc2   :  { %v12321_v19 = vpop.eup %12320  ;;  %12328 = vtanh.f32 %v9881_v37  ;;  %v9946_v36 = vmul.f32 %v9922_v43, %v9754_v39  ;;  %v9756_v2 = vmul.f32 0.5, %v15133_v4  ;;  %v9924_v13 = vadd.f32 1.0, %v12317_v0 }
 0xbc3   :  { %11924 = vmatmul.mubr.msk.bf16.gmra.mrb[144].mxu0 %vm259_vm4, %v9961_v29  ;;  %v9962_v17 = vpack.c.bf16 %v9945_v33, %v9944_v9  ;;  %v9947_v40 = vmul.f32 %v9923_v14, %v9755_v49  ;;  %v9757_v60 = vmul.f32 0.5, %v15150_v16  ;;  %v9925_v6 = vadd.f32 1.0, %v12321_v19 }
 0xbc4   :  { %v9758_v27 = vmul.f32 0.5, %v15129_v51  ;;  %v9759_v5 = vmul.f32 0.5, %v15142_v1  ;;  %v9926_v31 = vadd.f32 1.0, %v12315_v12  ;;  %v9927_v45 = vadd.f32 1.0, %v12319_v21 }
 0xbc5   :  { %v12323_v20 = vpop.eup %12322  ;;  %11927 = vmatprep.mubr.msk.bf16.mxu0 %vm259_vm4, %v9962_v17  ;;  %v9963_v8 = vpack.c.bf16 %v9947_v40, %v9946_v36  ;;  %v9948_v62 = vmul.f32 %v9924_v13, %v9756_v2  ;;  %v9949_v4 = vmul.f32 %v9925_v6, %v9757_v60  ;;  %v9762_v22 = vmul.f32 0.5, %v15164_v41 }
 0xbc6   :  { %v9950_v23 = vmul.f32 %v9926_v31, %v9758_v27  ;;  %v9951_v52 = vmul.f32 %v9927_v45, %v9759_v5  ;;  %v9930_v3 = vadd.f32 1.0, %v12323_v20  ;;  %v9763_v51 = vmul.f32 0.5, %v15180_v57  ;;  %v15234_v57 = vld [vmem:[%s15664_s9 + $0x7] ss:$0 sm:$0xff] }
 0xbc7   :  { %v12325_v0 = vpop.eup %12324  ;;  %v9964_v58 = vpack.c.bf16 %v9949_v4, %v9948_v62  ;;  %v9760_v21 = vmul.f32 0.5, %v15171_v24  ;;  %v9761_v37 = vmul.f32 0.5, %v15191_v61 }
 0xbc8   :  { %v9965_v55 = vpack.c.bf16 %v9951_v52, %v9950_v23  ;;  %v9928_v12 = vadd.f32 1.0, %v12325_v0  ;;  %v9954_v18 = vmul.f32 %v9930_v3, %v9762_v22 }
 0xbc9   :  { %v12327_v16 = vpop.eup %12326 }
 0xbca   :  { %v9931_v1 = vadd.f32 1.0, %v12327_v16  ;;  %v9952_v43 = vmul.f32 %v9928_v12, %v9760_v21 }
 0xbcb   :  { %11928 = vmatmul.mubr.msk.bf16.gmra.mrb[148].mxu0 %vm259_vm4, %v9963_v8 }
 0xbcc   :  { %v12329_v32 = vpop.eup %12328  ;;  %11931 = vmatprep.mubr.msk.bf16.mxu0 %vm259_vm4, %v9964_v58  ;;  %v9955_v35 = vmul.f32 %v9931_v1, %v9763_v51 }
 0xbcd   :  { %v9929_v9 = vadd.f32 1.0, %v12329_v32 }
 0xbce   :  { %v9967_v39 = vpack.c.bf16 %v9955_v35, %v9954_v18 }
 0xbcf   :  { %v9953_v29 = vmul.f32 %v9929_v9, %v9761_v37 }
 0xbd1   :  { %v9966_v41 = vpack.c.bf16 %v9953_v29, %v9952_v43 }
 0xbd3   :  { %11932 = vmatmul.mubr.msk.bf16.gmra.mrb[152].mxu0 %vm259_vm4, %v9965_v55 }
 0xbd4   :  { %11935 = vmatprep.mubr.msk.bf16.mxu0 %vm259_vm4, %v9966_v41 }
 0xbdb   :  { %11936 = vmatmul.mubr.msk.bf16.gmra.mrb[156].mxu0 %vm259_vm4, %v9967_v39  ;;  %vm10642_vm4 = vcmask 1041409  }
 0xc80   :  { %v11917_v33 = vpop.f32.mrb[136].mxu0 }
 0xc81   :  { %v10083_v24 = vadd.f32 %v11917_v33, %v15234_v57  ;;  %v10074_v61 = vpop.f32.mrb[137].mxu0 }
 0xc82   :  { %v10075_v49 = vadd.f32 %v15234_v57, %v10074_v61  ;;  %v11918_v14 = vpop.f32.mrb[138].mxu0 }
 0xc83   :  { %v15239_v19 = vadd.f32 %v10083_v24, %v14892_v38  ;;  %v10086_v36 = vadd.f32 %v11918_v14, %v15234_v57  ;;  %v10077_v2 = vpop.f32.mrb[139].mxu0 }
 0xc84   :  { %v15243_v13 = vadd.f32 %v10075_v49, %v14877_v11  ;;  %v10078_v40 = vadd.f32 %v15234_v57, %v10077_v2 }
 0xc85   :  { %v15246_v17 = vadd.f32 %v10086_v36, %v14895_v7  ;;  %v10199_v60 = vsel %vm457_vm10, %v15239_v19, 0.0 }
 0xc86   :  { %10200 = vadd.xlane.f32.xlu1 %v10199_v60  ;;  %v10193_v6 = vsel %vm457_vm10, %v15243_v13, 0.0  ;;  %v15254_v38 = vadd.f32 %v10078_v40, %v14880_v15 }
 0xc87   :  { %10194 = vadd.xlane.f32.xlu0 %v10193_v6  ;;  %v10202_v11 = vsel %vm457_vm10, %v15246_v17, 0.0 }
 0xc88   :  { %v10196_v7 = vsel %vm457_vm10, %v15254_v38, 0.0 }
 0xc8a   :  { %10203 = vadd.xlane.f32.xlu1 %v10202_v11 }
 0xc8e   :  { %v11921_v27 = vpop.f32.mrb[140].mxu0  ;;  %10197 = vadd.xlane.f32.xlu1 %v10196_v7 }
 0xc8f   :  { %v10099_v5 = vadd.f32 %v11921_v27, %v15234_v57  ;;  %v10090_v31 = vpop.f32.mrb[141].mxu0 }
 0xc90   :  { %v10091_v45 = vadd.f32 %v15234_v57, %v10090_v31  ;;  %v11922_v20 = vpop.f32.mrb[142].mxu0 }
 0xc91   :  { %v15263_v8 = vadd.f32 %v10099_v5, %v14915_v30  ;;  %v10102_v15 = vadd.f32 %v11922_v20, %v15234_v57  ;;  %v10093_v62 = vpop.f32.mrb[143].mxu0 }
 0xc92   :  { %v15267_v4 = vadd.f32 %v10091_v45, %v14906_v63  ;;  %v10094_v0 = vadd.f32 %v15234_v57, %v10093_v62 }
 0xc93   :  { %v10211_v23 = vsel %vm457_vm10, %v15263_v8, 0.0  ;;  %v15272_v52 = vadd.f32 %v10102_v15, %v14921_v34 }
 0xc94   :  { %10212 = vadd.xlane.f32.xlu0 %v10211_v23  ;;  %v10205_v58 = vsel %vm457_vm10, %v15267_v4, 0.0  ;;  %v15279_v63 = vadd.f32 %v10094_v0, %v14909_v56 }
 0xc95   :  { %10206 = vadd.xlane.f32.xlu1 %v10205_v58  ;;  %v10214_v34 = vsel %vm457_vm10, %v15272_v52, 0.0 }
 0xc96   :  { %v11925_v30 = vpop.f32.mrb[144].mxu0 }
 0xc97   :  { %v10115_v55 = vadd.f32 %v11925_v30, %v15234_v57  ;;  %v10106_v3 = vpop.f32.mrb[145].mxu0 }
 0xc98   :  { %v10107_v16 = vadd.f32 %v15234_v57, %v10106_v3  ;;  %v11926_v22 = vpop.f32.mrb[146].mxu0 }
 0xc99   :  { %v15285_v51 = vadd.f32 %v10115_v55, %v14945_v59  ;;  %v10118_v1 = vadd.f32 %v11926_v22, %v15234_v57  ;;  %v10109_v12 = vpop.f32.mrb[147].mxu0  ;;  %10215 = vadd.xlane.f32.xlu1 %v10214_v34  ;;  %v10208_v59 = vsel %vm457_vm10, %v15279_v63, 0.0  ;;  %v15953_v22 = vld [vmem:[#allocation68_spill] sm:$0xff] }
 0xc9a   :  { %v15289_v32 = vadd.f32 %v10107_v16, %v14931_v50  ;;  %v10110_v18 = vadd.f32 %v15234_v57, %v10109_v12 }
 0xc9b   :  { %v10223_v56 = vsel %vm457_vm10, %v15285_v51, 0.0  ;;  %v15295_v35 = vadd.f32 %v10118_v1, %v14948_v44 }
 0xc9c   :  { %10224 = vadd.xlane.f32.xlu0 %v10223_v56  ;;  %v15300_v37 = vadd.f32 %v10110_v18, %v14934_v46  ;;  %v10217_v39 = vsel %vm457_vm10, %v15289_v32, 0.0 }
 0xc9d   :  { %10209 = vadd.xlane.f32.xlu1 %v10208_v59  ;;  %v10226_v29 = vsel %vm457_vm10, %v15295_v35, 0.0  ;;  %v15955_v59 = vld [vmem:[#allocation71_spill] sm:$0xff] }
 0xc9e   :  { %v11929_v21 = vpop.f32.mrb[148].mxu0  ;;  %v10220_v61 = vsel %vm457_vm10, %v15300_v37, 0.0 }
 0xc9f   :  { %v10131_v50 = vadd.f32 %v11929_v21, %v15234_v57  ;;  %v10122_v9 = vpop.f32.mrb[149].mxu0 }
 0xca0   :  { %v10123_v43 = vadd.f32 %v15234_v57, %v10122_v9  ;;  %10218 = vadd.xlane.f32.xlu0 %v10217_v39  ;;  %v11930_v44 = vpop.f32.mrb[150].mxu0 }
 0xca1   :  { %v15309_v41 = vadd.f32 %v10131_v50, %v14967_v25  ;;  %v10125_v33 = vpop.f32.mrb[151].mxu0  ;;  %10227 = vadd.xlane.f32.xlu1 %v10226_v29  ;;  %v10134_v24 = vadd.f32 %v11930_v44, %v15234_v57 }
 0xca2   :  { %v15312_v46 = vadd.f32 %v10123_v43, %v14955_v10  ;;  %v10126_v25 = vadd.f32 %v15234_v57, %v10125_v33 }
 0xca3   :  { %v10235_v49 = vsel %vm457_vm10, %v15309_v41, 0.0  ;;  %v15320_v36 = vadd.f32 %v10134_v24, %v14974_v42 }
 0xca4   :  { %10221 = vadd.xlane.f32.xlu0 %v10220_v61  ;;  %v10229_v10 = vsel %vm457_vm10, %v15312_v46, 0.0  ;;  %v15331_v27 = vadd.f32 %v10126_v25, %v14960_v48 }
 0xca5   :  { %10236 = vadd.xlane.f32.xlu1 %v10235_v49  ;;  %v10238_v5 = vsel %vm457_vm10, %v15320_v36, 0.0 }
 0xca6   :  { %v11933_v14 = vpop.f32.mrb[152].mxu0  ;;  %v10232_v62 = vsel %vm457_vm10, %v15331_v27, 0.0 }
 0xca7   :  { %v10138_v2 = vpop.f32.mrb[153].mxu0  ;;  %v10147_v42 = vadd.f32 %v11933_v14, %v15234_v57 }
 0xca8   :  { %v10139_v40 = vadd.f32 %v15234_v57, %v10138_v2  ;;  %10230 = vadd.xlane.f32.xlu0 %v10229_v10  ;;  %v11934_v60 = vpop.f32.mrb[154].mxu0 }
 0xca9   :  { %v10141_v6 = vpop.f32.mrb[155].mxu0  ;;  %v15342_v20 = vadd.f32 %v10147_v42, %v14996_v54  ;;  %v10150_v48 = vadd.f32 %v11934_v60, %v15234_v57 }
 0xcaa   :  { %v15327_v11 = vadd.f32 %v10139_v40, %v14980_v47  ;;  %v10142_v7 = vadd.f32 %v15234_v57, %v10141_v6 }
 0xcab   :  { %v15355_v55 = vadd.f32 %v10150_v48, %v14999_v26  ;;  %v10247_v16 = vsel %vm457_vm10, %v15342_v20, 0.0 }
 0xcac   :  { %v15337_v31 = vadd.f32 %v10142_v7, %v14985_v53  ;;  %10239 = vadd.xlane.f32.xlu0 %v10238_v5  ;;  %v10241_v45 = vsel %vm457_vm10, %v15327_v11, 0.0 }
 0xcad   :  { %10242 = vadd.xlane.f32.xlu1 %v10241_v45  ;;  %v10250_v26 = vsel %vm457_vm10, %v15355_v55, 0.0 }
 0xcae   :  { %v11937_v47 = vpop.f32.mrb[156].mxu0  ;;  %v10244_v58 = vsel %vm457_vm10, %v15337_v31, 0.0 }
 0xcaf   :  { %v10154_v15 = vpop.f32.mrb[157].mxu0  ;;  %v10163_v23 = vadd.f32 %v11937_v47, %v15234_v57 }
 0xcb0   :  { %v10155_v53 = vadd.f32 %v15234_v57, %v10154_v15  ;;  %10233 = vadd.xlane.f32.xlu0 %v10232_v62  ;;  %v11938_v0 = vpop.f32.mrb[158].mxu0 }
 0xcb1   :  { %10245 = vadd.xlane.f32.xlu1 %v10244_v58  ;;  %v10157_v30 = vpop.f32.mrb[159].mxu0  ;;  %v15361_v34 = vadd.f32 %v10163_v23, %v15953_v22  ;;  %v10166_v12 = vadd.f32 %v11938_v0, %v15234_v57 }
 0xcb2   :  { %v15352_v54 = vadd.f32 %v10155_v53, %v15008_v28  ;;  %v10158_v3 = vadd.f32 %v15234_v57, %v10157_v30  ;;  %v15954_v28 = vld [vmem:[#allocation69_spill] sm:$0xff] }
 0xcb3   :  { %v10259_v56 = vsel %vm457_vm10, %v15361_v34, 0.0  ;;  %v15374_v21 = vadd.f32 %v10166_v12, %v15955_v59 }
 0xcb4   :  { %10248 = vadd.xlane.f32.xlu0 %v10247_v16  ;;  %v10253_v1 = vsel %vm457_vm10, %v15352_v54, 0.0  ;;  %v15367_v18 = vadd.f32 %v10158_v3, %v15954_v28 }
 0xcb5   :  { %10254 = vadd.xlane.f32.xlu1 %v10253_v1  ;;  %v10262_v57 = vsel %vm457_vm10, %v15374_v21, 0.0 }
 0xcb6   :  { %v10256_v50 = vsel %vm457_vm10, %v15367_v18, 0.0 }
 0xcb8   :  { %10251 = vadd.xlane.f32.xlu0 %v10250_v26 }
 0xcb9   :  { %10260 = vadd.xlane.f32.xlu1 %v10259_v56 }
 0xcbc   :  { %10257 = vadd.xlane.f32.xlu0 %v10256_v50 }
 0xcc0   :  { %10263 = vadd.xlane.f32.xlu0 %v10262_v57 }
 0xd13   :  { %v10201_v9 = vpop.xlane.xlu1 %10200 }
 0xd14   :  { %v10267_v39 = vmul.f32 0.03125, %v10201_v9  ;;  %v10195_v43 = vpop.xlane.xlu0 %10194 }
 0xd15   :  { %v10265_v44 = vmul.f32 0.03125, %v10195_v43 }
 0xd16   :  { %v15381_v29 = vsub.f32 %v15239_v19, %v10267_v39 }
 0xd17   :  { %v15384_v33 = vsub.f32 %v15243_v13, %v10265_v44  ;;  %v10204_v24 = vpop.xlane.xlu1 %10203 }
 0xd18   :  { %v10268_v61 = vmul.f32 0.03125, %v10204_v24  ;;  %v10315_v49 = vmul.f32 %v15381_v29, %v15381_v29 }
 0xd19   :  { %v10313_v14 = vmul.f32 %v15384_v33, %v15384_v33 }
 0xd1a   :  { %v15391_v25 = vsub.f32 %v15246_v17, %v10268_v61  ;;  %v10343_v2 = vsel %vm457_vm10, %v10315_v49, 0.0 }
 0xd1b   :  { %v10198_v10 = vpop.xlane.xlu1 %10197  ;;  %10344 = vadd.xlane.f32.xlu1 %v10343_v2  ;;  %v10337_v19 = vsel %vm457_vm10, %v10313_v14, 0.0 }
 0xd1c   :  { %v10266_v40 = vmul.f32 0.03125, %v10198_v10  ;;  %10338 = vadd.xlane.f32.xlu0 %v10337_v19  ;;  %v10316_v13 = vmul.f32 %v15391_v25, %v15391_v25 }
 0xd1e   :  { %v15398_v60 = vsub.f32 %v15254_v38, %v10266_v40  ;;  %v10346_v6 = vsel %vm457_vm10, %v10316_v13, 0.0 }
 0xd1f   :  { %10347 = vadd.xlane.f32.xlu1 %v10346_v6 }
 0xd20   :  { %v10314_v17 = vmul.f32 %v15398_v60, %v15398_v60 }
 0xd21   :  { %v10213_v7 = vpop.xlane.xlu0 %10212 }
 0xd22   :  { %v10271_v42 = vmul.f32 0.03125, %v10213_v7  ;;  %v10207_v5 = vpop.xlane.xlu1 %10206  ;;  %v10340_v45 = vsel %vm457_vm10, %v10314_v17, 0.0 }
 0xd23   :  { %v10269_v47 = vmul.f32 0.03125, %v10207_v5  ;;  %10341 = vadd.xlane.f32.xlu1 %v10340_v45 }
 0xd24   :  { %v15405_v48 = vsub.f32 %v15263_v8, %v10271_v42 }
 0xd25   :  { %v15408_v15 = vsub.f32 %v15267_v4, %v10269_v47 }
 0xd26   :  { %v10216_v38 = vpop.xlane.xlu1 %10215  ;;  %v10319_v62 = vmul.f32 %v15405_v48, %v15405_v48 }
 0xd27   :  { %v10272_v23 = vmul.f32 0.03125, %v10216_v38  ;;  %v10317_v53 = vmul.f32 %v15408_v15, %v15408_v15 }
 0xd28   :  { %v10355_v0 = vsel %vm457_vm10, %v10319_v62, 0.0 }
 0xd29   :  { %v15416_v58 = vsub.f32 %v15272_v52, %v10272_v23  ;;  %10356 = vadd.xlane.f32.xlu0 %v10355_v0  ;;  %v10225_v30 = vpop.xlane.xlu0 %10224  ;;  %v10349_v8 = vsel %vm457_vm10, %v10317_v53, 0.0 }
 0xd2a   :  { %v10275_v3 = vmul.f32 0.03125, %v10225_v30  ;;  %v10210_v4 = vpop.xlane.xlu1 %10209  ;;  %10350 = vadd.xlane.f32.xlu1 %v10349_v8 }
 0xd2b   :  { %v10270_v16 = vmul.f32 0.03125, %v10210_v4  ;;  %v10320_v22 = vmul.f32 %v15416_v58, %v15416_v58 }
 0xd2c   :  { %v15422_v1 = vsub.f32 %v15285_v51, %v10275_v3 }
 0xd2d   :  { %v15425_v12 = vsub.f32 %v15279_v63, %v10270_v16  ;;  %v10219_v28 = vpop.xlane.xlu0 %10218  ;;  %v10358_v52 = vsel %vm457_vm10, %v10320_v22, 0.0 }
 0xd2e   :  { %v10273_v26 = vmul.f32 0.03125, %v10219_v28  ;;  %v10228_v56 = vpop.xlane.xlu1 %10227  ;;  %10359 = vadd.xlane.f32.xlu1 %v10358_v52  ;;  %v10323_v59 = vmul.f32 %v15422_v1, %v15422_v1 }
 0xd2f   :  { %v10276_v50 = vmul.f32 0.03125, %v10228_v56  ;;  %v10318_v57 = vmul.f32 %v15425_v12, %v15425_v12 }
 0xd30   :  { %v15433_v9 = vsub.f32 %v15289_v32, %v10273_v26  ;;  %v10367_v51 = vsel %vm457_vm10, %v10323_v59, 0.0 }
 0xd31   :  { %v15437_v63 = vsub.f32 %v15295_v35, %v10276_v50  ;;  %10368 = vadd.xlane.f32.xlu0 %v10367_v51  ;;  %v10222_v39 = vpop.xlane.xlu0 %10221  ;;  %v10352_v43 = vsel %vm457_vm10, %v10318_v57, 0.0 }
 0xd32   :  { %v10274_v44 = vmul.f32 0.03125, %v10222_v39  ;;  %v10237_v24 = vpop.xlane.xlu1 %10236  ;;  %10353 = vadd.xlane.f32.xlu1 %v10352_v43  ;;  %v10321_v61 = vmul.f32 %v15433_v9, %v15433_v9 }
 0xd33   :  { %v10279_v49 = vmul.f32 0.03125, %v10237_v24  ;;  %v10324_v32 = vmul.f32 %v15437_v63, %v15437_v63 }
 0xd34   :  { %v15445_v14 = vsub.f32 %v15300_v37, %v10274_v44  ;;  %v10361_v35 = vsel %vm457_vm10, %v10321_v61, 0.0 }
 0xd35   :  { %v15449_v2 = vsub.f32 %v15309_v41, %v10279_v49  ;;  %10362 = vadd.xlane.f32.xlu0 %v10361_v35  ;;  %v10231_v10 = vpop.xlane.xlu0 %10230  ;;  %v10370_v19 = vsel %vm457_vm10, %v10324_v32, 0.0 }
 0xd36   :  { %v10277_v40 = vmul.f32 0.03125, %v10231_v10  ;;  %10371 = vadd.xlane.f32.xlu1 %v10370_v19  ;;  %v10322_v13 = vmul.f32 %v15445_v14, %v15445_v14 }
 0xd37   :  { %v10327_v6 = vmul.f32 %v15449_v2, %v15449_v2 }
 0xd38   :  { %v15457_v37 = vsub.f32 %v15312_v46, %v10277_v40  ;;  %v10364_v17 = vsel %vm457_vm10, %v10322_v13, 0.0 }
 0xd39   :  { %10365 = vadd.xlane.f32.xlu0 %v10364_v17  ;;  %v10240_v41 = vpop.xlane.xlu0 %10239  ;;  %v10379_v7 = vsel %vm457_vm10, %v10327_v6, 0.0 }
 0xd3a   :  { %v10280_v42 = vmul.f32 0.03125, %v10240_v41  ;;  %v10243_v5 = vpop.xlane.xlu1 %10242  ;;  %10380 = vadd.xlane.f32.xlu1 %v10379_v7  ;;  %v10325_v45 = vmul.f32 %v15457_v37, %v15457_v37 }
 0xd3b   :  { %v10281_v47 = vmul.f32 0.03125, %v10243_v5 }
 0xd3c   :  { %v15464_v38 = vsub.f32 %v15320_v36, %v10280_v42  ;;  %v10373_v62 = vsel %vm457_vm10, %v10325_v45, 0.0  ;;  %v12040_v45 = vld [vmem:[%s15669_s8] sm:$0xff]  }
 0xd3d   :  { %v15468_v46 = vsub.f32 %v15327_v11, %v10281_v47  ;;  %10374 = vadd.xlane.f32.xlu0 %v10373_v62  ;;  %v10234_v23 = vpop.xlane.xlu0 %10233  ;;  %v12041_v47 = vld [vmem:[%s15669_s8 + $0x8] sm:$0xff]   ;;  %11939 = vmatprep.subr.bf16.mxu1 %v12040_v45 }
 0xd3e   :  { %v10278_v53 = vmul.f32 0.03125, %v10234_v23  ;;  %v10246_v0 = vpop.xlane.xlu1 %10245  ;;  %v10328_v30 = vmul.f32 %v15464_v38, %v15464_v38  ;;  %11940 = vmatpush3.bf16.msra.mxu1 %v12040_v45 }
 0xd3f   :  { %v10282_v8 = vmul.f32 0.03125, %v10246_v0  ;;  %v10329_v3 = vmul.f32 %v15468_v46, %v15468_v46  ;;  %11941 = vmatprep.subr.bf16.mxu1 %v12041_v47 }
 0xd40   :  { %v15475_v4 = vsub.f32 %v15331_v27, %v10278_v53  ;;  %v10382_v36 = vsel %vm457_vm10, %v10328_v30, 0.0 }
 0xd41   :  { %v15479_v16 = vsub.f32 %v15337_v31, %v10282_v8  ;;  %10383 = vadd.xlane.f32.xlu0 %v10382_v36  ;;  %v10249_v11 = vpop.xlane.xlu0 %10248  ;;  %v10385_v22 = vsel %vm457_vm10, %v10329_v3, 0.0 }
 0xd42   :  { %v10283_v28 = vmul.f32 0.03125, %v10249_v11  ;;  %10386 = vadd.xlane.f32.xlu1 %v10385_v22  ;;  %v10255_v52 = vpop.xlane.xlu1 %10254  ;;  %v10326_v26 = vmul.f32 %v15475_v4, %v15475_v4  ;;  %11942 = vmatpush3.bf16.msra.mxu1 %v12041_v47 }
 0xd43   :  { %v10285_v56 = vmul.f32 0.03125, %v10255_v52  ;;  %v10330_v27 = vmul.f32 %v15479_v16, %v15479_v16 }
 0xd44   :  { %v15487_v59 = vsub.f32 %v15342_v20, %v10283_v28  ;;  %v10376_v31 = vsel %vm457_vm10, %v10326_v26, 0.0 }
 0xd45   :  { %v15491_v50 = vsub.f32 %v15352_v54, %v10285_v56  ;;  %10377 = vadd.xlane.f32.xlu0 %v10376_v31  ;;  %v10252_v57 = vpop.xlane.xlu0 %10251  ;;  %v10388_v51 = vsel %vm457_vm10, %v10330_v27, 0.0 }
 0xd46   :  { %v10284_v39 = vmul.f32 0.03125, %v10252_v57  ;;  %10389 = vadd.xlane.f32.xlu1 %v10388_v51  ;;  %v10261_v43 = vpop.xlane.xlu1 %10260  ;;  %v10331_v44 = vmul.f32 %v15487_v59, %v15487_v59 }
 0xd47   :  { %v10287_v24 = vmul.f32 0.03125, %v10261_v43  ;;  %v10333_v20 = vmul.f32 %v15491_v50, %v15491_v50 }
 0xd48   :  { %v15499_v61 = vsub.f32 %v15355_v55, %v10284_v39  ;;  %v10391_v54 = vsel %vm457_vm10, %v10331_v44, 0.0 }
 0xd49   :  { %v15503_v49 = vsub.f32 %v15361_v34, %v10287_v24  ;;  %10392 = vadd.xlane.f32.xlu0 %v10391_v54  ;;  %v10258_v32 = vpop.xlane.xlu0 %10257  ;;  %v10397_v35 = vsel %vm457_vm10, %v10333_v20, 0.0  ;;  %v15534_v24 = vld [vmem:[%s15664_s9 + $0x4] ss:$0 sm:$0xff] }
 0xd4a   :  { %v10286_v10 = vmul.f32 0.03125, %v10258_v32  ;;  %10398 = vadd.xlane.f32.xlu1 %v10397_v35  ;;  %v10332_v19 = vmul.f32 %v15499_v61, %v15499_v61 }
 0xd4b   :  { %v10335_v40 = vmul.f32 %v15503_v49, %v15503_v49 }
 0xd4c   :  { %v15511_v55 = vsub.f32 %v15367_v18, %v10286_v10  ;;  %v10394_v13 = vsel %vm457_vm10, %v10332_v19, 0.0 }
 0xd4d   :  { %10395 = vadd.xlane.f32.xlu0 %v10394_v13  ;;  %v10264_v34 = vpop.xlane.xlu0 %10263  ;;  %v10403_v6 = vsel %vm457_vm10, %v10335_v40, 0.0  ;;  %v15542_v13 = vld [vmem:[%s15664_s9 + $0x5] ss:$0 sm:$0xff] }
 0xd4e   :  { %v10288_v17 = vmul.f32 0.03125, %v10264_v34  ;;  %10404 = vadd.xlane.f32.xlu1 %v10403_v6  ;;  %v10334_v41 = vmul.f32 %v15511_v55, %v15511_v55 }
 0xd50   :  { %v15518_v7 = vsub.f32 %v15374_v21, %v10288_v17  ;;  %v10400_v42 = vsel %vm457_vm10, %v10334_v41, 0.0 }
 0xd51   :  { %10401 = vadd.xlane.f32.xlu0 %v10400_v42 }
 0xd52   :  { %v10336_v18 = vmul.f32 %v15518_v7, %v15518_v7 }
 0xd54   :  { %v10406_v5 = vsel %vm457_vm10, %v10336_v18, 0.0 }
 0xd55   :  { %10407 = vadd.xlane.f32.xlu0 %v10406_v5 }
 0xda8   :  { %v10345_v21 = vpop.xlane.xlu1 %10344 }
 0xda9   :  { %v10411_v62 = vmul.f32 0.03125, %v10345_v21  ;;  %v10339_v23 = vpop.xlane.xlu0 %10338 }
 0xdaa   :  { %v10409_v53 = vmul.f32 0.03125, %v10339_v23 }
 0xdab   :  { %v10435_v0 = vadd.f32 1e-12, %v10411_v62 }
 0xdac   :  { %v10433_v30 = vadd.f32 1e-12, %v10409_v53  ;;  %v10348_v8 = vpop.xlane.xlu1 %10347 }
 0xdad   :  { %12330 = vrsqrt.f32 %v10435_v0  ;;  %v10412_v3 = vmul.f32 0.03125, %v10348_v8 }
 0xdae   :  { %12332 = vrsqrt.f32 %v10433_v30 }
 0xdaf   :  { %v10436_v36 = vadd.f32 1e-12, %v10412_v3 }
 0xdb0   :  { %v10342_v11 = vpop.xlane.xlu1 %10341 }
 0xdb1   :  { %12334 = vrsqrt.f32 %v10436_v36  ;;  %v10410_v22 = vmul.f32 0.03125, %v10342_v11 }
 0xdb3   :  { %v10434_v28 = vadd.f32 1e-12, %v10410_v22 }
 0xdb5   :  { %12336 = vrsqrt.f32 %v10434_v28 }
 0xdb6   :  { %v10357_v52 = vpop.xlane.xlu0 %10356 }
 0xdb7   :  { %v12331_v26 = vpop.eup %12330  ;;  %v10415_v56 = vmul.f32 0.03125, %v10357_v52  ;;  %v10351_v27 = vpop.xlane.xlu1 %10350 }
 0xdb8   :  { %v10413_v31 = vmul.f32 0.03125, %v10351_v27  ;;  %v12333_v51 = vpop.eup %12332  ;;  %v10483_v39 = vmul.f32 %v12331_v26, %v15381_v29 }
 0xdb9   :  { %v10439_v57 = vadd.f32 1e-12, %v10415_v56  ;;  %v10481_v32 = vmul.f32 %v12333_v51, %v15384_v33 }
 0xdba   :  { %v10437_v43 = vadd.f32 1e-12, %v10413_v31  ;;  %v10511_v10 = vmul.f32 %v15534_v24, %v10483_v39 }
 0xdbb   :  { %v12335_v44 = vpop.eup %12334  ;;  %12338 = vrsqrt.f32 %v10439_v57  ;;  %v10360_v20 = vpop.xlane.xlu1 %10359  ;;  %v10509_v41 = vmul.f32 %v15534_v24, %v10481_v32 }
 0xdbc   :  { %12340 = vrsqrt.f32 %v10437_v43  ;;  %v10416_v54 = vmul.f32 0.03125, %v10360_v20  ;;  %v10484_v35 = vmul.f32 %v12335_v44, %v15391_v25  ;;  %v10539_v18 = vadd.f32 %v15542_v13, %v10511_v10 }
 0xdbd   :  { %v10537_v0 = vadd.f32 %v15542_v13, %v10509_v41 }
 0xdbe   :  { %v10440_v19 = vadd.f32 1e-12, %v10416_v54  ;;  %v10369_v40 = vpop.xlane.xlu0 %10368  ;;  %v10512_v33 = vmul.f32 %v15534_v24, %v10484_v35  ;;  %v10563_v36 = vpack.c.bf16 %v10539_v18, %v10539_v18 }
 0xdbf   :  { %v12337_v29 = vpop.eup %12336  ;;  %v10419_v34 = vmul.f32 0.03125, %v10369_v40  ;;  %v10354_v6 = vpop.xlane.xlu1 %10353  ;;  %v10561_v39 = vpack.c.bf16 %v10537_v0, %v10537_v0 }
 0xdc0   :  { %v10482_v17 = vmul.f32 %v12337_v29, %v15398_v60  ;;  %v10414_v25 = vmul.f32 0.03125, %v10354_v6  ;;  %12342 = vrsqrt.f32 %v10440_v19  ;;  %v10540_v30 = vadd.f32 %v15542_v13, %v10512_v33 }
 0xdc1   :  { %v10443_v42 = vadd.f32 1e-12, %v10419_v34  ;;  %v10619_v20 = vunpack.c.l.b16 %v10563_v36  ;;  %v10617_v29 = vunpack.c.l.b16 %v10561_v39 }
 0xdc2   :  { %v10510_v5 = vmul.f32 %v15534_v24, %v10482_v17  ;;  %v10363_v45 = vpop.xlane.xlu0 %10362  ;;  %v10438_v47 = vadd.f32 1e-12, %v10414_v25  ;;  %v10564_v43 = vpack.c.bf16 %v10540_v30, %v10540_v30 }
 0xdc3   :  { %12344 = vrsqrt.f32 %v10443_v42  ;;  %v10417_v21 = vmul.f32 0.03125, %v10363_v45  ;;  %v10372_v62 = vpop.xlane.xlu1 %10371  ;;  %v10644_v17 = vrot.slane %v10619_v20, 6 }
 0xdc4   :  { %v10538_v23 = vadd.f32 %v15542_v13, %v10510_v5  ;;  %v10420_v53 = vmul.f32 0.03125, %v10372_v62  ;;  %12346 = vrsqrt.f32 %v10438_v47  ;;  %v10620_v34 = vunpack.c.l.b16 %v10564_v43 }
 0xdc5   :  { %v12339_v60 = vpop.eup %12338  ;;  %v10441_v8 = vadd.f32 1e-12, %v10417_v21 }
 0xdc6   :  { %v12341_v3 = vpop.eup %12340  ;;  %v10562_v11 = vpack.c.bf16 %v10538_v23, %v10538_v23  ;;  %v10487_v22 = vmul.f32 %v12339_v60, %v15405_v48  ;;  %v10444_v28 = vadd.f32 1e-12, %v10420_v53  ;;  %v10366_v52 = vpop.xlane.xlu0 %10365  ;;  %v10647_v60 = vrot.slane %v10620_v34, 5 }
 0xdc7   :  { %v10485_v26 = vmul.f32 %v12341_v3, %v15408_v15  ;;  %12348 = vrsqrt.f32 %v10441_v8  ;;  %v10418_v56 = vmul.f32 0.03125, %v10366_v52  ;;  %v10381_v27 = vpop.xlane.xlu1 %10380 }
 0xdc8   :  { %v10618_v31 = vunpack.c.l.b16 %v10562_v11  ;;  %v10515_v57 = vmul.f32 %v15534_v24, %v10487_v22  ;;  %12350 = vrsqrt.f32 %v10444_v28  ;;  %v10423_v51 = vmul.f32 0.03125, %v10381_v27 }
 0xdc9   :  { %v10442_v44 = vadd.f32 1e-12, %v10418_v56  ;;  %v10513_v48 = vmul.f32 %v15534_v24, %v10485_v26 }
 0xdca   :  { %v10447_v54 = vadd.f32 1e-12, %v10423_v51  ;;  %v10375_v32 = vpop.xlane.xlu0 %10374  ;;  %v10641_v35 = vrot.slane %v10618_v31, 7  ;;  %v12343_v15 = vpop.eup %12342  ;;  %v10543_v19 = vadd.f32 %v15542_v13, %v10515_v57 }
 0xdcb   :  { %12352 = vrsqrt.f32 %v10442_v44  ;;  %v10421_v10 = vmul.f32 0.03125, %v10375_v32  ;;  %v10541_v25 = vadd.f32 %v15542_v13, %v10513_v48  ;;  %v10488_v47 = vmul.f32 %v12343_v15, %v15416_v58 }
 0xdcc   :  { %12354 = vrsqrt.f32 %v10447_v54  ;;  %v10643_v45 = vsel %vm10642_vm4, %v10641_v35, %v10617_v29  ;;  %v10567_v23 = vpack.c.bf16 %v10543_v19, %v10543_v19 }
 0xdcd   :  { %v12345_v40 = vpop.eup %12344  ;;  %v10445_v6 = vadd.f32 1e-12, %v10421_v10  ;;  %v10646_v11 = vsel %vm10645_vm14, %v10644_v17, %v10643_v45  ;;  %v10565_v52 = vpack.c.bf16 %v10541_v25, %v10541_v25  ;;  %v10516_v26 = vmul.f32 %v15534_v24, %v10488_v47 }
 0xdce   :  { %v10491_v41 = vmul.f32 %v12345_v40, %v15422_v1  ;;  %v10384_v33 = vpop.xlane.xlu0 %10383  ;;  %v12347_v42 = vpop.eup %12346  ;;  %v15568_v56 = vunpack.c.l.b16 %v10567_v23  ;;  %v15574_v44 = vsel %vm10648_vm15, %v10647_v60, %v10646_v11 }
 0xdcf   :  { %12356 = vrsqrt.f32 %v10445_v6  ;;  %v10424_v18 = vmul.f32 0.03125, %v10384_v33  ;;  %v10387_v5 = vpop.xlane.xlu1 %10386  ;;  %v10486_v21 = vmul.f32 %v12347_v42, %v15425_v12  ;;  %v15578_v48 = vunpack.c.l.b16 %v10565_v52 }
 0xdd0   :  { %v10425_v62 = vmul.f32 0.03125, %v10387_v5  ;;  %v10519_v30 = vmul.f32 %v15534_v24, %v10491_v41  ;;  %v10544_v15 = vadd.f32 %v15542_v13, %v10516_v26  ;;  %v10656_v19 = vrot.slane %v15568_v56, 2 }
 0xdd1   :  { %v12349_v53 = vpop.eup %12348  ;;  %v10448_v0 = vadd.f32 1e-12, %v10424_v18  ;;  %v10514_v22 = vmul.f32 %v15534_v24, %v10486_v21 }
 0xdd2   :  { %v12351_v1 = vpop.eup %12350  ;;  %v10489_v8 = vmul.f32 %v12349_v53, %v15433_v9  ;;  %v10449_v3 = vadd.f32 1e-12, %v10425_v62  ;;  %v10378_v36 = vpop.xlane.xlu0 %10377  ;;  %v10547_v39 = vadd.f32 %v15542_v13, %v10519_v30  ;;  %v10568_v26 = vpack.c.bf16 %v10544_v15, %v10544_v15 }
 0xdd3   :  { %v10492_v58 = vmul.f32 %v12351_v1, %v15437_v63  ;;  %12358 = vrsqrt.f32 %v10448_v0  ;;  %v10422_v12 = vmul.f32 0.03125, %v10378_v36  ;;  %v10390_v28 = vpop.xlane.xlu1 %10389  ;;  %v10542_v20 = vadd.f32 %v15542_v13, %v10514_v22 }
 0xdd4   :  { %12360 = vrsqrt.f32 %v10449_v3  ;;  %v10517_v9 = vmul.f32 %v15534_v24, %v10489_v8  ;;  %v10426_v57 = vmul.f32 0.03125, %v10390_v28  ;;  %v10571_v6 = vpack.c.bf16 %v10547_v39, %v10547_v39 }
 0xdd5   :  { %v12353_v27 = vpop.eup %12352  ;;  %v10446_v31 = vadd.f32 1e-12, %v10422_v12  ;;  %v10520_v54 = vmul.f32 %v15534_v24, %v10492_v58  ;;  %v10566_v25 = vpack.c.bf16 %v10542_v20, %v10542_v20  ;;  %v10650_v12 = vrot.slane %v15578_v48, 4 }
 0xdd6   :  { %v12355_v51 = vpop.eup %12354  ;;  %v10490_v43 = vmul.f32 %v12353_v27, %v15445_v14  ;;  %v10393_v63 = vpop.xlane.xlu0 %10392  ;;  %v10450_v32 = vadd.f32 1e-12, %v10426_v57  ;;  %v10545_v40 = vadd.f32 %v15542_v13, %v10517_v9  ;;  %v15600_v15 = vunpack.c.l.b16 %v10568_v26 }
 0xdd7   :  { %12362 = vrsqrt.f32 %v10446_v31  ;;  %v10399_v35 = vpop.xlane.xlu1 %10398  ;;  %v10495_v29 = vmul.f32 %v12355_v51, %v15449_v2  ;;  %v10427_v34 = vmul.f32 0.03125, %v10393_v63  ;;  %v10548_v18 = vadd.f32 %v15542_v13, %v10520_v54 }
 0xdd8   :  { %v10518_v10 = vmul.f32 %v15534_v24, %v10490_v43  ;;  %12364 = vrsqrt.f32 %v10450_v32  ;;  %v10429_v33 = vmul.f32 0.03125, %v10399_v35  ;;  %v10569_v60 = vpack.c.bf16 %v10545_v40, %v10545_v40 }
 0xdd9   :  { %v12357_v14 = vpop.eup %12356  ;;  %v10451_v5 = vadd.f32 1e-12, %v10427_v34  ;;  %v10523_v0 = vmul.f32 %v15534_v24, %v10495_v29  ;;  %v10572_v28 = vpack.c.bf16 %v10548_v18, %v10548_v18  ;;  %v10622_v51 = vunpack.c.l.b16 %v10566_v25 }
 0xdda   :  { %v10546_v17 = vadd.f32 %v15542_v13, %v10518_v10  ;;  %v10493_v41 = vmul.f32 %v12357_v14, %v15457_v37  ;;  %v10396_v42 = vpop.xlane.xlu0 %10395  ;;  %v10453_v2 = vadd.f32 1e-12, %v10429_v33  ;;  %v10625_v39 = vunpack.c.l.b16 %v10569_v60 }
 0xddb   :  { %v10428_v45 = vmul.f32 0.03125, %v10396_v42  ;;  %v10405_v47 = vpop.xlane.xlu1 %10404  ;;  %12366 = vrsqrt.f32 %v10451_v5  ;;  %v10551_v20 = vadd.f32 %v15542_v13, %v10523_v0  ;;  %v10628_v35 = vunpack.c.l.b16 %v10572_v28 }
 0xddc   :  { %v10570_v21 = vpack.c.bf16 %v10546_v17, %v10546_v17  ;;  %v10521_v62 = vmul.f32 %v15534_v24, %v10493_v41  ;;  %v10431_v23 = vmul.f32 0.03125, %v10405_v47  ;;  %12368 = vrsqrt.f32 %v10453_v2 }
 0xddd   :  { %v12359_v53 = vpop.eup %12358  ;;  %v10452_v37 = vadd.f32 1e-12, %v10428_v45  ;;  %v10652_v41 = vsel %vm10651_vm0, %v10650_v12, %v15574_v44  ;;  %v10575_v42 = vpack.c.bf16 %v10551_v20, %v10551_v20  ;;  %v10653_v25 = vrot.slane %v10622_v51, 3 }
 0xdde   :  { %v12361_v1 = vpop.eup %12360  ;;  %v10626_v30 = vunpack.c.l.b16 %v10570_v21  ;;  %v10549_v8 = vadd.f32 %v15542_v13, %v10521_v62  ;;  %v10496_v3 = vmul.f32 %v12359_v53, %v15464_v38  ;;  %v10402_v36 = vpop.xlane.xlu0 %10401  ;;  %v10455_v22 = vadd.f32 1e-12, %v10431_v23 }
 0xddf   :  { %v10497_v11 = vmul.f32 %v12361_v1, %v15468_v46  ;;  %12370 = vrsqrt.f32 %v10452_v37  ;;  %v10430_v58 = vmul.f32 0.03125, %v10402_v36  ;;  %v10627_v38 = vunpack.c.l.b16 %v10571_v6 }
 0xde0   :  { %v10662_v52 = vrot.slane %v10626_v30, 7  ;;  %v10573_v9 = vpack.c.bf16 %v10549_v8, %v10549_v8  ;;  %v10524_v31 = vmul.f32 %v15534_v24, %v10496_v3  ;;  %12372 = vrsqrt.f32 %v10455_v22 }
 0xde1   :  { %v12363_v27 = vpop.eup %12362  ;;  %v10454_v57 = vadd.f32 1e-12, %v10430_v58  ;;  %v10525_v54 = vmul.f32 %v15534_v24, %v10497_v11  ;;  %v10664_v34 = vrot.slane %v10627_v38, 6  ;;  %v10666_v2 = vrot.slane %v10628_v35, 5 }
 0xde2   :  { %v10494_v46 = vmul.f32 %v12363_v27, %v15475_v4  ;;  %v10408_v43 = vpop.xlane.xlu0 %10407  ;;  %v12365_v63 = vpop.eup %12364  ;;  %v10629_v14 = vunpack.c.l.b16 %v10573_v9  ;;  %v10552_v4 = vadd.f32 %v15542_v13, %v10524_v31  ;;  %v10663_v29 = vsel %vm10642_vm4, %v10662_v52, %v10625_v39 }
 0xde3   :  { %12374 = vrsqrt.f32 %v10454_v57  ;;  %v10432_v32 = vmul.f32 0.03125, %v10408_v43  ;;  %v10498_v10 = vmul.f32 %v12365_v63, %v15479_v16  ;;  %v10553_v16 = vadd.f32 %v15542_v13, %v10525_v54 }
 0xde4   :  { %v10522_v48 = vmul.f32 %v15534_v24, %v10494_v46  ;;  %v10665_v21 = vsel %vm10645_vm14, %v10664_v34, %v10663_v29  ;;  %v10668_v23 = vrot.slane %v10629_v14, 4  ;;  %v10576_v44 = vpack.c.bf16 %v10552_v4, %v10552_v4 }
 0xde5   :  { %v10456_v40 = vadd.f32 1e-12, %v10432_v32  ;;  %v10526_v17 = vmul.f32 %v15534_v24, %v10498_v10  ;;  %v12367_v33 = vpop.eup %12366  ;;  %v10631_v3 = vunpack.c.l.b16 %v10575_v42  ;;  %v10667_v36 = vsel %vm10648_vm15, %v10666_v2, %v10665_v21 }
 0xde6   :  { %v10550_v6 = vadd.f32 %v15542_v13, %v10522_v48  ;;  %v12369_v18 = vpop.eup %12368  ;;  %v10499_v47 = vmul.f32 %v12367_v33, %v15487_v59  ;;  %v10655_v59 = vsel %vm10654_vm1, %v10653_v25, %v10652_v41  ;;  %v10577_v11 = vpack.c.bf16 %v10553_v16, %v10553_v16 }
 0xde7   :  { %12376 = vrsqrt.f32 %v10456_v40  ;;  %v10554_v45 = vadd.f32 %v15542_v13, %v10526_v17  ;;  %v10501_v53 = vmul.f32 %v12369_v18, %v15491_v50  ;;  %v10669_v57 = vsel %vm10651_vm0, %v10668_v23, %v10667_v36 }
 0xde8   :  { %v10574_v5 = vpack.c.bf16 %v10550_v6, %v10550_v6  ;;  %v10527_v37 = vmul.f32 %v15534_v24, %v10499_v47  ;;  %v10658_v51 = vsel %vm10657_vm2, %v10656_v19, %v10655_v59  ;;  %v10672_v39 = vrot.slane %v10631_v3, 2 }
 0xde9   :  { %v12371_v62 = vpop.eup %12370  ;;  %v10578_v0 = vpack.c.bf16 %v10554_v45, %v10554_v45  ;;  %v10529_v8 = vmul.f32 %v15534_v24, %v10501_v53  ;;  %v10659_v19 = vrot.slane %v15600_v15, 1  ;;  %v10633_v40 = vunpack.c.l.b16 %v10577_v11 }
 0xdea   :  { %v10630_v60 = vunpack.c.l.b16 %v10574_v5  ;;  %v10500_v1 = vmul.f32 %v12371_v62, %v15499_v61  ;;  %v12373_v30 = vpop.eup %12372  ;;  %v10555_v22 = vadd.f32 %v15542_v13, %v10527_v37  ;;  %v10632_v61 = vunpack.c.l.b16 %v10576_v44  ;;  %v11036_v37 = vld [vmem:[%s15664_s9 + $0x8] ss:$0 sm:$0xff] }
 0xdeb   :  { %v10503_v58 = vmul.f32 %v12373_v30, %v15503_v49  ;;  %v10634_v28 = vunpack.c.l.b16 %v10578_v0  ;;  %v10557_v52 = vadd.f32 %v15542_v13, %v10529_v8  ;;  %v10661_v33 = vsel %vm10660_vm3, %v10659_v19, %v10658_v51 }
 0xdec   :  { %v10528_v50 = vmul.f32 %v15534_v24, %v10500_v1  ;;  %v10670_v26 = vrot.slane %v10630_v60, 3  ;;  %v10579_v27 = vpack.c.bf16 %v10555_v22, %v10555_v22  ;;  %v10674_v10 = vrot.slane %v10632_v61, 1 }
 0xded   :  { %v12375_v12 = vpop.eup %12374  ;;  %v10531_v31 = vmul.f32 %v15534_v24, %v10503_v58  ;;  %v10581_v43 = vpack.c.bf16 %v10557_v52, %v10557_v52  ;;  %v10676_v32 = vrot.slane %v10634_v28, 7 }
 0xdee   :  { %v10556_v9 = vadd.f32 %v15542_v13, %v10528_v50  ;;  %v10502_v38 = vmul.f32 %v12375_v12, %v15511_v55  ;;  %v10671_v49 = vsel %vm10654_vm1, %v10670_v26, %v10669_v57  ;;  %v10635_v46 = vunpack.c.l.b16 %v10579_v27 }
 0xdef   :  { %v10559_v20 = vadd.f32 %v15542_v13, %v10531_v31  ;;  %v10673_v48 = vsel %vm10657_vm2, %v10672_v39, %v10671_v49  ;;  %v10637_v6 = vunpack.c.l.b16 %v10581_v43  ;;  %v10677_v16 = vsel %vm10642_vm4, %v10676_v32, %v10633_v40 }
 0xdf0   :  { %v10580_v63 = vpack.c.bf16 %v10556_v9, %v10556_v9  ;;  %v10530_v35 = vmul.f32 %v15534_v24, %v10502_v38  ;;  %v10678_v55 = vrot.slane %v10635_v46, 6  ;;  %v10675_v34 = vsel %vm10660_vm3, %v10674_v10, %v10673_v48 }
 0xdf1   :  { %v12377_v54 = vpop.eup %12376  ;;  %v10583_v4 = vpack.c.bf16 %v10559_v20, %v10559_v20  ;;  %v10690_v25 = vpack.c.b16 %v10675_v34, %v10661_v33  ;;  %v10682_v47 = vrot.slane %v10637_v6, 4 }
 0xdf2   :  { %v10636_v14 = vunpack.c.l.b16 %v10580_v63  ;;  %v10504_v56 = vmul.f32 %v12377_v54, %v15518_v7  ;;  %v10558_v29 = vadd.f32 %v15542_v13, %v10530_v35  ;;  %v10679_v15 = vsel %vm10645_vm14, %v10678_v55, %v10677_v16 }
 0xdf3   :  { %v10639_v18 = vunpack.c.l.b16 %v10583_v4  ;;  %11943 = vmatprep.mubr.msk.bf16.mxu1 %vm457_vm10, %v10690_v25 }
 0xdf4   :  { %v10680_v17 = vrot.slane %v10636_v14, 5  ;;  %v10532_v41 = vmul.f32 %v15534_v24, %v10504_v56  ;;  %v10582_v42 = vpack.c.bf16 %v10558_v29, %v10558_v29 }
 0xdf5   :  { %v10686_v23 = vrot.slane %v10639_v18, 2 }
 0xdf6   :  { %v10560_v7 = vadd.f32 %v15542_v13, %v10532_v41  ;;  %v10638_v5 = vunpack.c.l.b16 %v10582_v42  ;;  %v10681_v45 = vsel %vm10648_vm15, %v10680_v17, %v10679_v15 }
 0xdf7   :  { %v10683_v2 = vsel %vm10651_vm0, %v10682_v47, %v10681_v45 }
 0xdf8   :  { %v10584_v21 = vpack.c.bf16 %v10560_v7, %v10560_v7  ;;  %v10684_v62 = vrot.slane %v10638_v5, 3 }
 0xdfa   :  { %v10640_v24 = vunpack.c.l.b16 %v10584_v21  ;;  %v10685_v53 = vsel %vm10654_vm1, %v10684_v62, %v10683_v2 }
 0xdfb   :  { %v10687_v13 = vsel %vm10657_vm2, %v10686_v23, %v10685_v53 }
 0xdfc   :  { %v10688_v44 = vrot.slane %v10640_v24, 1 }
 0xdfe   :  { %v10689_v60 = vsel %vm10660_vm3, %v10688_v44, %v10687_v13 }
 0xdff   :  { %v10691_v0 = vpack.c.b16 %v10689_v60, %v10689_v60 }
 0xe01   :  { %11944 = vmatmul.mubr.msk.bf16.vlgmr.msra.gmra.mrb[156].mxu1 %vm457_vm10, %v10691_v0 }
 0xed4   :  { %v11945_v1 = vpop.f32.mrb[156].mxu1 }
 0xed5   :  { %v10744_v30 = vpop.f32.mrb[157].mxu1  ;;  %v10753_v8 = vadd.f32 %v11945_v1, %v11036_v37 }
 0xed6   :  { %v10745_v3 = vadd.f32 %v11036_v37, %v10744_v30  ;;  %v11946_v59 = vpop.f32.mrb[158].mxu1 }
 0xed7   :  { %v10747_v36 = vpop.f32.mrb[159].mxu1  ;;  %v10760_v50 = vmul.f32 %v10753_v8, %v10753_v8 }
 0xed8   :  { %v10758_v11 = vmul.f32 %v10745_v3, %v10745_v3  ;;  %v10748_v22 = vadd.f32 %v11036_v37, %v10747_v36 }
 0xed9   :  { %v10767_v52 = vsel %vm698_vm12, %v10760_v50, 0.0 }
 0xeda   :  { %v10759_v58 = vmul.f32 %v10748_v22, %v10748_v22  ;;  %v10761_v12 = vsel %vm698_vm12, %v10758_v11, 0.0 }
 0xedb   :  { %10762 = vadd.xlane.f32.xlu1 %v10761_v12 }
 0xedc   :  { %v10764_v28 = vsel %vm698_vm12, %v10759_v58, 0.0 }
 0xedd   :  { %10765 = vadd.xlane.f32.xlu0 %v10764_v28 }
 0xedf   :  { %10768 = vadd.xlane.f32.xlu1 %v10767_v52 }
 0xf68   :  { %v10763_v61 = vpop.xlane.xlu1 %10762 }
 0xf69   :  { %v10770_v26 = vadd.f32 1e-24, %v10763_v61 }
 0xf6a   :  { %v10766_v27 = vpop.xlane.xlu0 %10765 }
 0xf6b   :  { %12378 = vrsqrt.f32 %v10770_v26  ;;  %v10771_v9 = vadd.f32 1e-24, %v10766_v27 }
 0xf6c   :  { %v10769_v31 = vpop.xlane.xlu1 %10768 }
 0xf6d   :  { %12380 = vrsqrt.f32 %v10771_v9  ;;  %v10772_v57 = vadd.f32 1e-24, %v10769_v31 }
 0xf6f   :  { %12382 = vrsqrt.f32 %v10772_v57 }
 0xf75   :  { %v12379_v38 = vpop.eup %12378 }
 0xf76   :  { %v10776_v49 = vmul.f32 %v12379_v38, %v10745_v3 }
 0xf77   :  { %v12381_v51 = vpop.eup %12380 }
 0xf78   :  { %v10777_v39 = vmul.f32 %v12381_v51, %v10748_v22 }
 0xf79   :  { %v12383_v46 = vpop.eup %12382 }
 0xf7a   :  { %v10779_v43 = vmul.f32 %v10777_v39, %v10776_v49  ;;  %v10778_v63 = vmul.f32 %v12383_v46, %v10753_v8 }
 0xf7c   :  { %v10780_v20 = vsel %vm698_vm12, %v10779_v43, 0.0  ;;  %v10783_v54 = vmul.f32 %v10778_v63, %v10776_v49 }
 0xf7d   :  { %10781 = vadd.xlane.f32.xlu0 %v10780_v20 }
 0xf7e   :  { %v10784_v32 = vsel %vm698_vm12, %v10783_v54, 0.0 }
 0xf7f   :  { %10785 = vadd.xlane.f32.xlu1 %v10784_v32 }
0x100a   :  { %v10782_v35 = vpop.xlane.xlu0 %10781 }
0x100b   :  { %v10787_v48 = vsub.f32 0.5, %v10782_v35  ;;  %v10797_v10 = vrot.slane %v10782_v35, 4 }
0x100c   :  { %v10786_v55 = vpop.xlane.xlu1 %10785 }
0x100d   :  { %v10798_v14 = vmin.f32 %v10782_v35, %v10797_v10  ;;  %v10788_v56 = vadd.f32 %v10787_v48, %v10786_v55 }
0x100f   :  { %v10789_v19 = vmax.f32 %v10788_v56, 0.0  ;;  %v10799_v40 = vrot.slane %v10798_v14, 2 }
0x1011   :  { %v10790_v4 = vrot.slane %v10789_v19, 4  ;;  %v10800_v34 = vmin.f32 %v10798_v14, %v10799_v40 }
0x1013   :  { %v10791_v29 = vadd.f32 %v10790_v4, %v10789_v19  ;;  %v10801_v41 = vrot.slane %v10800_v34, 1 }
0x1015   :  { %v10792_v6 = vrot.slane %v10791_v29, 2  ;;  %v10802_v42 = vmin.f32 %v10800_v34, %v10801_v41 }
0x1017   :  { %v10793_v17 = vadd.f32 %v10792_v6, %v10791_v29 }
0x1019   :  { %v10794_v33 = vrot.slane %v10793_v17, 1 }
0x101b   :  { %v10795_v16 = vadd.f32 %v10794_v33, %v10793_v17 }
0x101d   :  { %v10796_v25 = vmul.f32 0.125, %v10795_v16 }
0x101f   :  { %v10804_v7 = vsel %vm10803_vm5, %v10796_v25, %v10802_v42 }
0x1020   :  { %10805 = vst [vmem:[%s15670_s10] sm:$0x3] %v10804_v7 }

</bundles_post_ra>
